<compile_context>
chip_gen: v7x
topology: tpu7x:2x2x1
jax: 0.10.0
libtpu: 0.0.40
codegen_flags: <defaults>
</compile_context>

<pallas_src>
import functools

import jax
import jax.numpy as jnp
import numpy as np
from jax.experimental import pallas as pl
from jax.experimental.pallas import tpu as pltpu


def _round_up(x, m):
    return (x + m - 1) // m * m


def _aspp_kernel(xflat_ref, w0_ref, w1_ref, w2_ref, w3_ref, w4_ref,
                 wp_ref, bias_ref, out_ref, *, H, W, Cin, Cp, rates, P, Wp):
    """Channel-first ASPP body (one image per grid step).

    xflat_ref : (1, Cin, L)   bf16  flattened zero-padded input, L=(H+2P)*Wp+2P
    w0_ref    : (Cp, Cin)     bf16  1x1 conv, BN scale folded in
    w1..w3    : (9, Cp, Cin)  bf16  3x3 dilated convs (per-window slabs)
    w4_ref    : (Cp, Cin)     bf16  image-pool 1x1 conv, BN scale folded in
    wp_ref    : (5, Cp, Cp)   bf16  projection 1x1 conv (per-branch slabs)
    bias_ref  : (6, Cp, 1)    f32   folded BN biases
    out_ref   : (1, Cp, H*Wp) f32   padded output (wrapper crops pads)
    """
    HWp = H * Wp
    c0 = P + P * Wp                       # start of the central (unshifted) slab

    def bias_relu(y, idx):
        # BN scale already folded into the conv weights; epilogue stays f32.
        return jnp.maximum(y + bias_ref[idx], 0.0)

    # Central slab (Cin, HWp); valid pixels sit at columns h*Wp + P + w.
    xc = xflat_ref[0, :, c0:c0 + HWp]

    # ---- branch 0: 1x1 conv + BN + ReLU, projected immediately ----
    feat = bias_relu(jnp.dot(w0_ref[...], xc,
                             preferred_element_type=jnp.float32), 0)
    proj = jnp.dot(wp_ref[0], feat.astype(jnp.bfloat16),
                   preferred_element_type=jnp.float32)

    # ---- branches 1-3: dilated 3x3 convs as nine accumulated matmuls ----
    # Each shifted 3x3 window is a contiguous lane-slice of the flattened
    # padded input, fed straight to the MXU; accumulation happens in the f32
    # result, so there is no im2col staging (no vector-store traffic).
    def dilated_branch(w_ref, rate, idx, proj):
        acc = jnp.zeros((Cp, HWp), jnp.float32)
        for k in range(9):
            kh, kw = k // 3, k % 3
            start = P + (P + (kh - 1) * rate) * Wp + (kw - 1) * rate
            acc = acc + jnp.dot(w_ref[k],
                                xflat_ref[0, :, start:start + HWp],
                                preferred_element_type=jnp.float32)
        feat = bias_relu(acc, idx)
        # Incremental projection accumulation: feat is dropped right away.
        return proj + jnp.dot(wp_ref[idx], feat.astype(jnp.bfloat16),
                              preferred_element_type=jnp.float32)

    proj = dilated_branch(w1_ref, rates[0], 1, proj)
    proj = dilated_branch(w2_ref, rates[1], 2, proj)
    proj = dilated_branch(w3_ref, rates[2], 3, proj)

    # ---- branch 4: global avg pool -> 1x1 conv -> BN/ReLU -> bias column ----
    # Pad columns of the central slab are zero, so a plain row-sum over the
    # slab equals the sum over the H*W valid pixels.  Sum in f32.
    xmean = jnp.sum(xc.astype(jnp.float32), axis=1, keepdims=True) * (1.0 / (H * W))
    feat4 = bias_relu(jnp.dot(w4_ref[...].astype(jnp.float32), xmean,
                              preferred_element_type=jnp.float32), 4)   # (Cp, 1)
    # feat4 is constant over HW -> its projection is a per-channel bias column.
    proj = proj + jnp.dot(wp_ref[4].astype(jnp.float32), feat4,
                          preferred_element_type=jnp.float32)

    proj = bias_relu(proj, 5)
    # TODO(synk): nn.Dropout2d(0.5) is identity in eval mode; training-mode
    # channel dropout (pltpu.prng_*) is not implemented here.
    out_ref[0] = proj.astype(out_ref.dtype)


def aspp_forward(x_nchw, params, rates):
    """x_nchw: (N, Cin, H, W) float32 (PyTorch layout). Returns (N, Cout, H, W)."""
    N, Cin, H, W = x_nchw.shape
    Cout = params['w0'].shape[1]
    P = max(rates)

    # Sublane / lane padding (perf): Cout -> multiple of 8 so f32 feat/proj
    # vregs and output stores are full; padded row width Wp chosen so that
    # H*Wp is a multiple of 128 -> lane-dense output stores.
    Cp = _round_up(Cout, 8)
    lane_mult = int(128 // np.gcd(H, 128))
    Wp = int(_round_up(W + 2 * P, lane_mult))
    Hp = H + 2 * P
    HWp = H * Wp
    L = Hp * Wp + 2 * P

    # Zero-pad spatially (plus lane-alignment columns on the right), flatten
    # (Hp, Wp) onto the lane axis, add P extra zeros at both ends so every
    # shifted 3x3 window is a contiguous lane-slice, and cast to bf16.
    x = x_nchw.astype(jnp.float32)
    xpad = jnp.pad(x, ((0, 0), (0, 0), (P, P), (P, Wp - W - P)))
    xflat = jnp.pad(xpad.reshape(N, Cin, Hp * Wp),
                    ((0, 0), (0, 0), (P, P))).astype(jnp.bfloat16)

    # Fold eval-mode BN scales into the conv weights (channel-first), zero-pad
    # the Cout axis to Cp, cast to bf16 (accumulation stays f32 in-kernel).
    s, b = params['scale'], params['bias']

    def pad_rows(a):                       # pad Cout axis (axis 0) to Cp
        return jnp.pad(a, ((0, Cp - Cout), (0, 0)))

    w0t = pad_rows((params['w0'] * s[0][None, :]).T).astype(jnp.bfloat16)
    w4t = pad_rows((params['w4'] * s[4][None, :]).T).astype(jnp.bfloat16)

    def fold3(w, idx):                     # (3,3,Cin,Cout) -> (9, Cp, Cin)
        ws = w * s[idx][None, None, None, :]
        ws = jnp.transpose(ws, (0, 1, 3, 2)).reshape(9, Cout, Cin)
        return jnp.pad(ws, ((0, 0), (0, Cp - Cout), (0, 0))).astype(jnp.bfloat16)

    w1t = fold3(params['w1'], 1)
    w2t = fold3(params['w2'], 2)
    w3t = fold3(params['w3'], 3)

    wpt = (params['wp'] * s[5][None, :]).T                     # (Cout, 5*Cout)
    wp3 = jnp.zeros((5, Cp, Cp), jnp.float32)
    for i in range(5):
        wp3 = wp3.at[i, :Cout, :Cout].set(wpt[:, i * Cout:(i + 1) * Cout])
    wp3 = wp3.astype(jnp.bfloat16)

    bias3 = jnp.pad(b, ((0, 0), (0, Cp - Cout)))[..., None]    # (6, Cp, 1) f32
    bias3 = bias3.astype(jnp.float32)

    kernel = functools.partial(_aspp_kernel, H=H, W=W, Cin=Cin, Cp=Cp,
                               rates=tuple(rates), P=P, Wp=Wp)

    def const_spec(arr):
        nd = arr.ndim
        return pl.BlockSpec(arr.shape, lambda n, _nd=nd: (0,) * _nd)

    in_specs = [
        pl.BlockSpec((1, Cin, L), lambda n: (n, 0, 0)),
        const_spec(w0t), const_spec(w1t), const_spec(w2t), const_spec(w3t),
        const_spec(w4t), const_spec(wp3), const_spec(bias3),
    ]

    # TODO(synk): at production sizes (Cin>=1024, H=W=64, rates 12/24/36) the
    # whole-image block and fully-resident weights do not fit VMEM (esp. v7x's
    # 64 MiB): add a row-tiled grid axis with a P-row halo, stream one branch's
    # weights per grid step (branch grid axis + pl.when-managed accumulator),
    # use pipeline_mode=pl.Buffered(1) on the constant-weight specs and set
    # vmem_limit_bytes explicitly.
    out_flat = pl.pallas_call(
        kernel,
        out_shape=jax.ShapeDtypeStruct((N, Cp, HWp), jnp.float32),
        grid=(N,),
        in_specs=in_specs,
        out_specs=pl.BlockSpec((1, Cp, HWp), lambda n: (n, 0, 0)),
        compiler_params=pltpu.CompilerParams(
            dimension_semantics=("parallel",)),
    )(xflat, w0t, w1t, w2t, w3t, w4t, wp3, bias3)

    # Crop padded channels / columns back to NCHW (one extra XLA copy of the
    # output; keep the padded layout for the consumer if this shows up in a
    # profile).
    return out_flat.reshape(N, Cp, H, Wp)[:, :Cout, :, P:P + W]


def ref_forward(x_nchw, params, rates):
    """Pure-JAX f32 reference (eval mode, dropout = identity)."""
    x = jnp.transpose(x_nchw, (0, 2, 3, 1)).astype(jnp.float32)

    def bn_relu(y, idx):
        return jnp.maximum(y * params['scale'][idx] + params['bias'][idx], 0.0)

    f0 = bn_relu(jnp.einsum('nhwc,co->nhwo', x, params['w0'],
                            precision='highest'), 0)

    def dil(w, r, idx):
        y = jax.lax.conv_general_dilated(
            x, w, window_strides=(1, 1), padding=[(r, r), (r, r)],
            rhs_dilation=(r, r),
            dimension_numbers=('NHWC', 'HWIO', 'NHWC'),
            precision=jax.lax.Precision.HIGHEST)
        return bn_relu(y, idx)

    f1 = dil(params['w1'], rates[0], 1)
    f2 = dil(params['w2'], rates[1], 2)
    f3 = dil(params['w3'], rates[2], 3)

    m = jnp.mean(x, axis=(1, 2), keepdims=True)
    f4 = jnp.broadcast_to(
        bn_relu(jnp.einsum('nhwc,co->nhwo', m, params['w4'],
                           precision='highest'), 4), f0.shape)

    cat = jnp.concatenate([f0, f1, f2, f3, f4], axis=-1)
    y = bn_relu(jnp.einsum('nhwc,co->nhwo', cat, params['wp'],
                           precision='highest'), 5)
    return jnp.transpose(y, (0, 3, 1, 2))


def make_params(key, Cin, Cout):
    ks = jax.random.split(key, 8)
    return {
        'w0': (0.1 * jax.random.normal(ks[0], (Cin, Cout))).astype(jnp.float32),
        'w1': (0.1 * jax.random.normal(ks[1], (3, 3, Cin, Cout))).astype(jnp.float32),
        'w2': (0.1 * jax.random.normal(ks[2], (3, 3, Cin, Cout))).astype(jnp.float32),
        'w3': (0.1 * jax.random.normal(ks[3], (3, 3, Cin, Cout))).astype(jnp.float32),
        'w4': (0.1 * jax.random.normal(ks[4], (Cin, Cout))).astype(jnp.float32),
        'wp': (0.1 * jax.random.normal(ks[5], (5 * Cout, Cout))).astype(jnp.float32),
        # folded eval-mode BatchNorm: scale = gamma/sqrt(var+eps), bias = beta - mean*scale
        'scale': (1.0 + 0.1 * jax.random.normal(ks[6], (6, Cout))).astype(jnp.float32),
        'bias': (0.1 * jax.random.normal(ks[7], (6, Cout))).astype(jnp.float32),
    }


if __name__ == "__main__":
    N, Cin, H, W = 2, 32, 16, 16          # in_channels=32 -> out_channels=4
    rates = (1, 2, 3)                      # small atrous rates for 16x16 maps

    key = jax.random.PRNGKey(0)
    kx, kp = jax.random.split(key)
    x = jax.random.normal(kx, (N, Cin, H, W), jnp.float32)
    params = make_params(kp, Cin, Cin // 8)

    out = aspp_forward(x, params, rates)
    out = jax.block_until_ready(out)

    ref = ref_forward(x, params, rates)
    # bf16 matmul operands (f32 accumulation) vs f32 reference -> ~1% level.
    np.testing.assert_allclose(np.asarray(out), np.asarray(ref),
                               rtol=5e-2, atol=5e-2)
    print("KERNEL_OK")
</pallas_src>

<mosaic_0001>
module attributes {stable_mosaic.version = 11 : i64} {
  func.func @_aspp_kernel(%arg0: i32, %arg1: memref<1x32x534xbf16, #tpu.memory_space<vmem>>, %arg2: memref<8x32xbf16, #tpu.memory_space<vmem>>, %arg3: memref<9x8x32xbf16, #tpu.memory_space<vmem>>, %arg4: memref<9x8x32xbf16, #tpu.memory_space<vmem>>, %arg5: memref<9x8x32xbf16, #tpu.memory_space<vmem>>, %arg6: memref<8x32xbf16, #tpu.memory_space<vmem>>, %arg7: memref<5x8x8xbf16, #tpu.memory_space<vmem>>, %arg8: memref<6x8x1xf32, #tpu.memory_space<vmem>>, %arg9: memref<1x8x384xf32, #tpu.memory_space<vmem>>) attributes {dimension_semantics = [#tpu.dimension_semantics<parallel>], iteration_bounds = array<i64: 2>, scalar_prefetch = 0 : i64, scratch_operands = 0 : i64, tpu.core_type = #tpu.core_type<tc>, window_params = [{transform_indices = @transform_0, window_bounds = array<i64: 1, 32, 534>}, {pipeline_mode = #tpu.pipeline_mode<synchronous>, transform_indices = @transform_1, window_bounds = array<i64: 8, 32>}, {pipeline_mode = #tpu.pipeline_mode<synchronous>, transform_indices = @transform_2, window_bounds = array<i64: 9, 8, 32>}, {pipeline_mode = #tpu.pipeline_mode<synchronous>, transform_indices = @transform_3, window_bounds = array<i64: 9, 8, 32>}, {pipeline_mode = #tpu.pipeline_mode<synchronous>, transform_indices = @transform_4, window_bounds = array<i64: 9, 8, 32>}, {pipeline_mode = #tpu.pipeline_mode<synchronous>, transform_indices = @transform_5, window_bounds = array<i64: 8, 32>}, {pipeline_mode = #tpu.pipeline_mode<synchronous>, transform_indices = @transform_6, window_bounds = array<i64: 5, 8, 8>}, {pipeline_mode = #tpu.pipeline_mode<synchronous>, transform_indices = @transform_7, window_bounds = array<i64: 6, 8, 1>}, {transform_indices = @transform_8, window_bounds = array<i64: 1, 8, 384>}]} {
    %c0 = arith.constant 0 : index
    %c0_0 = arith.constant 0 : index
    %c75 = arith.constant 75 : index
    %0 = vector.load %arg1[%c0, %c0_0, %c75] : memref<1x32x534xbf16, #tpu.memory_space<vmem>>, vector<1x32x384xbf16>
    %1 = vector.shape_cast %0 : vector<1x32x384xbf16> to vector<32x384xbf16>
    %c0_1 = arith.constant 0 : index
    %c0_2 = arith.constant 0 : index
    %2 = vector.load %arg2[%c0_1, %c0_2] : memref<8x32xbf16, #tpu.memory_space<vmem>>, vector<8x32xbf16>
    %cst = arith.constant dense<0.000000e+00> : vector<8x384xf32>
    %3 = tpu.matmul %2, %1, %cst {dimension_numbers = #tpu.dot_dimension_numbers<[1], [0], [0], [1], [0, 0, 1, 1], [], []>} : vector<8x32xbf16>, vector<32x384xbf16>, vector<8x384xf32> -> vector<8x384xf32>
    %c0_3 = arith.constant 0 : index
    %c0_4 = arith.constant 0 : index
    %c0_5 = arith.constant 0 : index
    %4 = vector.load %arg8[%c0_3, %c0_4, %c0_5] : memref<6x8x1xf32, #tpu.memory_space<vmem>>, vector<1x8x1xf32>
    %5 = vector.shape_cast %4 : vector<1x8x1xf32> to vector<8x1xf32>
    %6 = vector.broadcast %5 : vector<8x1xf32> to vector<8x384xf32>
    %7 = arith.addf %3, %6 : vector<8x384xf32>
    %cst_6 = arith.constant 0.000000e+00 : f32
    %8 = vector.broadcast %cst_6 : f32 to vector<8x384xf32>
    %9 = arith.maximumf %7, %8 : vector<8x384xf32>
    %c0_7 = arith.constant 0 : index
    %c0_8 = arith.constant 0 : index
    %c0_9 = arith.constant 0 : index
    %10 = vector.load %arg7[%c0_7, %c0_8, %c0_9] : memref<5x8x8xbf16, #tpu.memory_space<vmem>>, vector<1x8x8xbf16>
    %11 = vector.shape_cast %10 : vector<1x8x8xbf16> to vector<8x8xbf16>
    %12 = arith.truncf %9 : vector<8x384xf32> to vector<8x384xbf16>
    %cst_10 = arith.constant dense<0.000000e+00> : vector<8x384xf32>
    %13 = tpu.matmul %11, %12, %cst_10 {dimension_numbers = #tpu.dot_dimension_numbers<[1], [0], [0], [1], [0, 0, 1, 1], [], []>} : vector<8x8xbf16>, vector<8x384xbf16>, vector<8x384xf32> -> vector<8x384xf32>
    %cst_11 = arith.constant 0.000000e+00 : f32
    %14 = vector.broadcast %cst_11 : f32 to vector<8x384xf32>
    %c0_12 = arith.constant 0 : index
    %c0_13 = arith.constant 0 : index
    %c0_14 = arith.constant 0 : index
    %15 = vector.load %arg3[%c0_12, %c0_13, %c0_14] : memref<9x8x32xbf16, #tpu.memory_space<vmem>>, vector<1x8x32xbf16>
    %16 = vector.shape_cast %15 : vector<1x8x32xbf16> to vector<8x32xbf16>
    %c0_15 = arith.constant 0 : index
    %c0_16 = arith.constant 0 : index
    %c50 = arith.constant 50 : index
    %17 = vector.load %arg1[%c0_15, %c0_16, %c50] : memref<1x32x534xbf16, #tpu.memory_space<vmem>>, vector<1x32x384xbf16>
    %18 = vector.shape_cast %17 : vector<1x32x384xbf16> to vector<32x384xbf16>
    %cst_17 = arith.constant dense<0.000000e+00> : vector<8x384xf32>
    %19 = tpu.matmul %16, %18, %cst_17 {dimension_numbers = #tpu.dot_dimension_numbers<[1], [0], [0], [1], [0, 0, 1, 1], [], []>} : vector<8x32xbf16>, vector<32x384xbf16>, vector<8x384xf32> -> vector<8x384xf32>
    %20 = arith.addf %14, %19 : vector<8x384xf32>
    %c1 = arith.constant 1 : index
    %c0_18 = arith.constant 0 : index
    %c0_19 = arith.constant 0 : index
    %21 = vector.load %arg3[%c1, %c0_18, %c0_19] : memref<9x8x32xbf16, #tpu.memory_space<vmem>>, vector<1x8x32xbf16>
    %22 = vector.shape_cast %21 : vector<1x8x32xbf16> to vector<8x32xbf16>
    %c0_20 = arith.constant 0 : index
    %c0_21 = arith.constant 0 : index
    %c51 = arith.constant 51 : index
    %23 = vector.load %arg1[%c0_20, %c0_21, %c51] : memref<1x32x534xbf16, #tpu.memory_space<vmem>>, vector<1x32x384xbf16>
    %24 = vector.shape_cast %23 : vector<1x32x384xbf16> to vector<32x384xbf16>
    %cst_22 = arith.constant dense<0.000000e+00> : vector<8x384xf32>
    %25 = tpu.matmul %22, %24, %cst_22 {dimension_numbers = #tpu.dot_dimension_numbers<[1], [0], [0], [1], [0, 0, 1, 1], [], []>} : vector<8x32xbf16>, vector<32x384xbf16>, vector<8x384xf32> -> vector<8x384xf32>
    %26 = arith.addf %20, %25 : vector<8x384xf32>
    %c2 = arith.constant 2 : index
    %c0_23 = arith.constant 0 : index
    %c0_24 = arith.constant 0 : index
    %27 = vector.load %arg3[%c2, %c0_23, %c0_24] : memref<9x8x32xbf16, #tpu.memory_space<vmem>>, vector<1x8x32xbf16>
    %28 = vector.shape_cast %27 : vector<1x8x32xbf16> to vector<8x32xbf16>
    %c0_25 = arith.constant 0 : index
    %c0_26 = arith.constant 0 : index
    %c52 = arith.constant 52 : index
    %29 = vector.load %arg1[%c0_25, %c0_26, %c52] : memref<1x32x534xbf16, #tpu.memory_space<vmem>>, vector<1x32x384xbf16>
    %30 = vector.shape_cast %29 : vector<1x32x384xbf16> to vector<32x384xbf16>
    %cst_27 = arith.constant dense<0.000000e+00> : vector<8x384xf32>
    %31 = tpu.matmul %28, %30, %cst_27 {dimension_numbers = #tpu.dot_dimension_numbers<[1], [0], [0], [1], [0, 0, 1, 1], [], []>} : vector<8x32xbf16>, vector<32x384xbf16>, vector<8x384xf32> -> vector<8x384xf32>
    %32 = arith.addf %26, %31 : vector<8x384xf32>
    %c3 = arith.constant 3 : index
    %c0_28 = arith.constant 0 : index
    %c0_29 = arith.constant 0 : index
    %33 = vector.load %arg3[%c3, %c0_28, %c0_29] : memref<9x8x32xbf16, #tpu.memory_space<vmem>>, vector<1x8x32xbf16>
    %34 = vector.shape_cast %33 : vector<1x8x32xbf16> to vector<8x32xbf16>
    %c0_30 = arith.constant 0 : index
    %c0_31 = arith.constant 0 : index
    %c74 = arith.constant 74 : index
    %35 = vector.load %arg1[%c0_30, %c0_31, %c74] : memref<1x32x534xbf16, #tpu.memory_space<vmem>>, vector<1x32x384xbf16>
    %36 = vector.shape_cast %35 : vector<1x32x384xbf16> to vector<32x384xbf16>
    %cst_32 = arith.constant dense<0.000000e+00> : vector<8x384xf32>
    %37 = tpu.matmul %34, %36, %cst_32 {dimension_numbers = #tpu.dot_dimension_numbers<[1], [0], [0], [1], [0, 0, 1, 1], [], []>} : vector<8x32xbf16>, vector<32x384xbf16>, vector<8x384xf32> -> vector<8x384xf32>
    %38 = arith.addf %32, %37 : vector<8x384xf32>
    %c4 = arith.constant 4 : index
    %c0_33 = arith.constant 0 : index
    %c0_34 = arith.constant 0 : index
    %39 = vector.load %arg3[%c4, %c0_33, %c0_34] : memref<9x8x32xbf16, #tpu.memory_space<vmem>>, vector<1x8x32xbf16>
    %40 = vector.shape_cast %39 : vector<1x8x32xbf16> to vector<8x32xbf16>
    %c0_35 = arith.constant 0 : index
    %c0_36 = arith.constant 0 : index
    %c75_37 = arith.constant 75 : index
    %41 = vector.load %arg1[%c0_35, %c0_36, %c75_37] : memref<1x32x534xbf16, #tpu.memory_space<vmem>>, vector<1x32x384xbf16>
    %42 = vector.shape_cast %41 : vector<1x32x384xbf16> to vector<32x384xbf16>
    %cst_38 = arith.constant dense<0.000000e+00> : vector<8x384xf32>
    %43 = tpu.matmul %40, %42, %cst_38 {dimension_numbers = #tpu.dot_dimension_numbers<[1], [0], [0], [1], [0, 0, 1, 1], [], []>} : vector<8x32xbf16>, vector<32x384xbf16>, vector<8x384xf32> -> vector<8x384xf32>
    %44 = arith.addf %38, %43 : vector<8x384xf32>
    %c5 = arith.constant 5 : index
    %c0_39 = arith.constant 0 : index
    %c0_40 = arith.constant 0 : index
    %45 = vector.load %arg3[%c5, %c0_39, %c0_40] : memref<9x8x32xbf16, #tpu.memory_space<vmem>>, vector<1x8x32xbf16>
    %46 = vector.shape_cast %45 : vector<1x8x32xbf16> to vector<8x32xbf16>
    %c0_41 = arith.constant 0 : index
    %c0_42 = arith.constant 0 : index
    %c76 = arith.constant 76 : index
    %47 = vector.load %arg1[%c0_41, %c0_42, %c76] : memref<1x32x534xbf16, #tpu.memory_space<vmem>>, vector<1x32x384xbf16>
    %48 = vector.shape_cast %47 : vector<1x32x384xbf16> to vector<32x384xbf16>
    %cst_43 = arith.constant dense<0.000000e+00> : vector<8x384xf32>
    %49 = tpu.matmul %46, %48, %cst_43 {dimension_numbers = #tpu.dot_dimension_numbers<[1], [0], [0], [1], [0, 0, 1, 1], [], []>} : vector<8x32xbf16>, vector<32x384xbf16>, vector<8x384xf32> -> vector<8x384xf32>
    %50 = arith.addf %44, %49 : vector<8x384xf32>
    %c6 = arith.constant 6 : index
    %c0_44 = arith.constant 0 : index
    %c0_45 = arith.constant 0 : index
    %51 = vector.load %arg3[%c6, %c0_44, %c0_45] : memref<9x8x32xbf16, #tpu.memory_space<vmem>>, vector<1x8x32xbf16>
    %52 = vector.shape_cast %51 : vector<1x8x32xbf16> to vector<8x32xbf16>
    %c0_46 = arith.constant 0 : index
    %c0_47 = arith.constant 0 : index
    %c98 = arith.constant 98 : index
    %53 = vector.load %arg1[%c0_46, %c0_47, %c98] : memref<1x32x534xbf16, #tpu.memory_space<vmem>>, vector<1x32x384xbf16>
    %54 = vector.shape_cast %53 : vector<1x32x384xbf16> to vector<32x384xbf16>
    %cst_48 = arith.constant dense<0.000000e+00> : vector<8x384xf32>
    %55 = tpu.matmul %52, %54, %cst_48 {dimension_numbers = #tpu.dot_dimension_numbers<[1], [0], [0], [1], [0, 0, 1, 1], [], []>} : vector<8x32xbf16>, vector<32x384xbf16>, vector<8x384xf32> -> vector<8x384xf32>
    %56 = arith.addf %50, %55 : vector<8x384xf32>
    %c7 = arith.constant 7 : index
    %c0_49 = arith.constant 0 : index
    %c0_50 = arith.constant 0 : index
    %57 = vector.load %arg3[%c7, %c0_49, %c0_50] : memref<9x8x32xbf16, #tpu.memory_space<vmem>>, vector<1x8x32xbf16>
    %58 = vector.shape_cast %57 : vector<1x8x32xbf16> to vector<8x32xbf16>
    %c0_51 = arith.constant 0 : index
    %c0_52 = arith.constant 0 : index
    %c99 = arith.constant 99 : index
    %59 = vector.load %arg1[%c0_51, %c0_52, %c99] : memref<1x32x534xbf16, #tpu.memory_space<vmem>>, vector<1x32x384xbf16>
    %60 = vector.shape_cast %59 : vector<1x32x384xbf16> to vector<32x384xbf16>
    %cst_53 = arith.constant dense<0.000000e+00> : vector<8x384xf32>
    %61 = tpu.matmul %58, %60, %cst_53 {dimension_numbers = #tpu.dot_dimension_numbers<[1], [0], [0], [1], [0, 0, 1, 1], [], []>} : vector<8x32xbf16>, vector<32x384xbf16>, vector<8x384xf32> -> vector<8x384xf32>
    %62 = arith.addf %56, %61 : vector<8x384xf32>
    %c8 = arith.constant 8 : index
    %c0_54 = arith.constant 0 : index
    %c0_55 = arith.constant 0 : index
    %63 = vector.load %arg3[%c8, %c0_54, %c0_55] : memref<9x8x32xbf16, #tpu.memory_space<vmem>>, vector<1x8x32xbf16>
    %64 = vector.shape_cast %63 : vector<1x8x32xbf16> to vector<8x32xbf16>
    %c0_56 = arith.constant 0 : index
    %c0_57 = arith.constant 0 : index
    %c100 = arith.constant 100 : index
    %65 = vector.load %arg1[%c0_56, %c0_57, %c100] : memref<1x32x534xbf16, #tpu.memory_space<vmem>>, vector<1x32x384xbf16>
    %66 = vector.shape_cast %65 : vector<1x32x384xbf16> to vector<32x384xbf16>
    %cst_58 = arith.constant dense<0.000000e+00> : vector<8x384xf32>
    %67 = tpu.matmul %64, %66, %cst_58 {dimension_numbers = #tpu.dot_dimension_numbers<[1], [0], [0], [1], [0, 0, 1, 1], [], []>} : vector<8x32xbf16>, vector<32x384xbf16>, vector<8x384xf32> -> vector<8x384xf32>
    %68 = arith.addf %62, %67 : vector<8x384xf32>
    %c1_59 = arith.constant 1 : index
    %c0_60 = arith.constant 0 : index
    %c0_61 = arith.constant 0 : index
    %69 = vector.load %arg8[%c1_59, %c0_60, %c0_61] : memref<6x8x1xf32, #tpu.memory_space<vmem>>, vector<1x8x1xf32>
    %70 = vector.shape_cast %69 : vector<1x8x1xf32> to vector<8x1xf32>
    %71 = vector.broadcast %70 : vector<8x1xf32> to vector<8x384xf32>
    %72 = arith.addf %68, %71 : vector<8x384xf32>
    %cst_62 = arith.constant 0.000000e+00 : f32
    %73 = vector.broadcast %cst_62 : f32 to vector<8x384xf32>
    %74 = arith.maximumf %72, %73 : vector<8x384xf32>
    %c1_63 = arith.constant 1 : index
    %c0_64 = arith.constant 0 : index
    %c0_65 = arith.constant 0 : index
    %75 = vector.load %arg7[%c1_63, %c0_64, %c0_65] : memref<5x8x8xbf16, #tpu.memory_space<vmem>>, vector<1x8x8xbf16>
    %76 = vector.shape_cast %75 : vector<1x8x8xbf16> to vector<8x8xbf16>
    %77 = arith.truncf %74 : vector<8x384xf32> to vector<8x384xbf16>
    %cst_66 = arith.constant dense<0.000000e+00> : vector<8x384xf32>
    %78 = tpu.matmul %76, %77, %cst_66 {dimension_numbers = #tpu.dot_dimension_numbers<[1], [0], [0], [1], [0, 0, 1, 1], [], []>} : vector<8x8xbf16>, vector<8x384xbf16>, vector<8x384xf32> -> vector<8x384xf32>
    %79 = arith.addf %13, %78 : vector<8x384xf32>
    %cst_67 = arith.constant 0.000000e+00 : f32
    %80 = vector.broadcast %cst_67 : f32 to vector<8x384xf32>
    %c0_68 = arith.constant 0 : index
    %c0_69 = arith.constant 0 : index
    %c0_70 = arith.constant 0 : index
    %81 = vector.load %arg4[%c0_68, %c0_69, %c0_70] : memref<9x8x32xbf16, #tpu.memory_space<vmem>>, vector<1x8x32xbf16>
    %82 = vector.shape_cast %81 : vector<1x8x32xbf16> to vector<8x32xbf16>
    %c0_71 = arith.constant 0 : index
    %c0_72 = arith.constant 0 : index
    %c25 = arith.constant 25 : index
    %83 = vector.load %arg1[%c0_71, %c0_72, %c25] : memref<1x32x534xbf16, #tpu.memory_space<vmem>>, vector<1x32x384xbf16>
    %84 = vector.shape_cast %83 : vector<1x32x384xbf16> to vector<32x384xbf16>
    %cst_73 = arith.constant dense<0.000000e+00> : vector<8x384xf32>
    %85 = tpu.matmul %82, %84, %cst_73 {dimension_numbers = #tpu.dot_dimension_numbers<[1], [0], [0], [1], [0, 0, 1, 1], [], []>} : vector<8x32xbf16>, vector<32x384xbf16>, vector<8x384xf32> -> vector<8x384xf32>
    %86 = arith.addf %80, %85 : vector<8x384xf32>
    %c1_74 = arith.constant 1 : index
    %c0_75 = arith.constant 0 : index
    %c0_76 = arith.constant 0 : index
    %87 = vector.load %arg4[%c1_74, %c0_75, %c0_76] : memref<9x8x32xbf16, #tpu.memory_space<vmem>>, vector<1x8x32xbf16>
    %88 = vector.shape_cast %87 : vector<1x8x32xbf16> to vector<8x32xbf16>
    %c0_77 = arith.constant 0 : index
    %c0_78 = arith.constant 0 : index
    %c27 = arith.constant 27 : index
    %89 = vector.load %arg1[%c0_77, %c0_78, %c27] : memref<1x32x534xbf16, #tpu.memory_space<vmem>>, vector<1x32x384xbf16>
    %90 = vector.shape_cast %89 : vector<1x32x384xbf16> to vector<32x384xbf16>
    %cst_79 = arith.constant dense<0.000000e+00> : vector<8x384xf32>
    %91 = tpu.matmul %88, %90, %cst_79 {dimension_numbers = #tpu.dot_dimension_numbers<[1], [0], [0], [1], [0, 0, 1, 1], [], []>} : vector<8x32xbf16>, vector<32x384xbf16>, vector<8x384xf32> -> vector<8x384xf32>
    %92 = arith.addf %86, %91 : vector<8x384xf32>
    %c2_80 = arith.constant 2 : index
    %c0_81 = arith.constant 0 : index
    %c0_82 = arith.constant 0 : index
    %93 = vector.load %arg4[%c2_80, %c0_81, %c0_82] : memref<9x8x32xbf16, #tpu.memory_space<vmem>>, vector<1x8x32xbf16>
    %94 = vector.shape_cast %93 : vector<1x8x32xbf16> to vector<8x32xbf16>
    %c0_83 = arith.constant 0 : index
    %c0_84 = arith.constant 0 : index
    %c29 = arith.constant 29 : index
    %95 = vector.load %arg1[%c0_83, %c0_84, %c29] : memref<1x32x534xbf16, #tpu.memory_space<vmem>>, vector<1x32x384xbf16>
    %96 = vector.shape_cast %95 : vector<1x32x384xbf16> to vector<32x384xbf16>
    %cst_85 = arith.constant dense<0.000000e+00> : vector<8x384xf32>
    %97 = tpu.matmul %94, %96, %cst_85 {dimension_numbers = #tpu.dot_dimension_numbers<[1], [0], [0], [1], [0, 0, 1, 1], [], []>} : vector<8x32xbf16>, vector<32x384xbf16>, vector<8x384xf32> -> vector<8x384xf32>
    %98 = arith.addf %92, %97 : vector<8x384xf32>
    %c3_86 = arith.constant 3 : index
    %c0_87 = arith.constant 0 : index
    %c0_88 = arith.constant 0 : index
    %99 = vector.load %arg4[%c3_86, %c0_87, %c0_88] : memref<9x8x32xbf16, #tpu.memory_space<vmem>>, vector<1x8x32xbf16>
    %100 = vector.shape_cast %99 : vector<1x8x32xbf16> to vector<8x32xbf16>
    %c0_89 = arith.constant 0 : index
    %c0_90 = arith.constant 0 : index
    %c73 = arith.constant 73 : index
    %101 = vector.load %arg1[%c0_89, %c0_90, %c73] : memref<1x32x534xbf16, #tpu.memory_space<vmem>>, vector<1x32x384xbf16>
    %102 = vector.shape_cast %101 : vector<1x32x384xbf16> to vector<32x384xbf16>
    %cst_91 = arith.constant dense<0.000000e+00> : vector<8x384xf32>
    %103 = tpu.matmul %100, %102, %cst_91 {dimension_numbers = #tpu.dot_dimension_numbers<[1], [0], [0], [1], [0, 0, 1, 1], [], []>} : vector<8x32xbf16>, vector<32x384xbf16>, vector<8x384xf32> -> vector<8x384xf32>
    %104 = arith.addf %98, %103 : vector<8x384xf32>
    %c4_92 = arith.constant 4 : index
    %c0_93 = arith.constant 0 : index
    %c0_94 = arith.constant 0 : index
    %105 = vector.load %arg4[%c4_92, %c0_93, %c0_94] : memref<9x8x32xbf16, #tpu.memory_space<vmem>>, vector<1x8x32xbf16>
    %106 = vector.shape_cast %105 : vector<1x8x32xbf16> to vector<8x32xbf16>
    %c0_95 = arith.constant 0 : index
    %c0_96 = arith.constant 0 : index
    %c75_97 = arith.constant 75 : index
    %107 = vector.load %arg1[%c0_95, %c0_96, %c75_97] : memref<1x32x534xbf16, #tpu.memory_space<vmem>>, vector<1x32x384xbf16>
    %108 = vector.shape_cast %107 : vector<1x32x384xbf16> to vector<32x384xbf16>
    %cst_98 = arith.constant dense<0.000000e+00> : vector<8x384xf32>
    %109 = tpu.matmul %106, %108, %cst_98 {dimension_numbers = #tpu.dot_dimension_numbers<[1], [0], [0], [1], [0, 0, 1, 1], [], []>} : vector<8x32xbf16>, vector<32x384xbf16>, vector<8x384xf32> -> vector<8x384xf32>
    %110 = arith.addf %104, %109 : vector<8x384xf32>
    %c5_99 = arith.constant 5 : index
    %c0_100 = arith.constant 0 : index
    %c0_101 = arith.constant 0 : index
    %111 = vector.load %arg4[%c5_99, %c0_100, %c0_101] : memref<9x8x32xbf16, #tpu.memory_space<vmem>>, vector<1x8x32xbf16>
    %112 = vector.shape_cast %111 : vector<1x8x32xbf16> to vector<8x32xbf16>
    %c0_102 = arith.constant 0 : index
    %c0_103 = arith.constant 0 : index
    %c77 = arith.constant 77 : index
    %113 = vector.load %arg1[%c0_102, %c0_103, %c77] : memref<1x32x534xbf16, #tpu.memory_space<vmem>>, vector<1x32x384xbf16>
    %114 = vector.shape_cast %113 : vector<1x32x384xbf16> to vector<32x384xbf16>
    %cst_104 = arith.constant dense<0.000000e+00> : vector<8x384xf32>
    %115 = tpu.matmul %112, %114, %cst_104 {dimension_numbers = #tpu.dot_dimension_numbers<[1], [0], [0], [1], [0, 0, 1, 1], [], []>} : vector<8x32xbf16>, vector<32x384xbf16>, vector<8x384xf32> -> vector<8x384xf32>
    %116 = arith.addf %110, %115 : vector<8x384xf32>
    %c6_105 = arith.constant 6 : index
    %c0_106 = arith.constant 0 : index
    %c0_107 = arith.constant 0 : index
    %117 = vector.load %arg4[%c6_105, %c0_106, %c0_107] : memref<9x8x32xbf16, #tpu.memory_space<vmem>>, vector<1x8x32xbf16>
    %118 = vector.shape_cast %117 : vector<1x8x32xbf16> to vector<8x32xbf16>
    %c0_108 = arith.constant 0 : index
    %c0_109 = arith.constant 0 : index
    %c121 = arith.constant 121 : index
    %119 = vector.load %arg1[%c0_108, %c0_109, %c121] : memref<1x32x534xbf16, #tpu.memory_space<vmem>>, vector<1x32x384xbf16>
    %120 = vector.shape_cast %119 : vector<1x32x384xbf16> to vector<32x384xbf16>
    %cst_110 = arith.constant dense<0.000000e+00> : vector<8x384xf32>
    %121 = tpu.matmul %118, %120, %cst_110 {dimension_numbers = #tpu.dot_dimension_numbers<[1], [0], [0], [1], [0, 0, 1, 1], [], []>} : vector<8x32xbf16>, vector<32x384xbf16>, vector<8x384xf32> -> vector<8x384xf32>
    %122 = arith.addf %116, %121 : vector<8x384xf32>
    %c7_111 = arith.constant 7 : index
    %c0_112 = arith.constant 0 : index
    %c0_113 = arith.constant 0 : index
    %123 = vector.load %arg4[%c7_111, %c0_112, %c0_113] : memref<9x8x32xbf16, #tpu.memory_space<vmem>>, vector<1x8x32xbf16>
    %124 = vector.shape_cast %123 : vector<1x8x32xbf16> to vector<8x32xbf16>
    %c0_114 = arith.constant 0 : index
    %c0_115 = arith.constant 0 : index
    %c123 = arith.constant 123 : index
    %125 = vector.load %arg1[%c0_114, %c0_115, %c123] : memref<1x32x534xbf16, #tpu.memory_space<vmem>>, vector<1x32x384xbf16>
    %126 = vector.shape_cast %125 : vector<1x32x384xbf16> to vector<32x384xbf16>
    %cst_116 = arith.constant dense<0.000000e+00> : vector<8x384xf32>
    %127 = tpu.matmul %124, %126, %cst_116 {dimension_numbers = #tpu.dot_dimension_numbers<[1], [0], [0], [1], [0, 0, 1, 1], [], []>} : vector<8x32xbf16>, vector<32x384xbf16>, vector<8x384xf32> -> vector<8x384xf32>
    %128 = arith.addf %122, %127 : vector<8x384xf32>
    %c8_117 = arith.constant 8 : index
    %c0_118 = arith.constant 0 : index
    %c0_119 = arith.constant 0 : index
    %129 = vector.load %arg4[%c8_117, %c0_118, %c0_119] : memref<9x8x32xbf16, #tpu.memory_space<vmem>>, vector<1x8x32xbf16>
    %130 = vector.shape_cast %129 : vector<1x8x32xbf16> to vector<8x32xbf16>
    %c0_120 = arith.constant 0 : index
    %c0_121 = arith.constant 0 : index
    %c125 = arith.constant 125 : index
    %131 = vector.load %arg1[%c0_120, %c0_121, %c125] : memref<1x32x534xbf16, #tpu.memory_space<vmem>>, vector<1x32x384xbf16>
    %132 = vector.shape_cast %131 : vector<1x32x384xbf16> to vector<32x384xbf16>
    %cst_122 = arith.constant dense<0.000000e+00> : vector<8x384xf32>
    %133 = tpu.matmul %130, %132, %cst_122 {dimension_numbers = #tpu.dot_dimension_numbers<[1], [0], [0], [1], [0, 0, 1, 1], [], []>} : vector<8x32xbf16>, vector<32x384xbf16>, vector<8x384xf32> -> vector<8x384xf32>
    %134 = arith.addf %128, %133 : vector<8x384xf32>
    %c2_123 = arith.constant 2 : index
    %c0_124 = arith.constant 0 : index
    %c0_125 = arith.constant 0 : index
    %135 = vector.load %arg8[%c2_123, %c0_124, %c0_125] : memref<6x8x1xf32, #tpu.memory_space<vmem>>, vector<1x8x1xf32>
    %136 = vector.shape_cast %135 : vector<1x8x1xf32> to vector<8x1xf32>
    %137 = vector.broadcast %136 : vector<8x1xf32> to vector<8x384xf32>
    %138 = arith.addf %134, %137 : vector<8x384xf32>
    %cst_126 = arith.constant 0.000000e+00 : f32
    %139 = vector.broadcast %cst_126 : f32 to vector<8x384xf32>
    %140 = arith.maximumf %138, %139 : vector<8x384xf32>
    %c2_127 = arith.constant 2 : index
    %c0_128 = arith.constant 0 : index
    %c0_129 = arith.constant 0 : index
    %141 = vector.load %arg7[%c2_127, %c0_128, %c0_129] : memref<5x8x8xbf16, #tpu.memory_space<vmem>>, vector<1x8x8xbf16>
    %142 = vector.shape_cast %141 : vector<1x8x8xbf16> to vector<8x8xbf16>
    %143 = arith.truncf %140 : vector<8x384xf32> to vector<8x384xbf16>
    %cst_130 = arith.constant dense<0.000000e+00> : vector<8x384xf32>
    %144 = tpu.matmul %142, %143, %cst_130 {dimension_numbers = #tpu.dot_dimension_numbers<[1], [0], [0], [1], [0, 0, 1, 1], [], []>} : vector<8x8xbf16>, vector<8x384xbf16>, vector<8x384xf32> -> vector<8x384xf32>
    %145 = arith.addf %79, %144 : vector<8x384xf32>
    %cst_131 = arith.constant 0.000000e+00 : f32
    %146 = vector.broadcast %cst_131 : f32 to vector<8x384xf32>
    %c0_132 = arith.constant 0 : index
    %c0_133 = arith.constant 0 : index
    %c0_134 = arith.constant 0 : index
    %147 = vector.load %arg5[%c0_132, %c0_133, %c0_134] : memref<9x8x32xbf16, #tpu.memory_space<vmem>>, vector<1x8x32xbf16>
    %148 = vector.shape_cast %147 : vector<1x8x32xbf16> to vector<8x32xbf16>
    %c0_135 = arith.constant 0 : index
    %c0_136 = arith.constant 0 : index
    %c0_137 = arith.constant 0 : index
    %149 = vector.load %arg1[%c0_135, %c0_136, %c0_137] : memref<1x32x534xbf16, #tpu.memory_space<vmem>>, vector<1x32x384xbf16>
    %150 = vector.shape_cast %149 : vector<1x32x384xbf16> to vector<32x384xbf16>
    %cst_138 = arith.constant dense<0.000000e+00> : vector<8x384xf32>
    %151 = tpu.matmul %148, %150, %cst_138 {dimension_numbers = #tpu.dot_dimension_numbers<[1], [0], [0], [1], [0, 0, 1, 1], [], []>} : vector<8x32xbf16>, vector<32x384xbf16>, vector<8x384xf32> -> vector<8x384xf32>
    %152 = arith.addf %146, %151 : vector<8x384xf32>
    %c1_139 = arith.constant 1 : index
    %c0_140 = arith.constant 0 : index
    %c0_141 = arith.constant 0 : index
    %153 = vector.load %arg5[%c1_139, %c0_140, %c0_141] : memref<9x8x32xbf16, #tpu.memory_space<vmem>>, vector<1x8x32xbf16>
    %154 = vector.shape_cast %153 : vector<1x8x32xbf16> to vector<8x32xbf16>
    %c0_142 = arith.constant 0 : index
    %c0_143 = arith.constant 0 : index
    %c3_144 = arith.constant 3 : index
    %155 = vector.load %arg1[%c0_142, %c0_143, %c3_144] : memref<1x32x534xbf16, #tpu.memory_space<vmem>>, vector<1x32x384xbf16>
    %156 = vector.shape_cast %155 : vector<1x32x384xbf16> to vector<32x384xbf16>
    %cst_145 = arith.constant dense<0.000000e+00> : vector<8x384xf32>
    %157 = tpu.matmul %154, %156, %cst_145 {dimension_numbers = #tpu.dot_dimension_numbers<[1], [0], [0], [1], [0, 0, 1, 1], [], []>} : vector<8x32xbf16>, vector<32x384xbf16>, vector<8x384xf32> -> vector<8x384xf32>
    %158 = arith.addf %152, %157 : vector<8x384xf32>
    %c2_146 = arith.constant 2 : index
    %c0_147 = arith.constant 0 : index
    %c0_148 = arith.constant 0 : index
    %159 = vector.load %arg5[%c2_146, %c0_147, %c0_148] : memref<9x8x32xbf16, #tpu.memory_space<vmem>>, vector<1x8x32xbf16>
    %160 = vector.shape_cast %159 : vector<1x8x32xbf16> to vector<8x32xbf16>
    %c0_149 = arith.constant 0 : index
    %c0_150 = arith.constant 0 : index
    %c6_151 = arith.constant 6 : index
    %161 = vector.load %arg1[%c0_149, %c0_150, %c6_151] : memref<1x32x534xbf16, #tpu.memory_space<vmem>>, vector<1x32x384xbf16>
    %162 = vector.shape_cast %161 : vector<1x32x384xbf16> to vector<32x384xbf16>
    %cst_152 = arith.constant dense<0.000000e+00> : vector<8x384xf32>
    %163 = tpu.matmul %160, %162, %cst_152 {dimension_numbers = #tpu.dot_dimension_numbers<[1], [0], [0], [1], [0, 0, 1, 1], [], []>} : vector<8x32xbf16>, vector<32x384xbf16>, vector<8x384xf32> -> vector<8x384xf32>
    %164 = arith.addf %158, %163 : vector<8x384xf32>
    %c3_153 = arith.constant 3 : index
    %c0_154 = arith.constant 0 : index
    %c0_155 = arith.constant 0 : index
    %165 = vector.load %arg5[%c3_153, %c0_154, %c0_155] : memref<9x8x32xbf16, #tpu.memory_space<vmem>>, vector<1x8x32xbf16>
    %166 = vector.shape_cast %165 : vector<1x8x32xbf16> to vector<8x32xbf16>
    %c0_156 = arith.constant 0 : index
    %c0_157 = arith.constant 0 : index
    %c72 = arith.constant 72 : index
    %167 = vector.load %arg1[%c0_156, %c0_157, %c72] : memref<1x32x534xbf16, #tpu.memory_space<vmem>>, vector<1x32x384xbf16>
    %168 = vector.shape_cast %167 : vector<1x32x384xbf16> to vector<32x384xbf16>
    %cst_158 = arith.constant dense<0.000000e+00> : vector<8x384xf32>
    %169 = tpu.matmul %166, %168, %cst_158 {dimension_numbers = #tpu.dot_dimension_numbers<[1], [0], [0], [1], [0, 0, 1, 1], [], []>} : vector<8x32xbf16>, vector<32x384xbf16>, vector<8x384xf32> -> vector<8x384xf32>
    %170 = arith.addf %164, %169 : vector<8x384xf32>
    %c4_159 = arith.constant 4 : index
    %c0_160 = arith.constant 0 : index
    %c0_161 = arith.constant 0 : index
    %171 = vector.load %arg5[%c4_159, %c0_160, %c0_161] : memref<9x8x32xbf16, #tpu.memory_space<vmem>>, vector<1x8x32xbf16>
    %172 = vector.shape_cast %171 : vector<1x8x32xbf16> to vector<8x32xbf16>
    %c0_162 = arith.constant 0 : index
    %c0_163 = arith.constant 0 : index
    %c75_164 = arith.constant 75 : index
    %173 = vector.load %arg1[%c0_162, %c0_163, %c75_164] : memref<1x32x534xbf16, #tpu.memory_space<vmem>>, vector<1x32x384xbf16>
    %174 = vector.shape_cast %173 : vector<1x32x384xbf16> to vector<32x384xbf16>
    %cst_165 = arith.constant dense<0.000000e+00> : vector<8x384xf32>
    %175 = tpu.matmul %172, %174, %cst_165 {dimension_numbers = #tpu.dot_dimension_numbers<[1], [0], [0], [1], [0, 0, 1, 1], [], []>} : vector<8x32xbf16>, vector<32x384xbf16>, vector<8x384xf32> -> vector<8x384xf32>
    %176 = arith.addf %170, %175 : vector<8x384xf32>
    %c5_166 = arith.constant 5 : index
    %c0_167 = arith.constant 0 : index
    %c0_168 = arith.constant 0 : index
    %177 = vector.load %arg5[%c5_166, %c0_167, %c0_168] : memref<9x8x32xbf16, #tpu.memory_space<vmem>>, vector<1x8x32xbf16>
    %178 = vector.shape_cast %177 : vector<1x8x32xbf16> to vector<8x32xbf16>
    %c0_169 = arith.constant 0 : index
    %c0_170 = arith.constant 0 : index
    %c78 = arith.constant 78 : index
    %179 = vector.load %arg1[%c0_169, %c0_170, %c78] : memref<1x32x534xbf16, #tpu.memory_space<vmem>>, vector<1x32x384xbf16>
    %180 = vector.shape_cast %179 : vector<1x32x384xbf16> to vector<32x384xbf16>
    %cst_171 = arith.constant dense<0.000000e+00> : vector<8x384xf32>
    %181 = tpu.matmul %178, %180, %cst_171 {dimension_numbers = #tpu.dot_dimension_numbers<[1], [0], [0], [1], [0, 0, 1, 1], [], []>} : vector<8x32xbf16>, vector<32x384xbf16>, vector<8x384xf32> -> vector<8x384xf32>
    %182 = arith.addf %176, %181 : vector<8x384xf32>
    %c6_172 = arith.constant 6 : index
    %c0_173 = arith.constant 0 : index
    %c0_174 = arith.constant 0 : index
    %183 = vector.load %arg5[%c6_172, %c0_173, %c0_174] : memref<9x8x32xbf16, #tpu.memory_space<vmem>>, vector<1x8x32xbf16>
    %184 = vector.shape_cast %183 : vector<1x8x32xbf16> to vector<8x32xbf16>
    %c0_175 = arith.constant 0 : index
    %c0_176 = arith.constant 0 : index
    %c144 = arith.constant 144 : index
    %185 = vector.load %arg1[%c0_175, %c0_176, %c144] : memref<1x32x534xbf16, #tpu.memory_space<vmem>>, vector<1x32x384xbf16>
    %186 = vector.shape_cast %185 : vector<1x32x384xbf16> to vector<32x384xbf16>
    %cst_177 = arith.constant dense<0.000000e+00> : vector<8x384xf32>
    %187 = tpu.matmul %184, %186, %cst_177 {dimension_numbers = #tpu.dot_dimension_numbers<[1], [0], [0], [1], [0, 0, 1, 1], [], []>} : vector<8x32xbf16>, vector<32x384xbf16>, vector<8x384xf32> -> vector<8x384xf32>
    %188 = arith.addf %182, %187 : vector<8x384xf32>
    %c7_178 = arith.constant 7 : index
    %c0_179 = arith.constant 0 : index
    %c0_180 = arith.constant 0 : index
    %189 = vector.load %arg5[%c7_178, %c0_179, %c0_180] : memref<9x8x32xbf16, #tpu.memory_space<vmem>>, vector<1x8x32xbf16>
    %190 = vector.shape_cast %189 : vector<1x8x32xbf16> to vector<8x32xbf16>
    %c0_181 = arith.constant 0 : index
    %c0_182 = arith.constant 0 : index
    %c147 = arith.constant 147 : index
    %191 = vector.load %arg1[%c0_181, %c0_182, %c147] : memref<1x32x534xbf16, #tpu.memory_space<vmem>>, vector<1x32x384xbf16>
    %192 = vector.shape_cast %191 : vector<1x32x384xbf16> to vector<32x384xbf16>
    %cst_183 = arith.constant dense<0.000000e+00> : vector<8x384xf32>
    %193 = tpu.matmul %190, %192, %cst_183 {dimension_numbers = #tpu.dot_dimension_numbers<[1], [0], [0], [1], [0, 0, 1, 1], [], []>} : vector<8x32xbf16>, vector<32x384xbf16>, vector<8x384xf32> -> vector<8x384xf32>
    %194 = arith.addf %188, %193 : vector<8x384xf32>
    %c8_184 = arith.constant 8 : index
    %c0_185 = arith.constant 0 : index
    %c0_186 = arith.constant 0 : index
    %195 = vector.load %arg5[%c8_184, %c0_185, %c0_186] : memref<9x8x32xbf16, #tpu.memory_space<vmem>>, vector<1x8x32xbf16>
    %196 = vector.shape_cast %195 : vector<1x8x32xbf16> to vector<8x32xbf16>
    %c0_187 = arith.constant 0 : index
    %c0_188 = arith.constant 0 : index
    %c150 = arith.constant 150 : index
    %197 = vector.load %arg1[%c0_187, %c0_188, %c150] : memref<1x32x534xbf16, #tpu.memory_space<vmem>>, vector<1x32x384xbf16>
    %198 = vector.shape_cast %197 : vector<1x32x384xbf16> to vector<32x384xbf16>
    %cst_189 = arith.constant dense<0.000000e+00> : vector<8x384xf32>
    %199 = tpu.matmul %196, %198, %cst_189 {dimension_numbers = #tpu.dot_dimension_numbers<[1], [0], [0], [1], [0, 0, 1, 1], [], []>} : vector<8x32xbf16>, vector<32x384xbf16>, vector<8x384xf32> -> vector<8x384xf32>
    %200 = arith.addf %194, %199 : vector<8x384xf32>
    %c3_190 = arith.constant 3 : index
    %c0_191 = arith.constant 0 : index
    %c0_192 = arith.constant 0 : index
    %201 = vector.load %arg8[%c3_190, %c0_191, %c0_192] : memref<6x8x1xf32, #tpu.memory_space<vmem>>, vector<1x8x1xf32>
    %202 = vector.shape_cast %201 : vector<1x8x1xf32> to vector<8x1xf32>
    %203 = vector.broadcast %202 : vector<8x1xf32> to vector<8x384xf32>
    %204 = arith.addf %200, %203 : vector<8x384xf32>
    %cst_193 = arith.constant 0.000000e+00 : f32
    %205 = vector.broadcast %cst_193 : f32 to vector<8x384xf32>
    %206 = arith.maximumf %204, %205 : vector<8x384xf32>
    %c3_194 = arith.constant 3 : index
    %c0_195 = arith.constant 0 : index
    %c0_196 = arith.constant 0 : index
    %207 = vector.load %arg7[%c3_194, %c0_195, %c0_196] : memref<5x8x8xbf16, #tpu.memory_space<vmem>>, vector<1x8x8xbf16>
    %208 = vector.shape_cast %207 : vector<1x8x8xbf16> to vector<8x8xbf16>
    %209 = arith.truncf %206 : vector<8x384xf32> to vector<8x384xbf16>
    %cst_197 = arith.constant dense<0.000000e+00> : vector<8x384xf32>
    %210 = tpu.matmul %208, %209, %cst_197 {dimension_numbers = #tpu.dot_dimension_numbers<[1], [0], [0], [1], [0, 0, 1, 1], [], []>} : vector<8x8xbf16>, vector<8x384xbf16>, vector<8x384xf32> -> vector<8x384xf32>
    %211 = arith.addf %145, %210 : vector<8x384xf32>
    %212 = arith.extf %1 : vector<32x384xbf16> to vector<32x384xf32>
    %cst_198 = arith.constant dense<0.000000e+00> : vector<32xf32>
    %213 = vector.multi_reduction <add>, %212, %cst_198 [1] : vector<32x384xf32> to vector<32xf32>
    %214 = vector.shape_cast %213 : vector<32xf32> to vector<32x1xf32>
    %cst_199 = arith.constant 3.906250e-03 : f32
    %215 = vector.broadcast %cst_199 : f32 to vector<32x1xf32>
    %216 = arith.mulf %214, %215 : vector<32x1xf32>
    %c0_200 = arith.constant 0 : index
    %c0_201 = arith.constant 0 : index
    %217 = vector.load %arg6[%c0_200, %c0_201] : memref<8x32xbf16, #tpu.memory_space<vmem>>, vector<8x32xbf16>
    %218 = arith.extf %217 : vector<8x32xbf16> to vector<8x32xf32>
    %cst_202 = arith.constant dense<0.000000e+00> : vector<8x1xf32>
    %219 = tpu.matmul %218, %216, %cst_202 {dimension_numbers = #tpu.dot_dimension_numbers<[1], [0], [0], [1], [0, 0, 1, 1], [], []>} : vector<8x32xf32>, vector<32x1xf32>, vector<8x1xf32> -> vector<8x1xf32>
    %c4_203 = arith.constant 4 : index
    %c0_204 = arith.constant 0 : index
    %c0_205 = arith.constant 0 : index
    %220 = vector.load %arg8[%c4_203, %c0_204, %c0_205] : memref<6x8x1xf32, #tpu.memory_space<vmem>>, vector<1x8x1xf32>
    %221 = vector.shape_cast %220 : vector<1x8x1xf32> to vector<8x1xf32>
    %222 = arith.addf %219, %221 : vector<8x1xf32>
    %cst_206 = arith.constant 0.000000e+00 : f32
    %223 = vector.broadcast %cst_206 : f32 to vector<8x1xf32>
    %224 = arith.maximumf %222, %223 : vector<8x1xf32>
    %c4_207 = arith.constant 4 : index
    %c0_208 = arith.constant 0 : index
    %c0_209 = arith.constant 0 : index
    %225 = vector.load %arg7[%c4_207, %c0_208, %c0_209] : memref<5x8x8xbf16, #tpu.memory_space<vmem>>, vector<1x8x8xbf16>
    %226 = vector.shape_cast %225 : vector<1x8x8xbf16> to vector<8x8xbf16>
    %227 = arith.extf %226 : vector<8x8xbf16> to vector<8x8xf32>
    %cst_210 = arith.constant dense<0.000000e+00> : vector<8x1xf32>
    %228 = tpu.matmul %227, %224, %cst_210 {dimension_numbers = #tpu.dot_dimension_numbers<[1], [0], [0], [1], [0, 0, 1, 1], [], []>} : vector<8x8xf32>, vector<8x1xf32>, vector<8x1xf32> -> vector<8x1xf32>
    %229 = vector.broadcast %228 : vector<8x1xf32> to vector<8x384xf32>
    %230 = arith.addf %211, %229 : vector<8x384xf32>
    %c5_211 = arith.constant 5 : index
    %c0_212 = arith.constant 0 : index
    %c0_213 = arith.constant 0 : index
    %231 = vector.load %arg8[%c5_211, %c0_212, %c0_213] : memref<6x8x1xf32, #tpu.memory_space<vmem>>, vector<1x8x1xf32>
    %232 = vector.shape_cast %231 : vector<1x8x1xf32> to vector<8x1xf32>
    %233 = vector.broadcast %232 : vector<8x1xf32> to vector<8x384xf32>
    %234 = arith.addf %230, %233 : vector<8x384xf32>
    %cst_214 = arith.constant 0.000000e+00 : f32
    %235 = vector.broadcast %cst_214 : f32 to vector<8x384xf32>
    %236 = arith.maximumf %234, %235 : vector<8x384xf32>
    %c0_215 = arith.constant 0 : index
    %c0_216 = arith.constant 0 : index
    %c0_217 = arith.constant 0 : index
    %237 = vector.load %arg9[%c0_215, %c0_216, %c0_217] : memref<1x8x384xf32, #tpu.memory_space<vmem>>, vector<1x8x384xf32>
    %238 = vector.shape_cast %237 : vector<1x8x384xf32> to vector<8x384xf32>
    %239 = vector.shape_cast %236 : vector<8x384xf32> to vector<1x8x384xf32>
    tpu.vector_store %arg9[%c0_215, %c0_216, %c0_217], %239 {strides = array<i32>} : memref<1x8x384xf32, #tpu.memory_space<vmem>>, vector<1x8x384xf32>,
    return
  }
  func.func @transform_0(%arg0: i32) -> (i32, i32, i32) {
    %c0_i32 = arith.constant 0 : i32
    %c0_i32_0 = arith.constant 0 : i32
    %c0_i32_1 = arith.constant 0 : i32
    return %arg0, %c0_i32, %c0_i32_0 : i32, i32, i32
  }
  func.func @transform_1(%arg0: i32) -> (i32, i32) {
    %c0_i32 = arith.constant 0 : i32
    %c0_i32_0 = arith.constant 0 : i32
    %c0_i32_1 = arith.constant 0 : i32
    return %c0_i32, %c0_i32_0 : i32, i32
  }
  func.func @transform_2(%arg0: i32) -> (i32, i32, i32) {
    %c0_i32 = arith.constant 0 : i32
    %c0_i32_0 = arith.constant 0 : i32
    %c0_i32_1 = arith.constant 0 : i32
    %c0_i32_2 = arith.constant 0 : i32
    return %c0_i32, %c0_i32_0, %c0_i32_1 : i32, i32, i32
  }
  func.func @transform_3(%arg0: i32) -> (i32, i32, i32) {
    %c0_i32 = arith.constant 0 : i32
    %c0_i32_0 = arith.constant 0 : i32
    %c0_i32_1 = arith.constant 0 : i32
    %c0_i32_2 = arith.constant 0 : i32
    return %c0_i32, %c0_i32_0, %c0_i32_1 : i32, i32, i32
  }
  func.func @transform_4(%arg0: i32) -> (i32, i32, i32) {
    %c0_i32 = arith.constant 0 : i32
    %c0_i32_0 = arith.constant 0 : i32
    %c0_i32_1 = arith.constant 0 : i32
    %c0_i32_2 = arith.constant 0 : i32
    return %c0_i32, %c0_i32_0, %c0_i32_1 : i32, i32, i32
  }
  func.func @transform_5(%arg0: i32) -> (i32, i32) {
    %c0_i32 = arith.constant 0 : i32
    %c0_i32_0 = arith.constant 0 : i32
    %c0_i32_1 = arith.constant 0 : i32
    return %c0_i32, %c0_i32_0 : i32, i32
  }
  func.func @transform_6(%arg0: i32) -> (i32, i32, i32) {
    %c0_i32 = arith.constant 0 : i32
    %c0_i32_0 = arith.constant 0 : i32
    %c0_i32_1 = arith.constant 0 : i32
    %c0_i32_2 = arith.constant 0 : i32
    return %c0_i32, %c0_i32_0, %c0_i32_1 : i32, i32, i32
  }
  func.func @transform_7(%arg0: i32) -> (i32, i32, i32) {
    %c0_i32 = arith.constant 0 : i32
    %c0_i32_0 = arith.constant 0 : i32
    %c0_i32_1 = arith.constant 0 : i32
    %c0_i32_2 = arith.constant 0 : i32
    return %c0_i32, %c0_i32_0, %c0_i32_1 : i32, i32, i32
  }
  func.func @transform_8(%arg0: i32) -> (i32, i32, i32) {
    %c0_i32 = arith.constant 0 : i32
    %c0_i32_0 = arith.constant 0 : i32
    %c0_i32_1 = arith.constant 0 : i32
    return %arg0, %c0_i32, %c0_i32_0 : i32, i32, i32
  }
}

</mosaic_0001>

<bundles_post_ra>
// kernel: tpu_custom_call.1
= control target key start
LH: loop header
LB: loop body
LE: loop exit
PB: predicated region body
PF: predicated region fallthrough
CT: control target
= control target key end

     0   :  { %s7344_s0 = inlined_call_operand.hbm [shape: bf16[2,32,534], index: 0, kind: input, shape index: {}]   ;;  %s7345_s1 = inlined_call_operand.hbm [shape: bf16[8,32], index: 1, kind: input, shape index: {}]   ;;  %s7346_s2 = inlined_call_operand.vmem [shape: bf16[9,8,32], index: 2, kind: input, shape index: {}]   ;;  %s7347_s3 = inlined_call_operand.hbm [shape: bf16[9,8,32], index: 3, kind: input, shape index: {}]   ;;  %s7348_s4 = inlined_call_operand.hbm [shape: bf16[9,8,32], index: 4, kind: input, shape index: {}]   ;;  %s7349_s5 = inlined_call_operand.vmem [shape: bf16[8,32], index: 5, kind: input, shape index: {}]   ;;  %s7350_s6 = inlined_call_operand.vmem [shape: bf16[5,8,8], index: 6, kind: input, shape index: {}]   ;;  %s7351_s7 = inlined_call_operand.vmem [shape: f32[6,8,1], index: 7, kind: input, shape index: {}]   ;;  %s7352_s8 = inlined_call_operand.hbm [shape: f32[2,8,384], index: 8, kind: output, shape index: {}]  }
   0x1   :  { %7393 = sst [smem:[#allocation77_spill]] %s7345_s1 }
   0x2   :  { %7394 = sst [smem:[#allocation78_spill]] %s7347_s3 }
   0x3   :  { %13 = vsyncpa [#allocation3], 0 }
   0x4   :  { %15 = vsyncpa [#allocation3 + $0x1], 0 }
   0x5   :  { %16 = vsyncpa [#allocation6], 0 }
   0x6   :  { %17 = vsyncpa [#allocation9], 0 }
   0x7   :  { %18 = vsyncpa [#allocation4], 0 }
   0x8   :  { %20 = vsyncpa [#allocation4 + $0x1], 0  ;;  %s5455_s27 = smov 0   ;;  %s5457_s28 = smov 0  }
   0x9   :  { %s5459_s29 = smov 0   ;;  %s5461_s30 = smov 0  }
   0xa LB: > { %s5476_s9 = sadd.s32 4294967295, %s5371_s30   ;;  %s4499_s10 = sadd.s32 4294967294, %s5371_s30   ;;  %s5371_s30 = sphi %s5461_s30, %s7542_s30   ;;  %s5367_s29 = sphi %s5459_s29, %s7541_s29   ;;  %s5363_s28 = sphi %s5457_s28, %s7540_s28   ;;  %s5359_s27 = sphi %s5455_s27, %s7539_s27  }
   0xb   : > { %p46_p0 = scmp.ne.s32.totalorder %s5363_s28, %s5359_s27  ;;  %p7353_p1 = scmp.eq.s32.totalorder %s5476_s9, 0 }
   0xc   : > { %p223_p3 = scmp.eq.s32.totalorder %s4499_s10, 1  ;;  %p4500_p5 = scmp.ge.s32.totalorder %s5371_s30, 1 }
   0xd   : > { %p5485_p4 = por %p7353_p1, %p46_p0  ;;  %p230_p7 = scmp.lt.s32.totalorder %s5371_s30, 3 }
   0xe   : > { %p5490_p6 = por %p223_p3, %p46_p0  ;;  %s5373_s14 = smov [#allocation5]  }
   0xf   : > { %s7395_s11 = scalar_select %p5485_p4, 1, 0 }
  0x10   : > { %s7396_s12 = scalar_select %p5490_p6, 1, 0 }
  0x11   : > { %p5495_p8 = pnand %p4500_p5, %p230_p7  ;;  %s243_s15 = sshll.u32 %s5373_s14, 4  ;;  %s244_s15 = int_to_ptr.vmem [resolvable:$true] %s243_s15 }
  0x12   : > { %s5374_s16 = smov [#allocation7]   ;;  %s5375_s19 = smov [#allocation8]  }
  0x13   : > { %s7397_s13 = scalar_select %p5495_p8, 1, 0 }
  0x14   : > { %p5012_p10 = pneg %p5495_p8  ;;  %s256_s17 = sshll.u32 %s5374_s16, 4  ;;  %s5508_s17 = int_to_ptr.vmem [resolvable:$true] %s256_s17 }
  0x15   : > { %s5510_s20 = sshll.u32 %s5375_s19, 4  ;;  %s7399_s1 = sld [smem:[#allocation77_spill]]  ;;  %s270_s20 = int_to_ptr.vmem [resolvable:$true] %s5510_s20 }
  0x16   : > { %p5504_p11 = pnand %p5012_p10, %p7353_p1 }
  0x18   : > { %p5520_p13 = pneg %p5504_p11 }
  0x1b   : > { %s5183_s23 = scalar_lea.hbm %s7399_s1, 64 }
  0x1c   : > { %p5184_p12 = scmp.ne.s32.totalorder %s7399_s1, %s5183_s23  ;;  %p5190_p5 = scmp.lt.u32.totalorder %s5183_s23, %s7399_s1 }
  0x1e   : > { %p5186_p0 = pnand %p5520_p13, %p5184_p12 }
  0x20   : > { %p5187_p3 = pneg %p5186_p0 }
  0x22   : > { %p5192_p7 = pnand %p5190_p5, %p5187_p3 }
  0x24   : > { %5195 = shalt.err (!%p5192_p7)
}
  0x25   : > { %s5196_s16 = scalar_lea.vmem %s244_s15, 64  ;;  %p5204_p2 = scmp.lt.s32.totalorder %s244_s15, %s244_s15 }
  0x26   : > { %p5197_p10 = scmp.ne.s32.totalorder %s244_s15, %s5196_s16  ;;  %p5205_p6 = scmp.lt.s32.totalorder %s5196_s16, %s5196_s16 }
  0x28   : > { %p5199_p9 = pnand %p5197_p10, %p5520_p13  ;;  %p5206_p4 = por %p5205_p6, %p5204_p2 }
  0x2a   : > { %p5200_p1 = pneg %p5199_p9 }
  0x2c   : > { %p5207_p8 = pnand %p5206_p4, %p5200_p1 }
  0x2e   : > { %5210 = shalt.err (!%p5207_p8)
}
  0x2f   : > { %5015 = dma.hbm_to_vmem [thread:$0]  (!%p5504_p11), %s7399_s1, 64, %s244_s15, [#allocation6]  }
  0x30   : > { %s7401_s3 = sld [smem:[#allocation78_spill]] }
  0x36   : > { %s5211_s24 = scalar_lea.hbm %s7401_s3, 576 }
  0x37   : > { %p5212_p9 = scmp.ne.s32.totalorder %s7401_s3, %s5211_s24  ;;  %p5218_p1 = scmp.lt.u32.totalorder %s5211_s24, %s7401_s3 }
  0x39   : > { %p5214_p12 = pnand %p5212_p9, %p5520_p13 }
  0x3b   : > { %p5215_p2 = pneg %p5214_p12 }
  0x3d   : > { %p5220_p4 = pnand %p5218_p1, %p5215_p2 }
  0x3f   : > { %5223 = shalt.err (!%p5220_p4)
}
  0x40   : > { %s5224_s15 = scalar_lea.vmem %s5508_s17, 576  ;;  %p5232_p3 = scmp.lt.s32.totalorder %s5508_s17, %s5508_s17 }
  0x41   : > { %p5225_p6 = scmp.ne.s32.totalorder %s5508_s17, %s5224_s15  ;;  %p5233_p5 = scmp.lt.s32.totalorder %s5224_s15, %s5224_s15 }
  0x43   : > { %p5227_p8 = pnand %p5225_p6, %p5520_p13  ;;  %p5234_p7 = por %p5233_p5, %p5232_p3 }
  0x45   : > { %p5228_p0 = pneg %p5227_p8 }
  0x47   : > { %p5235_p10 = pnand %p5234_p7, %p5228_p0 }
  0x49   : > { %5238 = shalt.err (!%p5235_p10)
}
  0x4a   : > { %s5376_s19 = smov 64   ;;  %s5377_s21 = smov 4  }
  0x4b   : > { %5018 = dma.hbm_to_vmem [thread:$0]  (!%p5504_p11), %s7401_s3, 576, %s5508_s17, [#allocation6], %s5376_s19, %s5376_s19, %s5377_s21  }
  0x4c   : > { %s5239_s10 = scalar_lea.hbm %s7348_s4, 576 }
  0x4d   : > { %p5240_p9 = scmp.ne.s32.totalorder %s7348_s4, %s5239_s10  ;;  %p5246_p1 = scmp.lt.u32.totalorder %s5239_s10, %s7348_s4 }
  0x4f   : > { %p5242_p12 = pnand %p5240_p9, %p5520_p13 }
  0x51   : > { %p5243_p2 = pneg %p5242_p12 }
  0x53   : > { %p5248_p4 = pnand %p5246_p1, %p5243_p2 }
  0x55   : > { %5251 = shalt.err (!%p5248_p4)
}
  0x56   : > { %s5252_s22 = scalar_lea.vmem %s270_s20, 576  ;;  %p5260_p3 = scmp.lt.s32.totalorder %s270_s20, %s270_s20 }
  0x57   : > { %p5253_p6 = scmp.ne.s32.totalorder %s270_s20, %s5252_s22  ;;  %p5261_p5 = scmp.lt.s32.totalorder %s5252_s22, %s5252_s22 }
  0x59   : > { %p5255_p8 = pnand %p5253_p6, %p5520_p13  ;;  %p5262_p7 = por %p5261_p5, %p5260_p3 }
  0x5b   : > { %p5256_p0 = pneg %p5255_p8 }
  0x5d   : > { %p5263_p10 = pnand %p5262_p7, %p5256_p0 }
  0x5f   : > { %5266 = shalt.err (!%p5263_p10)
}
  0x60   : > { %5021 = dma.hbm_to_vmem [thread:$0]  (!%p5504_p11), %s7348_s4, 576, %s270_s20, [#allocation9], %s5376_s19, %s5376_s19, %s5377_s21  }
  0x61   : > { %s5579_s1 = sadd.s32 1, %s5371_s30   ;;  %s33_s18 = sadd.s32 1, %s5367_s29 }
  0x62   : > { %s30_s26 = ssub.s32 %s5371_s30, %s5579_s1  ;;  %p40_p9 = scmp.ne.s32.totalorder %s5367_s29, %s5363_s28 }
  0x63   : > { %p31_p13 = scmp.eq.s32.totalorder %s30_s26, 0  ;;  %p41_p12 = scmp.eq.s32.totalorder %s5371_s30, 0 }
  0x64   : > { %p5033_p2 = scmp.lt.s32.totalorder %s5371_s30, 2  ;;  %p7402_p4 = scmp.eq.s32.totalorder %s5476_s9, 1 }
  0x65   : > { %s5589_s24 = scalar_select %p31_p13, %s5367_s29, %s33_s18  }
  0x66   : > { %p42_p1 = por %p41_p12, %p40_p9  ;;  %p5593_p6 = por %p7402_p4, %p40_p9 }
  0x67   : > { %s292_s10 = sand.u32 1, %s5367_s29   ;;  %s4992_s14 = smul.u32 1280, %s5371_s30 }
  0x68   : > { %s4991_s20 = smul.u32 80, %s292_s10  ;;  %p5604_p11 = pnand %p5033_p2, %p42_p1 }
  0x69   : > { %s5602_s16 = scalar_lea.hbm %s7344_s0, %s4992_s14  ;;  %s5610_s23 = scalar_lea.sflag [#allocation3], %s292_s10 }
  0x6a   : > { %s296_s22 = scalar_lea.vmem [#allocation2], %s4991_s20  ;;  %s5267_s26 = scalar_lea.hbm %s5602_s16, 1280 }
  0x6b   : > { %s303_s17 = sshll.u32 %s296_s22, 4  ;;  %p5268_p8 = scmp.ne.s32.totalorder %s5602_s16, %s5267_s26  ;;  %s5608_s17 = int_to_ptr.vmem [resolvable:$true] %s303_s17 }
  0x6c   : > { %p5269_p0 = pneg %p5604_p11  ;;  %s5272_s19 = scalar_lea.hbm %s7344_s0, 2560 }
  0x6d   : > { %p5273_p7 = scmp.lt.u32.totalorder %s5602_s16, %s7344_s0  ;;  %p5274_p10 = scmp.lt.u32.totalorder %s5272_s19, %s5267_s26 }
  0x6e   : > { %p5270_p3 = pnand %p5269_p0, %p5268_p8  ;;  %p5276_p9 = scmp.lt.u32.totalorder %s5267_s26, %s5602_s16 }
  0x6f   : > { %p5275_p13 = por %p5274_p10, %p5273_p7 }
  0x70   : > { %p5271_p5 = pneg %p5270_p3 }
  0x71   : > { %p5277_p12 = por %p5276_p9, %p5275_p13 }
  0x73   : > { %p5278_p2 = pnand %p5277_p12, %p5271_p5 }
  0x75   : > { %5281 = shalt.err (!%p5278_p2)
}
  0x76   : > { %s5282_s10 = scalar_lea.vmem %s5608_s17, 1280  ;;  %s5378_s20 = smov [#allocation2]  }
  0x77   : > { %p5283_p1 = scmp.ne.s32.totalorder %s5608_s17, %s5282_s10  ;;  %s5287_s22 = sshll.u32 %s5378_s20, 4  ;;  %s5288_s22 = int_to_ptr.vmem [resolvable:$false] %s5287_s22 }
  0x78   : > { %s5289_s3 = scalar_lea.vmem %s5288_s22, 2560  ;;  %p5290_p3 = scmp.lt.s32.totalorder %s5608_s17, %s5288_s22 }
  0x79   : > { %p5285_p4 = pnand %p5283_p1, %p5269_p0  ;;  %p5291_p7 = scmp.lt.s32.totalorder %s5289_s3, %s5282_s10 }
  0x7b   : > { %p5286_p8 = pneg %p5285_p4  ;;  %p5292_p10 = por %p5291_p7, %p5290_p3 }
  0x7d   : > { %p5293_p13 = pnand %p5292_p10, %p5286_p8 }
  0x7f   : > { %5296 = shalt.err (!%p5293_p13)
}
  0x80   : > { %s5379_s26 = smov 320   ;;  %s5380_s18 = smov 20  }
  0x81   : > { %5025 = dma.hbm_to_vmem [thread:$0]  (!%p5604_p11), %s5602_s16, 1280, %s5608_s17, %s5610_s23, %s5379_s26, %s5379_s26, %s5380_s18  }
  0x82   : > { %p7405_p0 = scmp.ne.s32.totalorder %s7397_s13, 0 }
  0x84   : > { %315 = sbr.rel (%p7405_p0) target bundleno = 1793 (0x701), region = 52 }
  0x8b   : > { %s5641_s14 = sand.u32 1, %s5363_s28   ;;  %p7406_p5 = scmp.ne.s32.totalorder %s7395_s11, 0 }
  0x8c   : > { %s4993_s19 = smul.u32 80, %s5641_s14  ;;  %s318_s21 = scalar_lea.sflag [#allocation3], %s5641_s14 }
  0x8e   : > { %s5645_s10 = scalar_lea.vmem [#allocation2], %s4993_s19 }
  0x8f   : > { %5342 = dma.done.wait (%p7406_p5), %s318_s21, 1280  }
  0x90   : > { %5344 = vsyncadd (%p7406_p5), %s318_s21, 4294966016  ;;  %p7407_p11 = scmp.eq.s32.totalorder %s5476_s9, 0 }
  0x92   : > { %5346 = dma.done.wait (%p7407_p11), [#allocation6], 640   ;;  %p7408_p9 = pmov %p7407_p11 }
  0x94   : > { %5348 = vsyncadd (%p7408_p9), [#allocation6], 4294966656  ;;  %p7409_p12 = pmov %p7408_p9 }
  0x95   : > { %p7410_p2 = pmov %p7408_p9 }
  0x96   : > { %5350 = dma.done.wait (%p7409_p12), [#allocation9], 576  }
  0x97   : > { %5352 = vsyncadd (%p7410_p2), [#allocation9], 4294966720  ;;  %v367_v0 = vld [vmem:[%s5645_s10] sm:$0xff]  ;;  %v369_v1 = vld [vmem:[%s5645_s10 + $0x14] sm:$0xff]  ;;  %s5381_s11 = smov 53   ;;  %v7358_v14 = vmov 0  }
  0x98   : > { %v5662_v2 = vld [vmem:[%s5645_s10 + $0x8] sm:$0xff]  ;;  %v5664_v3 = vcombine.high %v367_v0, %v369_v1  ;;  %v5666_v4 = vcombine.low %v367_v0, %v369_v1  ;;  %v5669_v5 = vld [vmem:[%s5645_s10 + $0x1c] sm:$0xff]  ;;  %v5674_v8 = vld [vmem:[%s5645_s10 + $0x30] sm:$0xff]  ;;  %479 = vmatprep.mubr.bf16.mxu0 %v7358_v14  ;;  %5105 = vset.pattern.permute.xlu0 %v7358_v14  ;;  %s5383_s13 = smov 77   ;;  %s5384_s16 = smov 78   ;;  %v7356_v15 = vmov 0.0  }
  0x99   : > { %v371_v6 = vld [vmem:[%s5645_s10 + $0x28] sm:$0xff]  ;;  %v373_v7 = vld [vmem:[%s5645_s10 + $0x3c] sm:$0xff]  ;;  %v5685_v10 = vcombine.low %v5662_v2, %v5669_v5  ;;  %5106 = vset.pattern.permute.xlu1 %v7358_v14  ;;  %s5385_s15 = smov 76   ;;  %s5386_s17 = smov 54   ;;  %4721 = vmatprep.subr.bf16.mxu1 %v7356_v15  ;;  %vm5392_vm0 = vmmov 0   ;;  %v5807_v16 = vcombine.high %v5662_v2, %v5669_v5  ;;  %vm430_vm1 = vcmask 433152  }
  0x9a   : > { %v5677_v9 = vld [vmem:[%s5645_s10 + $0x44] sm:$0xff]  ;;  %416 = vrot.lane.b32.xlu0 %v5664_v3, %s5381_s11  ;;  %414 = vrot.lane.b32.xlu1 %v5666_v4, %s5381_s11  ;;  %v5687_v11 = vcombine.high %v371_v6, %v373_v7  ;;  %v5697_v13 = vcombine.low %v371_v6, %v373_v7  ;;  %s5387_s23 = smov 52   ;;  %s5388_s20 = smov 30   ;;  %vm554_vm2 = vcmask 629760   ;;  %v5857_v30 = vld [vmem:[#allocation5] sm:$0xf] }
  0x9b   : > { %v5695_v12 = vcombine.low %v5674_v8, %v5677_v9  ;;  %s5389_s22 = smov 29   ;;  %s5390_s3 = smov 28   ;;  %4725 = vmatprep.mubr.msk.bf16.mxu1 %vm5392_vm0, %v7356_v15  ;;  %v5811_v17 = vcombine.high %v5674_v8, %v5677_v9  ;;  %vm443_vm3 = vcmask 261120   ;;  %vm667_vm4 = vcmask 637952   ;;  %v4546_v39 = vld [vmem:[%s7351_s7 + $0x8] sm:$0xff]  ;;  %v376_v46 = vld [vmem:[%s7351_s7] sm:$0xff] }
  0x9c   : > { %v5890_v42 = vld [vmem:[%s7346_s2 + $0x4] sm:$0xf]  ;;  %vm782_vm5 = vcmask 621568   ;;  %v5917_v52 = vld [vmem:[%s7346_s2] sm:$0xf]  ;;  %vm900_vm6 = vcmask 441344  }
  0x9d   : > { %v5945_v63 = vld [vmem:[%s7346_s2 + $0x8] sm:$0xf]  ;;  %s5395_s26 = smov 99   ;;  %vm1107_vm7 = vcmask 424960   ;;  %vm1225_vm8 = vcmask 244736   ;;  %vm1343_vm9 = vcmask 236544  }
  0x9e   : > { %418 = vrot.lane.b32.xlu0 %v5685_v10, %s5381_s11  ;;  %424 = vrot.lane.b32.xlu1 %v5687_v11, %s5381_s11  ;;  %vm1461_vm10 = vcmask 228352   ;;  %s5398_s19 = smov 7   ;;  %s5400_s18 = smov 3   ;;  %vm2575_vm11 = vcmask 39936   ;;  %vm2693_vm12 = vcmask 23552   ;;  %vm2339_vm13 = vcmask 416768  }
  0x9f   : > { %s5405_s21 = smov 112   ;;  %vm2457_vm14 = vcmask 56320   ;;  %vm1583_vm15 = vcmask 1043456  }
  0xa2   : > { %426 = vrot.lane.b32.xlu0 %v5695_v12, %s5381_s11  ;;  %422 = vrot.lane.b32.xlu1 %v5697_v13, %s5381_s11 }
  0xa6   : > { %540 = vrot.lane.b32.xlu0 %v5664_v3, %s5383_s13  ;;  %542 = vrot.lane.b32.xlu1 %v5685_v10, %s5383_s13 }
  0xaa   : > { %538 = vrot.lane.b32.xlu0 %v5666_v4, %s5383_s13  ;;  %548 = vrot.lane.b32.xlu1 %v5687_v11, %s5383_s13 }
  0xae   : > { %550 = vrot.lane.b32.xlu0 %v5695_v12, %s5383_s13  ;;  %546 = vrot.lane.b32.xlu1 %v5697_v13, %s5383_s13 }
  0xb2   : > { %653 = vrot.lane.b32.xlu0 %v5664_v3, %s5384_s16  ;;  %655 = vrot.lane.b32.xlu1 %v5685_v10, %s5384_s16 }
  0xb6   : > { %651 = vrot.lane.b32.xlu0 %v5666_v4, %s5384_s16  ;;  %661 = vrot.lane.b32.xlu1 %v5687_v11, %s5384_s16 }
  0xba   : > { %663 = vrot.lane.b32.xlu0 %v5695_v12, %s5384_s16  ;;  %659 = vrot.lane.b32.xlu1 %v5697_v13, %s5384_s16 }
  0xbe   : > { %768 = vrot.lane.b32.xlu0 %v5664_v3, %s5385_s15  ;;  %770 = vrot.lane.b32.xlu1 %v5685_v10, %s5385_s15 }
  0xc2   : > { %766 = vrot.lane.b32.xlu0 %v5666_v4, %s5385_s15  ;;  %776 = vrot.lane.b32.xlu1 %v5687_v11, %s5385_s15 }
  0xc6   : > { %778 = vrot.lane.b32.xlu0 %v5695_v12, %s5385_s15  ;;  %774 = vrot.lane.b32.xlu1 %v5697_v13, %s5385_s15 }
  0xca   : > { %886 = vrot.lane.b32.xlu0 %v5664_v3, %s5386_s17  ;;  %888 = vrot.lane.b32.xlu1 %v5685_v10, %s5386_s17 }
  0xce   : > { %884 = vrot.lane.b32.xlu0 %v5666_v4, %s5386_s17  ;;  %894 = vrot.lane.b32.xlu1 %v5687_v11, %s5386_s17 }
  0xd2   : > { %896 = vrot.lane.b32.xlu0 %v5695_v12, %s5386_s17  ;;  %892 = vrot.lane.b32.xlu1 %v5697_v13, %s5386_s17 }
  0xd6   : > { %1093 = vrot.lane.b32.xlu0 %v5664_v3, %s5387_s23  ;;  %1095 = vrot.lane.b32.xlu1 %v5685_v10, %s5387_s23 }
  0xda   : > { %1091 = vrot.lane.b32.xlu0 %v5666_v4, %s5387_s23  ;;  %1101 = vrot.lane.b32.xlu1 %v5687_v11, %s5387_s23 }
  0xde   : > { %1103 = vrot.lane.b32.xlu0 %v5695_v12, %s5387_s23  ;;  %1099 = vrot.lane.b32.xlu1 %v5697_v13, %s5387_s23 }
  0xe2   : > { %1211 = vrot.lane.b32.xlu0 %v5664_v3, %s5388_s20  ;;  %1213 = vrot.lane.b32.xlu1 %v5685_v10, %s5388_s20 }
  0xe6   : > { %1209 = vrot.lane.b32.xlu0 %v5666_v4, %s5388_s20  ;;  %1219 = vrot.lane.b32.xlu1 %v5687_v11, %s5388_s20 }
  0xea   : > { %1221 = vrot.lane.b32.xlu0 %v5695_v12, %s5388_s20  ;;  %1217 = vrot.lane.b32.xlu1 %v5697_v13, %s5388_s20 }
  0xee   : > { %1329 = vrot.lane.b32.xlu0 %v5664_v3, %s5389_s22  ;;  %1331 = vrot.lane.b32.xlu1 %v5685_v10, %s5389_s22 }
  0xf2   : > { %1327 = vrot.lane.b32.xlu0 %v5666_v4, %s5389_s22  ;;  %1337 = vrot.lane.b32.xlu1 %v5687_v11, %s5389_s22 }
  0xf6   : > { %1339 = vrot.lane.b32.xlu0 %v5695_v12, %s5389_s22  ;;  %1335 = vrot.lane.b32.xlu1 %v5697_v13, %s5389_s22 }
  0xfa   : > { %1447 = vrot.lane.b32.xlu0 %v5664_v3, %s5390_s3  ;;  %1449 = vrot.lane.b32.xlu1 %v5685_v10, %s5390_s3 }
  0xfe   : > { %1445 = vrot.lane.b32.xlu0 %v5666_v4, %s5390_s3  ;;  %1455 = vrot.lane.b32.xlu1 %v5687_v11, %s5390_s3 }
 0x102   : > { %1457 = vrot.lane.b32.xlu0 %v5695_v12, %s5390_s3  ;;  %1453 = vrot.lane.b32.xlu1 %v5697_v13, %s5390_s3 }
 0x106   : > { %420 = vrot.lane.b32.xlu0 %v5807_v16, %s5381_s11  ;;  %428 = vrot.lane.b32.xlu1 %v5811_v17, %s5381_s11 }
 0x10a   : > { %544 = vrot.lane.b32.xlu0 %v5807_v16, %s5383_s13  ;;  %552 = vrot.lane.b32.xlu1 %v5811_v17, %s5383_s13  ;;  %s5406_s13 = smov 109  }
 0x10c   : > { %v417_v18 = vpop.permute.xlu0 %416  ;;  %v415_v19 = vpop.permute.xlu1 %414 }
 0x10d   : > { %v5832_v23 = vsel %vm430_vm1, %v415_v19, %v417_v18 }
 0x10e   : > { %657 = vrot.lane.b32.xlu0 %v5807_v16, %s5384_s16  ;;  %665 = vrot.lane.b32.xlu1 %v5811_v17, %s5384_s16  ;;  %s5396_s16 = smov 55  }
 0x110   : > { %v5825_v20 = vpop.permute.xlu0 %418  ;;  %v425_v21 = vpop.permute.xlu1 %424 }
 0x111   : > { %v5829_v22 = vsel %vm430_vm1, %v417_v18, %v5825_v20 }
 0x112   : > { %447 = vmatprep.subr.bf16.mxu0 %v5829_v22  ;;  %772 = vrot.lane.b32.xlu0 %v5807_v16, %s5385_s15 }
 0x113   : > { %780 = vrot.lane.b32.xlu1 %v5811_v17, %s5385_s15  ;;  %448 = vmatpush1.bf16.msra.mxu0 %v5832_v23  ;;  %s5393_s15 = smov 101  }
 0x114   : > { %v5840_v24 = vpop.permute.xlu0 %426  ;;  %v423_v25 = vpop.permute.xlu1 %422 }
 0x115   : > { %v5843_v26 = vsel %vm430_vm1, %v423_v25, %v425_v21  ;;  %v5847_v27 = vsel %vm430_vm1, %v425_v21, %v5840_v24  ;;  %v5975_v21 = vld [vmem:[%s7346_s2 + $0xc] sm:$0xf] }
 0x116   : > { %7411 = vst [vmem:[#allocation15_spill] sm:$0xff] %v5843_v26  ;;  %890 = vrot.lane.b32.xlu0 %v5807_v16, %s5386_s17  ;;  %449 = vmatprep.subr.bf16.mxu0 %v5847_v27 }
 0x117   : > { %898 = vrot.lane.b32.xlu1 %v5811_v17, %s5386_s17  ;;  %450 = vmatpush1.bf16.msra.mxu0 %v5843_v26  ;;  %s5399_s17 = smov 5  }
 0x118   : > { %v541_v28 = vpop.permute.xlu0 %540  ;;  %v5855_v29 = vpop.permute.xlu1 %542 }
 0x119   : > { %v556_v31 = vsel %vm554_vm2, %v541_v28, %v5855_v29 }
 0x11a   : > { %1097 = vrot.lane.b32.xlu0 %v5807_v16, %s5387_s23  ;;  %570 = vmatprep.subr.bf16.mxu0 %v556_v31 }
 0x11b   : > { %1105 = vrot.lane.b32.xlu1 %v5811_v17, %s5387_s23  ;;  %4518 = vmatmul.mubr.msk.bf16.vlgmr.msra.gmra.mrb[0].mxu0 %vm443_vm3, %v5857_v30 }
 0x11c   : > { %v539_v32 = vpop.permute.xlu0 %538  ;;  %v549_v33 = vpop.permute.xlu1 %548  ;;  %602 = vmatprep.mubr.bf16.mxu0 %v7358_v14 }
 0x11d   : > { %v555_v34 = vsel %vm554_vm2, %v539_v32, %v541_v28 }
 0x11e   : > { %1215 = vrot.lane.b32.xlu0 %v5807_v16, %s5388_s20  ;;  %571 = vmatpush1.bf16.msra.mxu0 %v555_v34  ;;  %v5999_v34 = vld [vmem:[%s7346_s2 + $0x10] sm:$0xf] }
 0x11f   : > { %1223 = vrot.lane.b32.xlu1 %v5811_v17, %s5388_s20  ;;  %s5394_s20 = smov 103  }
 0x120   : > { %v5873_v35 = vpop.permute.xlu0 %550  ;;  %v547_v36 = vpop.permute.xlu1 %546 }
 0x121   : > { %v558_v37 = vsel %vm554_vm2, %v547_v36, %v549_v33  ;;  %v559_v38 = vsel %vm554_vm2, %v549_v33, %v5873_v35 }
 0x122   : > { %1333 = vrot.lane.b32.xlu0 %v5807_v16, %s5389_s22  ;;  %572 = vmatprep.subr.bf16.mxu0 %v559_v38 }
 0x123   : > { %1341 = vrot.lane.b32.xlu1 %v5811_v17, %s5389_s22  ;;  %573 = vmatpush1.bf16.msra.mxu0 %v558_v37  ;;  %s5397_s22 = smov 51  }
 0x124   : > { %v654_v40 = vpop.permute.xlu0 %653  ;;  %v5885_v41 = vpop.permute.xlu1 %655 }
 0x125   : > { %v669_v43 = vsel %vm667_vm4, %v654_v40, %v5885_v41 }
 0x126   : > { %1565 = vperm.xlu0 %5105, %v4546_v39   ;;  %683 = vmatprep.subr.bf16.mxu0 %v669_v43 }
 0x127   : > { %1451 = vrot.lane.b32.xlu1 %v5807_v16, %s5390_s3  ;;  %4521 = vmatmul.mubr.msk.bf16.vlgmr.msra.gmra.mrb[4].mxu0 %vm443_vm3, %v5890_v42 }
 0x128   : > { %v652_v44 = vpop.permute.xlu0 %651  ;;  %v662_v45 = vpop.permute.xlu1 %661  ;;  %715 = vmatprep.mubr.bf16.mxu0 %v7358_v14 }
 0x129   : > { %v668_v47 = vsel %vm667_vm4, %v652_v44, %v654_v40 }
 0x12a   : > { %684 = vmatpush1.bf16.msra.mxu0 %v668_v47  ;;  %1459 = vrot.lane.b32.xlu0 %v5811_v17, %s5390_s3 }
 0x12b   : > { %379 = vperm.xlu1 %5106, %v376_v46   ;;  %v6025_v46 = vld [vmem:[%s7346_s2 + $0x14] sm:$0xf] }
 0x12c   : > { %v5905_v48 = vpop.permute.xlu0 %663  ;;  %v660_v49 = vpop.permute.xlu1 %659 }
 0x12d   : > { %v671_v50 = vsel %vm667_vm4, %v660_v49, %v662_v45  ;;  %v672_v51 = vsel %vm667_vm4, %v662_v45, %v5905_v48 }
 0x12e   : > { %685 = vmatprep.subr.bf16.mxu0 %v672_v51  ;;  %1774 = vrot.lane.b32.xlu0 %v5685_v10, %s5393_s15 }
 0x12f   : > { %686 = vmatpush1.bf16.msra.mxu0 %v671_v50  ;;  %1772 = vrot.lane.b32.xlu1 %v5664_v3, %s5393_s15 }
 0x130   : > { %v769_v53 = vpop.permute.xlu0 %768  ;;  %v5919_v54 = vpop.permute.xlu1 %770 }
 0x131   : > { %v784_v55 = vsel %vm782_vm5, %v769_v53, %v5919_v54 }
 0x132   : > { %798 = vmatprep.subr.bf16.mxu0 %v784_v55  ;;  %4523 = vmatmul.mubr.msk.bf16.vlgmr.msra.gmra.mrb[8].mxu0 %vm443_vm3, %v5917_v52 }
 0x133   : > { %1770 = vrot.lane.b32.xlu1 %v5666_v4, %s5393_s15  ;;  %830 = vmatprep.mubr.bf16.mxu0 %v7358_v14 }
 0x134   : > { %v767_v56 = vpop.permute.xlu0 %766  ;;  %v777_v57 = vpop.permute.xlu1 %776  ;;  %1780 = vrot.lane.b32.xlu0 %v5687_v11, %s5393_s15 }
 0x135   : > { %v783_v58 = vsel %vm782_vm5, %v767_v56, %v769_v53 }
 0x136   : > { %799 = vmatpush1.bf16.msra.mxu0 %v783_v58 }
 0x137   : > { %1782 = vrot.lane.b32.xlu1 %v5695_v12, %s5393_s15 }
 0x138   : > { %v5933_v59 = vpop.permute.xlu0 %778  ;;  %v775_v60 = vpop.permute.xlu1 %774  ;;  %1778 = vrot.lane.b32.xlu0 %v5697_v13, %s5393_s15 }
 0x139   : > { %v786_v61 = vsel %vm782_vm5, %v775_v60, %v777_v57  ;;  %v787_v62 = vsel %vm782_vm5, %v777_v57, %v5933_v59  ;;  %v6047_v57 = vld [vmem:[%s7346_s2 + $0x18] sm:$0xf] }
 0x13a   : > { %800 = vmatprep.subr.bf16.mxu0 %v787_v62 }
 0x13b   : > { %801 = vmatpush1.bf16.msra.mxu0 %v786_v61  ;;  %1885 = vrot.lane.b32.xlu1 %v5664_v3, %s5394_s20 }
 0x13c   : > { %v887_v0 = vpop.permute.xlu0 %886  ;;  %v5947_v1 = vpop.permute.xlu1 %888  ;;  %1887 = vrot.lane.b32.xlu0 %v5685_v10, %s5394_s20 }
 0x13d   : > { %v902_v2 = vsel %vm900_vm6, %v887_v0, %v5947_v1 }
 0x13e   : > { %4526 = vmatmul.mubr.msk.bf16.vlgmr.msra.gmra.mrb[12].mxu0 %vm443_vm3, %v5945_v63  ;;  %916 = vmatprep.subr.bf16.mxu0 %v902_v2 }
 0x13f   : > { %1883 = vrot.lane.b32.xlu1 %v5666_v4, %s5394_s20  ;;  %948 = vmatprep.mubr.bf16.mxu0 %v7358_v14 }
 0x140   : > { %v885_v5 = vpop.permute.xlu0 %884  ;;  %v895_v6 = vpop.permute.xlu1 %894  ;;  %1893 = vrot.lane.b32.xlu0 %v5687_v11, %s5394_s20 }
 0x141   : > { %v901_v7 = vsel %vm900_vm6, %v885_v5, %v887_v0 }
 0x142   : > { %917 = vmatpush1.bf16.msra.mxu0 %v901_v7 }
 0x143   : > { %1895 = vrot.lane.b32.xlu1 %v5695_v12, %s5394_s20 }
 0x144   : > { %v5963_v8 = vpop.permute.xlu0 %896  ;;  %v893_v9 = vpop.permute.xlu1 %892  ;;  %1891 = vrot.lane.b32.xlu0 %v5697_v13, %s5394_s20 }
 0x145   : > { %v904_v18 = vsel %vm900_vm6, %v893_v9, %v895_v6  ;;  %v905_v19 = vsel %vm900_vm6, %v895_v6, %v5963_v8 }
 0x146   : > { %918 = vmatprep.subr.bf16.mxu0 %v905_v19 }
 0x147   : > { %919 = vmatpush1.bf16.msra.mxu0 %v904_v18  ;;  %2000 = vrot.lane.b32.xlu1 %v5664_v3, %s5395_s26  ;;  %v6077_v18 = vld [vmem:[%s7346_s2 + $0x1c] sm:$0xf] }
 0x148   : > { %v1094_v25 = vpop.permute.xlu0 %1093  ;;  %1005 = vmatprep.subr.bf16.mxu0 %v5829_v22  ;;  %v5978_v28 = vpop.permute.xlu1 %1095  ;;  %2002 = vrot.lane.b32.xlu0 %v5685_v10, %s5395_s26 }
 0x149   : > { %v1109_v33 = vsel %vm1107_vm7, %v1094_v25, %v5978_v28 }
 0x14a   : > { %4529 = vmatmul.mubr.msk.bf16.vlgmr.msra.gmra.mrb[16].mxu0 %vm443_vm3, %v5975_v21 }
 0x14b   : > { %1006 = vmatpush1.bf16.msra.mxu0 %v5832_v23  ;;  %1998 = vrot.lane.b32.xlu1 %v5666_v4, %s5395_s26 }
 0x14c   : > { %v1092_v31 = vpop.permute.xlu0 %1091  ;;  %1007 = vmatprep.subr.bf16.mxu0 %v5847_v27  ;;  %v1102_v32 = vpop.permute.xlu1 %1101  ;;  %1037 = vmatprep.mubr.bf16.mxu0 %v7358_v14 }
 0x14d   : > { %2008 = vrot.lane.b32.xlu0 %v5687_v11, %s5395_s26  ;;  %v1108_v38 = vsel %vm1107_vm7, %v1092_v31, %v1094_v25 }
 0x14f   : > { %1008 = vmatpush1.bf16.msra.mxu0 %v5843_v26  ;;  %2010 = vrot.lane.b32.xlu1 %v5695_v12, %s5395_s26 }
 0x150   : > { %v6001_v36 = vpop.permute.xlu0 %1103  ;;  %1123 = vmatprep.subr.bf16.mxu0 %v1109_v33  ;;  %v1100_v37 = vpop.permute.xlu1 %1099 }
 0x151   : > { %2006 = vrot.lane.b32.xlu0 %v5697_v13, %s5395_s26  ;;  %v1112_v39 = vsel %vm1107_vm7, %v1102_v32, %v6001_v36  ;;  %v1111_v44 = vsel %vm1107_vm7, %v1100_v37, %v1102_v32 }
 0x152   : > { %4532 = vmatmul.mubr.msk.bf16.vlgmr.msra.gmra.mrb[20].mxu0 %vm443_vm3, %v5999_v34 }
 0x153   : > { %1124 = vmatpush1.bf16.msra.mxu0 %v1108_v38  ;;  %2118 = vrot.lane.b32.xlu1 %v5664_v3, %s5396_s16 }
 0x154   : > { %v1212_v40 = vpop.permute.xlu0 %1211  ;;  %1125 = vmatprep.subr.bf16.mxu0 %v1112_v39  ;;  %v6012_v43 = vpop.permute.xlu1 %1213  ;;  %1155 = vmatprep.mubr.bf16.mxu0 %v7358_v14 }
 0x155   : > { %2120 = vrot.lane.b32.xlu0 %v5685_v10, %s5396_s16  ;;  %v1227_v45 = vsel %vm1225_vm8, %v1212_v40, %v6012_v43 }
 0x157   : > { %1126 = vmatpush1.bf16.msra.mxu0 %v1111_v44  ;;  %2116 = vrot.lane.b32.xlu1 %v5666_v4, %s5396_s16 }
 0x158   : > { %v1210_v47 = vpop.permute.xlu0 %1209  ;;  %1241 = vmatprep.subr.bf16.mxu0 %v1227_v45  ;;  %v1220_v49 = vpop.permute.xlu1 %1219  ;;  %v6107_v45 = vld [vmem:[%s7346_s2 + $0x20] sm:$0xf] }
 0x159   : > { %v1226_v50 = vsel %vm1225_vm8, %v1210_v47, %v1212_v40  ;;  %2126 = vrot.lane.b32.xlu0 %v5687_v11, %s5396_s16 }
 0x15a   : > { %4535 = vmatmul.mubr.msk.bf16.vlgmr.msra.gmra.mrb[24].mxu0 %vm443_vm3, %v6025_v46 }
 0x15b   : > { %1242 = vmatpush1.bf16.msra.mxu0 %v1226_v50  ;;  %2128 = vrot.lane.b32.xlu1 %v5695_v12, %s5396_s16 }
 0x15c   : > { %v6034_v51 = vpop.permute.xlu0 %1221  ;;  %v1218_v53 = vpop.permute.xlu1 %1217  ;;  %1273 = vmatprep.mubr.bf16.mxu0 %v7358_v14 }
 0x15d   : > { %v1229_v55 = vsel %vm1225_vm8, %v1218_v53, %v1220_v49  ;;  %v1230_v56 = vsel %vm1225_vm8, %v1220_v49, %v6034_v51  ;;  %2124 = vrot.lane.b32.xlu0 %v5697_v13, %s5396_s16 }
 0x15e   : > { %1243 = vmatprep.subr.bf16.mxu0 %v1230_v56 }
 0x15f   : > { %1244 = vmatpush1.bf16.msra.mxu0 %v1229_v55  ;;  %2325 = vrot.lane.b32.xlu1 %v5664_v3, %s5397_s22 }
 0x160   : > { %v1330_v58 = vpop.permute.xlu0 %1329  ;;  %v6049_v60 = vpop.permute.xlu1 %1331 }
 0x161   : > { %v1345_v61 = vsel %vm1343_vm9, %v1330_v58, %v6049_v60  ;;  %2327 = vrot.lane.b32.xlu0 %v5685_v10, %s5397_s22 }
 0x162   : > { %4538 = vmatmul.mubr.msk.bf16.vlgmr.msra.gmra.mrb[28].mxu0 %vm443_vm3, %v6047_v57  ;;  %1359 = vmatprep.subr.bf16.mxu0 %v1345_v61 }
 0x163   : > { %2323 = vrot.lane.b32.xlu1 %v5666_v4, %s5397_s22  ;;  %1391 = vmatprep.mubr.bf16.mxu0 %v7358_v14 }
 0x164   : > { %v1328_v62 = vpop.permute.xlu0 %1327  ;;  %v1338_v0 = vpop.permute.xlu1 %1337 }
 0x165   : > { %v1344_v2 = vsel %vm1343_vm9, %v1328_v62, %v1330_v58  ;;  %2333 = vrot.lane.b32.xlu0 %v5687_v11, %s5397_s22 }
 0x166   : > { %1360 = vmatpush1.bf16.msra.mxu0 %v1344_v2 }
 0x167   : > { %2335 = vrot.lane.b32.xlu1 %v5695_v12, %s5397_s22 }
 0x168   : > { %v6065_v5 = vpop.permute.xlu0 %1339  ;;  %v1336_v6 = vpop.permute.xlu1 %1335 }
 0x169   : > { %v1347_v7 = vsel %vm1343_vm9, %v1336_v6, %v1338_v0  ;;  %v1348_v9 = vsel %vm1343_vm9, %v1338_v0, %v6065_v5  ;;  %2331 = vrot.lane.b32.xlu0 %v5697_v13, %s5397_s22 }
 0x16a   : > { %1361 = vmatprep.subr.bf16.mxu0 %v1348_v9 }
 0x16b   : > { %1362 = vmatpush1.bf16.msra.mxu0 %v1347_v7  ;;  %2443 = vrot.lane.b32.xlu1 %v5664_v3, %s5398_s19 }
 0x16c   : > { %v1448_v19 = vpop.permute.xlu0 %1447  ;;  %v6079_v25 = vpop.permute.xlu1 %1449 }
 0x16d   : > { %v1463_v31 = vsel %vm1461_vm10, %v1448_v19, %v6079_v25  ;;  %2445 = vrot.lane.b32.xlu0 %v5685_v10, %s5398_s19 }
 0x16e   : > { %4541 = vmatmul.mubr.msk.bf16.vlgmr.msra.gmra.mrb[32].mxu0 %vm443_vm3, %v6077_v18  ;;  %1477 = vmatprep.subr.bf16.mxu0 %v1463_v31 }
 0x16f   : > { %2441 = vrot.lane.b32.xlu1 %v5666_v4, %s5398_s19  ;;  %1509 = vmatprep.mubr.bf16.mxu0 %v7358_v14 }
 0x170   : > { %v1446_v32 = vpop.permute.xlu0 %1445  ;;  %v1456_v33 = vpop.permute.xlu1 %1455 }
 0x171   : > { %v1462_v37 = vsel %vm1461_vm10, %v1446_v32, %v1448_v19  ;;  %2451 = vrot.lane.b32.xlu0 %v5687_v11, %s5398_s19 }
 0x172   : > { %1478 = vmatpush1.bf16.msra.mxu0 %v1462_v37 }
 0x173   : > { %2453 = vrot.lane.b32.xlu1 %v5695_v12, %s5398_s19 }
 0x174   : > { %v6095_v38 = vpop.permute.xlu0 %1457  ;;  %v1454_v39 = vpop.permute.xlu1 %1453 }
 0x175   : > { %v1465_v40 = vsel %vm1461_vm10, %v1454_v39, %v1456_v33  ;;  %v1466_v44 = vsel %vm1461_vm10, %v1456_v33, %v6095_v38  ;;  %2449 = vrot.lane.b32.xlu0 %v5697_v13, %s5398_s19 }
 0x176   : > { %1479 = vmatprep.subr.bf16.mxu0 %v1466_v44 }
 0x177   : > { %1480 = vmatpush1.bf16.msra.mxu0 %v1465_v40  ;;  %2561 = vrot.lane.b32.xlu1 %v5664_v3, %s5399_s17 }
 0x178   : > { %v421_v47 = vpop.permute.xlu0 %420  ;;  %v429_v49 = vpop.permute.xlu1 %428 }
 0x179   : > { %v6111_v50 = vsel %vm430_vm1, %v5825_v20, %v421_v47  ;;  %2563 = vrot.lane.b32.xlu0 %v5685_v10, %s5399_s17  ;;  %v6124_v20 = vsel %vm430_vm1, %v5840_v24, %v429_v49 }
 0x17a   : > { %7412 = vst [vmem:[#allocation16_spill] sm:$0xff] %v6111_v50  ;;  %4722 = vmatpush3.bf16.msra.mxu1 %v6111_v50  ;;  %4544 = vmatmul.mubr.msk.bf16.vlgmr.msra.gmra.mrb[36].mxu0 %vm443_vm3, %v6107_v45  ;;  %7413 = vst [vmem:[#allocation17_spill] sm:$0xff] %v6124_v20 }
 0x17b   : > { %2559 = vrot.lane.b32.xlu1 %v5666_v4, %s5399_s17  ;;  %4723 = vmatprep.subr.bf16.mxu1 %v7356_v15 }
 0x17c   : > { %v553_v53 = vpop.permute.xlu1 %552  ;;  %1625 = vmatprep.mubr.bf16.mxu0 %v7358_v14  ;;  %v545_v55 = vpop.permute.xlu0 %544  ;;  %v5175_v14 = vld [vmem:[%s5645_s10] sm:$0xff] }
 0x17d   : > { %2569 = vrot.lane.b32.xlu0 %v5687_v11, %s5399_s17  ;;  %v557_v56 = vsel %vm554_vm2, %v5855_v29, %v545_v55  ;;  %v560_v29 = vsel %vm554_vm2, %v5873_v35, %v553_v53  ;;  %vm1579_vm2 = vcmask 64512  }
 0x17e   : > { %4724 = vmatpush3.bf16.msra.mxu1 %v6124_v20 }
 0x17f   : > { %2571 = vrot.lane.b32.xlu1 %v5695_v12, %s5399_s17  ;;  %4729 = vmatprep.subr.bf16.mxu1 %v7356_v15 }
 0x180   : > { %v666_v24 = vpop.permute.xlu1 %665  ;;  %v658_v58 = vpop.permute.xlu0 %657 }
 0x181   : > { %4726 = vmatmul.mubr.msk.bf16.vlgmr.msra.gmra.mrb[0].mxu1 %vm443_vm3, %v5857_v30  ;;  %2567 = vrot.lane.b32.xlu0 %v5697_v13, %s5399_s17  ;;  %v670_v61 = vsel %vm667_vm4, %v5885_v41, %v658_v58  ;;  %v673_v35 = vsel %vm667_vm4, %v5905_v48, %v666_v24  ;;  %vm1786_vm4 = vcmask 826368  }
 0x182   : > { %4730 = vmatpush3.bf16.msra.mxu1 %v557_v56  ;;  %4733 = vmatprep.mubr.msk.bf16.mxu1 %vm5392_vm0, %v7356_v15 }
 0x183   : > { %2679 = vrot.lane.b32.xlu1 %v5664_v3, %s5400_s18  ;;  %4731 = vmatprep.subr.bf16.mxu1 %v7356_v15 }
 0x184   : > { %v773_v62 = vpop.permute.xlu0 %772 }
 0x185   : > { %2681 = vrot.lane.b32.xlu0 %v5685_v10, %s5400_s18  ;;  %v781_v30 = vpop.permute.xlu1 %780  ;;  %v785_v0 = vsel %vm782_vm5, %v5919_v54, %v773_v62 }
 0x186   : > { %4732 = vmatpush3.bf16.msra.mxu1 %v560_v29  ;;  %v788_v2 = vsel %vm782_vm5, %v5933_v59, %v781_v30  ;;  %vm1899_vm5 = vcmask 842752  }
 0x187   : > { %2677 = vrot.lane.b32.xlu1 %v5666_v4, %s5400_s18  ;;  %4737 = vmatprep.subr.bf16.mxu1 %v7356_v15 }
 0x189   : > { %4734 = vmatmul.mubr.msk.bf16.vlgmr.msra.gmra.mrb[4].mxu1 %vm443_vm3, %v5890_v42  ;;  %2687 = vrot.lane.b32.xlu0 %v5687_v11, %s5400_s18  ;;  %v899_v41 = vpop.permute.xlu1 %898  ;;  %v891_v42 = vpop.permute.xlu0 %890 }
 0x18a   : > { %4738 = vmatpush3.bf16.msra.mxu1 %v670_v61  ;;  %4741 = vmatprep.mubr.msk.bf16.mxu1 %vm5392_vm0, %v7356_v15 }
 0x18b   : > { %2689 = vrot.lane.b32.xlu1 %v5695_v12, %s5400_s18  ;;  %4739 = vmatprep.subr.bf16.mxu1 %v7356_v15 }
 0x18d   : > { %2685 = vrot.lane.b32.xlu0 %v5697_v13, %s5400_s18  ;;  %v1106_v48 = vpop.permute.xlu1 %1105  ;;  %v1098_v54 = vpop.permute.xlu0 %1097 }
 0x18e   : > { %4740 = vmatpush3.bf16.msra.mxu1 %v673_v35  ;;  %v1110_v19 = vsel %vm1107_vm7, %v5978_v28, %v1098_v54  ;;  %v1113_v33 = vsel %vm1107_vm7, %v6001_v36, %v1106_v48  ;;  %v5160_v54 = vld [vmem:[%s5645_s10 + $0x34] ss:$20 sps:$4 sm:$0xff]   ;;  %vm2132_vm7 = vcmask 449536  }
 0x18f   : > { %1776 = vrot.lane.b32.xlu1 %v5807_v16, %s5393_s15  ;;  %4745 = vmatprep.subr.bf16.mxu1 %v7356_v15 }
 0x191   : > { %4742 = vmatmul.mubr.msk.bf16.vlgmr.msra.gmra.mrb[8].mxu1 %vm443_vm3, %v5917_v52  ;;  %1784 = vrot.lane.b32.xlu0 %v5811_v17, %s5393_s15  ;;  %v903_v52 = vsel %vm900_vm6, %v5947_v1, %v891_v42  ;;  %v1224_v59 = vpop.permute.xlu1 %1223  ;;  %v1216_v6 = vpop.permute.xlu0 %1215  ;;  %v906_v1 = vsel %vm900_vm6, %v5963_v8, %v899_v41  ;;  %vm2014_vm6 = vcmask 809984   ;;  %s4994_s15 = smul.u32 24, %s5641_s14 }
 0x192   : > { %4746 = vmatpush3.bf16.msra.mxu1 %v785_v0  ;;  %4749 = vmatprep.mubr.msk.bf16.mxu1 %vm5392_vm0, %v7356_v15  ;;  %v1228_v37 = vsel %vm1225_vm8, %v6012_v43, %v1216_v6  ;;  %v1231_v43 = vsel %vm1225_vm8, %v6034_v51, %v1224_v59  ;;  %v5158_v0 = vld [vmem:[%s5645_s10 + $0xc] ss:$20 sps:$4 sm:$0xff]   ;;  %vm3165_vm8 = vcmask 998400  }
 0x193   : > { %1889 = vrot.lane.b32.xlu1 %v5807_v16, %s5394_s20  ;;  %4747 = vmatprep.subr.bf16.mxu1 %v7356_v15 }
 0x195   : > { %1897 = vrot.lane.b32.xlu0 %v5811_v17, %s5394_s20  ;;  %v1334_v7 = vpop.permute.xlu0 %1333  ;;  %s4995_s20 = smul.u32 384, %s5476_s9  ;;  %s4386_s9 = scalar_lea.sflag [#allocation4], %s5641_s14 }
 0x196   : > { %4748 = vmatpush3.bf16.msra.mxu1 %v788_v2  ;;  %v1346_v44 = vsel %vm1343_vm9, %v6049_v60, %v1334_v7  ;;  %v5162_v2 = vld [vmem:[%s5645_s10 + $0x30] ss:$20 sps:$4 sm:$0xff]  }
 0x197   : > { %2004 = vrot.lane.b32.xlu1 %v5807_v16, %s5395_s26  ;;  %4753 = vmatprep.subr.bf16.mxu1 %v7356_v15 }
 0x199   : > { %4750 = vmatmul.mubr.msk.bf16.vlgmr.msra.gmra.mrb[12].mxu1 %vm443_vm3, %v5945_v63  ;;  %2012 = vrot.lane.b32.xlu0 %v5811_v17, %s5395_s26  ;;  %v1342_v63 = vpop.permute.xlu1 %1341  ;;  %s5401_s26 = smov 125  }
 0x19a   : > { %4754 = vmatpush3.bf16.msra.mxu1 %v903_v52  ;;  %4757 = vmatprep.mubr.msk.bf16.mxu1 %vm5392_vm0, %v7356_v15  ;;  %v1349_v60 = vsel %vm1343_vm9, %v6065_v5, %v1342_v63  ;;  %vm3283_vm9 = vcmask 457728  }
 0x19b   : > { %2122 = vrot.lane.b32.xlu1 %v5807_v16, %s5396_s16  ;;  %4755 = vmatprep.subr.bf16.mxu1 %v7356_v15 }
 0x19d   : > { %2130 = vrot.lane.b32.xlu0 %v5811_v17, %s5396_s16  ;;  %v1452_v9 = vpop.permute.xlu1 %1451  ;;  %s5402_s16 = smov 122  }
 0x19e   : > { %4756 = vmatpush3.bf16.msra.mxu1 %v906_v1  ;;  %v1464_v53 = vsel %vm1461_vm10, %v6079_v25, %v1452_v9 }
 0x19f   : > { %2329 = vrot.lane.b32.xlu1 %v5807_v16, %s5397_s22  ;;  %4761 = vmatprep.subr.bf16.mxu1 %v7356_v15 }
 0x1a1   : > { %4758 = vmatmul.mubr.msk.bf16.vlgmr.msra.gmra.mrb[16].mxu1 %vm443_vm3, %v5975_v21  ;;  %2337 = vrot.lane.b32.xlu0 %v5811_v17, %s5397_s22  ;;  %v4572_v21 = vld [vmem:[%s7351_s7 + $0x10] sm:$0xff]  ;;  %s5403_s22 = smov 56  }
 0x1a2   : > { %4762 = vmatpush3.bf16.msra.mxu1 %v6111_v50  ;;  %4765 = vmatprep.mubr.msk.bf16.mxu1 %vm5392_vm0, %v7356_v15  ;;  %v4099_v50 = vunpack.c.h.bf16 %v5175_v14 }
 0x1a3   : > { %2447 = vrot.lane.b32.xlu1 %v5807_v16, %s5398_s19  ;;  %4763 = vmatprep.subr.bf16.mxu1 %v7356_v15 }
 0x1a5   : > { %v6214_v8 = vpop.permute.xlu0 %1565  ;;  %2455 = vrot.lane.b32.xlu0 %v5811_v17, %s5398_s19  ;;  %s5404_s19 = smov 50  }
 0x1a6   : > { %4764 = vmatpush3.bf16.msra.mxu1 %v6124_v20  ;;  %v4098_v20 = vunpack.c.l.bf16 %v5175_v14 }
 0x1a7   : > { %2565 = vrot.lane.b32.xlu1 %v5807_v16, %s5399_s17  ;;  %4769 = vmatprep.subr.bf16.mxu1 %v7356_v15 }
 0x1a9   : > { %v1460_v31 = vpop.permute.xlu0 %1459  ;;  %4766 = vmatmul.mubr.msk.bf16.vlgmr.msra.gmra.mrb[20].mxu1 %vm443_vm3, %v5999_v34  ;;  %2573 = vrot.lane.b32.xlu0 %v5811_v17, %s5399_s17  ;;  %s5407_s17 = smov 106  }
 0x1aa   : > { %4770 = vmatpush3.bf16.msra.mxu1 %v1110_v19  ;;  %v6231_v32 = vpop.permute.xlu1 %379  ;;  %4773 = vmatprep.mubr.msk.bf16.mxu1 %vm5392_vm0, %v7356_v15  ;;  %v1467_v25 = vsel %vm1461_vm10, %v6095_v38, %v1460_v31  ;;  %vm3490_vm10 = vcmask 408576  }
 0x1ab   : > { %2797 = vperm.xlu1 %5106, %v4572_v21   ;;  %4771 = vmatprep.subr.bf16.mxu1 %v7356_v15 }
 0x1ad   : > { %v6238_v28 = vpop.permute.xlu0 %1774  ;;  %2683 = vrot.lane.b32.xlu0 %v5807_v16, %s5400_s18 }
 0x1ae   : > { %4772 = vmatpush3.bf16.msra.mxu1 %v1113_v33  ;;  %v6242_v34 = vpop.permute.xlu1 %1772 }
 0x1af   : > { %4777 = vmatprep.subr.bf16.mxu1 %v7356_v15  ;;  %2691 = vrot.lane.b32.xlu1 %v5811_v17, %s5400_s18 }
 0x1b1   : > { %v6249_v39 = vpop.permute.xlu0 %1780  ;;  %4774 = vmatmul.mubr.msk.bf16.vlgmr.msra.gmra.mrb[24].mxu1 %vm443_vm3, %v6025_v46  ;;  %2920 = vrot.lane.b32.xlu0 %v5664_v3, %s5401_s26 }
 0x1b2   : > { %4778 = vmatpush3.bf16.msra.mxu1 %v1228_v37  ;;  %v6255_v36 = vpop.permute.xlu1 %1770  ;;  %4781 = vmatprep.mubr.msk.bf16.mxu1 %vm5392_vm0, %v7356_v15 }
 0x1b3   : > { %4779 = vmatprep.subr.bf16.mxu1 %v7356_v15  ;;  %2922 = vrot.lane.b32.xlu1 %v5685_v10, %s5401_s26 }
 0x1b5   : > { %v6264_v40 = vpop.permute.xlu0 %1778  ;;  %2918 = vrot.lane.b32.xlu0 %v5666_v4, %s5401_s26 }
 0x1b6   : > { %4780 = vmatpush3.bf16.msra.mxu1 %v1231_v43  ;;  %v6268_v46 = vpop.permute.xlu1 %1782 }
 0x1b7   : > { %4785 = vmatprep.subr.bf16.mxu1 %v7356_v15  ;;  %2928 = vrot.lane.b32.xlu1 %v5687_v11, %s5401_s26 }
 0x1b9   : > { %v6275_v47 = vpop.permute.xlu0 %1887  ;;  %4782 = vmatmul.mubr.msk.bf16.vlgmr.msra.gmra.mrb[28].mxu1 %vm443_vm3, %v6047_v57  ;;  %2930 = vrot.lane.b32.xlu0 %v5695_v12, %s5401_s26 }
 0x1ba   : > { %4786 = vmatpush3.bf16.msra.mxu1 %v1346_v44  ;;  %v6281_v51 = vpop.permute.xlu1 %1885  ;;  %4789 = vmatprep.mubr.msk.bf16.mxu1 %vm5392_vm0, %v7356_v15 }
 0x1bb   : > { %4787 = vmatprep.subr.bf16.mxu1 %v7356_v15  ;;  %2926 = vrot.lane.b32.xlu1 %v5697_v13, %s5401_s26 }
 0x1bd   : > { %v6290_v49 = vpop.permute.xlu0 %1893  ;;  %3151 = vrot.lane.b32.xlu0 %v5664_v3, %s5402_s16 }
 0x1be   : > { %4788 = vmatpush3.bf16.msra.mxu1 %v1349_v60  ;;  %v6294_v57 = vpop.permute.xlu1 %1883 }
 0x1bf   : > { %4793 = vmatprep.subr.bf16.mxu1 %v7356_v15  ;;  %3153 = vrot.lane.b32.xlu1 %v5685_v10, %s5402_s16 }
 0x1c1   : > { %v6301_v55 = vpop.permute.xlu0 %1891  ;;  %4790 = vmatmul.mubr.msk.bf16.vlgmr.msra.gmra.mrb[32].mxu1 %vm443_vm3, %v6077_v18  ;;  %3149 = vrot.lane.b32.xlu0 %v5666_v4, %s5402_s16 }
 0x1c2   : > { %4794 = vmatpush3.bf16.msra.mxu1 %v1464_v53  ;;  %v6307_v5 = vpop.permute.xlu1 %1895  ;;  %4797 = vmatprep.mubr.msk.bf16.mxu1 %vm5392_vm0, %v7356_v15 }
 0x1c3   : > { %4795 = vmatprep.subr.bf16.mxu1 %v7356_v15  ;;  %3159 = vrot.lane.b32.xlu1 %v5687_v11, %s5402_s16 }
 0x1c5   : > { %v6316_v56 = vpop.permute.xlu0 %2002  ;;  %3161 = vrot.lane.b32.xlu0 %v5695_v12, %s5402_s16 }
 0x1c6   : > { %4796 = vmatpush3.bf16.msra.mxu1 %v1467_v25  ;;  %v6320_v18 = vpop.permute.xlu1 %2000 }
 0x1c7   : > { %3157 = vrot.lane.b32.xlu1 %v5697_v13, %s5402_s16  ;;  %4801 = vmatprep.subr.bf16.mxu1 %v7356_v15 }
 0x1c9   : > { %v6325_v24 = vpop.permute.xlu0 %2008  ;;  %4798 = vmatmul.mubr.msk.bf16.vlgmr.msra.gmra.mrb[36].mxu1 %vm443_vm3, %v6107_v45  ;;  %3269 = vrot.lane.b32.xlu0 %v5664_v3, %s5403_s22 }
 0x1ca   : > { %v6331_v38 = vpop.permute.xlu1 %1998  ;;  %4803 = vmatprep.mubr.msk.bf16.mxu1 %vm5392_vm0, %v7356_v15 }
 0x1cb   : > { %3271 = vrot.lane.b32.xlu1 %v5685_v10, %s5403_s22 }
 0x1cd   : > { %v6337_v58 = vpop.permute.xlu0 %2006  ;;  %3267 = vrot.lane.b32.xlu0 %v5666_v4, %s5403_s22 }
 0x1ce   : > { %v6341_v29 = vpop.permute.xlu1 %2010 }
 0x1cf   : > { %3277 = vrot.lane.b32.xlu1 %v5687_v11, %s5403_s22 }
 0x1d1   : > { %v6345_v45 = vpop.permute.xlu0 %2120  ;;  %3279 = vrot.lane.b32.xlu0 %v5695_v12, %s5403_s22 }
 0x1d2   : > { %v6349_v30 = vpop.permute.xlu1 %2118 }
 0x1d3   : > { %3275 = vrot.lane.b32.xlu1 %v5697_v13, %s5403_s22 }
 0x1d5   : > { %v6353_v61 = vpop.permute.xlu0 %2126  ;;  %3476 = vrot.lane.b32.xlu0 %v5664_v3, %s5404_s19  ;;  %v5155_v3 = vld [vmem:[%s5645_s10 + $0x8] ss:$20 sps:$4 sm:$0xff]  }
 0x1d6   : > { %v6357_v62 = vpop.permute.xlu1 %2116 }
 0x1d7   : > { %3478 = vrot.lane.b32.xlu1 %v5685_v10, %s5404_s19 }
 0x1d9   : > { %v6361_v35 = vpop.permute.xlu0 %2124  ;;  %3474 = vrot.lane.b32.xlu0 %v5666_v4, %s5404_s19 }
 0x1da   : > { %v6365_v41 = vpop.permute.xlu1 %2128 }
 0x1db   : > { %3484 = vrot.lane.b32.xlu1 %v5687_v11, %s5404_s19  ;;  %v5157_v11 = vld [vmem:[%s5645_s10 + $0x4] ss:$20 sps:$4 sm:$0xff]  }
 0x1dd   : > { %v6369_v42 = vpop.permute.xlu0 %2327  ;;  %3486 = vrot.lane.b32.xlu0 %v5695_v12, %s5404_s19 }
 0x1de   : > { %v6374_v10 = vpop.permute.xlu1 %2325 }
 0x1df   : > { %7414 = vst [vmem:[#allocation18_spill] sm:$0xff] %v6374_v10  ;;  %3482 = vrot.lane.b32.xlu1 %v5697_v13, %s5404_s19  ;;  %v5164_v13 = vld [vmem:[%s5645_s10 + $0x2c] ss:$20 sps:$4 sm:$0xff]  }
 0x1e1   : > { %v6379_v4 = vpop.permute.xlu0 %2333  ;;  %3634 = vrot.lane.b32.xlu0 %v5155_v3, %s5405_s21 }
 0x1e2   : > { %7415 = vst [vmem:[#allocation19_spill] sm:$0xff] %v6379_v4  ;;  %v6383_v48 = vpop.permute.xlu1 %2323 }
 0x1e3   : > { %7416 = vst [vmem:[#allocation20_spill] sm:$0xff] %v6383_v48  ;;  %3636 = vrot.lane.b32.xlu1 %v5158_v0, %s5405_s21 }
 0x1e5   : > { %v6387_v12 = vpop.permute.xlu0 %2331  ;;  %3632 = vrot.lane.b32.xlu0 %v5157_v11, %s5405_s21 }
 0x1e6   : > { %7417 = vst [vmem:[#allocation21_spill] sm:$0xff] %v6387_v12  ;;  %v6391_v52 = vpop.permute.xlu1 %2335 }
 0x1e7   : > { %3642 = vrot.lane.b32.xlu1 %v5162_v2, %s5405_s21 }
 0x1e9   : > { %v6395_v59 = vpop.permute.xlu0 %2445  ;;  %3644 = vrot.lane.b32.xlu0 %v5160_v54, %s5405_s21 }
 0x1ea   : > { %v6398_v6 = vpop.permute.xlu1 %2443 }
 0x1eb   : > { %7418 = vst [vmem:[#allocation22_spill] sm:$0xff] %v6398_v6  ;;  %3640 = vrot.lane.b32.xlu1 %v5164_v13, %s5405_s21 }
 0x1ed   : > { %v6401_v1 = vpop.permute.xlu0 %2451  ;;  %3752 = vrot.lane.b32.xlu0 %v5155_v3, %s5406_s13 }
 0x1ee   : > { %7419 = vst [vmem:[#allocation23_spill] sm:$0xff] %v6401_v1  ;;  %v6404_v63 = vpop.permute.xlu1 %2441  ;;  %v6406_v7 = vpop.f32.mrb[0].mxu0 }
 0x1ef   : > { %7420 = vst [vmem:[#allocation24_spill] sm:$0xff] %v6404_v63  ;;  %3754 = vrot.lane.b32.xlu1 %v5158_v0, %s5406_s13  ;;  %v6409_v9 = vpop.f32.mrb[1].mxu0  ;;  %v5178_v63 = vld [vmem:[%s5645_s10 + $0x1c] sm:$0xff] }
 0x1f0   : > { %v485_v21 = vpop.f32.mrb[2].mxu0  ;;  %v4104_v14 = vunpack.c.l.bf16 %v5178_v63  ;;  %v4105_v48 = vunpack.c.h.bf16 %v5178_v63  ;;  %v6458_v63 = vld [vmem:[%s5645_s10 + $0x3c] sm:$0xff] }
 0x1f1   : > { %v6411_v19 = vpop.permute.xlu0 %2449  ;;  %3750 = vrot.lane.b32.xlu0 %v5157_v11, %s5406_s13  ;;  %v486_v31 = vpop.f32.mrb[3].mxu0 }
 0x1f2   : > { %7421 = vst [vmem:[#allocation25_spill] sm:$0xff] %v6411_v19  ;;  %v6414_v33 = vpop.permute.xlu1 %2453 }
 0x1f3   : > { %3760 = vrot.lane.b32.xlu1 %v5162_v2, %s5406_s13 }
 0x1f5   : > { %v6417_v37 = vpop.permute.xlu0 %2563  ;;  %3762 = vrot.lane.b32.xlu0 %v5160_v54, %s5406_s13 }
 0x1f6   : > { %v6420_v43 = vpop.permute.xlu1 %2561 }
 0x1f7   : > { %7422 = vst [vmem:[#allocation26_spill] sm:$0xff] %v6420_v43  ;;  %3758 = vrot.lane.b32.xlu1 %v5164_v13, %s5406_s13  ;;  %v5176_v43 = vld [vmem:[%s5645_s10 + $0x8] sm:$0xff] }
 0x1f8   : > { %v4101_v4 = vunpack.c.h.bf16 %v5176_v43 }
 0x1f9   : > { %v6423_v44 = vpop.permute.xlu0 %2569  ;;  %3870 = vrot.lane.b32.xlu0 %v5155_v3, %s5407_s17 }
 0x1fa   : > { %v6426_v60 = vpop.permute.xlu1 %2559  ;;  %v604_v53 = vpop.f32.mrb[4].mxu0  ;;  %v5122_v26 = vpack.i.bf16 %v4105_v48, %v4101_v4 }
 0x1fb   : > { %7423 = vst [vmem:[#allocation27_spill] sm:$0xff] %v6426_v60  ;;  %v606_v25 = vpop.f32.mrb[5].mxu0  ;;  %3872 = vrot.lane.b32.xlu1 %v5158_v0, %s5407_s17  ;;  %v4100_v0 = vunpack.c.l.bf16 %v5176_v43 }
 0x1fc   : > { %v608_v21 = vpop.f32.mrb[6].mxu0 }
 0x1fd   : > { %v2568_v31 = vpop.permute.xlu0 %2567  ;;  %3868 = vrot.lane.b32.xlu0 %v5157_v11, %s5407_s17  ;;  %v609_v15 = vpop.f32.mrb[7].mxu0  ;;  %v5177_v21 = vld [vmem:[%s5645_s10 + $0x14] sm:$0xff] }
 0x1fe   : > { %v6433_v3 = vsel %vm2575_vm11, %v2568_v31, %v6423_v44  ;;  %v6435_v60 = vpop.permute.xlu1 %2571  ;;  %v4102_v19 = vunpack.c.l.bf16 %v5177_v21  ;;  %v5107_v15 = vpack.i.bf16 %v4099_v50, %v4098_v20  ;;  %v4103_v11 = vunpack.c.h.bf16 %v5177_v21 }
 0x1ff   : > { %7424 = vst [vmem:[#allocation28_spill] sm:$0xff] %v6433_v3  ;;  %3878 = vrot.lane.b32.xlu1 %v5162_v2, %s5407_s17 }
 0x200   : > { %v5112_v31 = vpack.i.bf16 %v4102_v19, %v4100_v0  ;;  %v5117_v12 = vpack.i.bf16 %v4104_v14, %v4103_v11 }
 0x201   : > { %v6440_v1 = vpop.permute.xlu0 %2681  ;;  %3880 = vrot.lane.b32.xlu0 %v5160_v54, %s5407_s17 }
 0x202   : > { %v2680_v6 = vpop.permute.xlu1 %2679 }
 0x203   : > { %3876 = vrot.lane.b32.xlu1 %v5164_v13, %s5407_s17 }
 0x205   : > { %v6445_v3 = vpop.permute.xlu0 %2687  ;;  %v717_v2 = vpop.f32.mrb[8].mxu0  ;;  %5108 = vrot.lane.b32.xlu0 %v5107_v15, %s5381_s11  ;;  %v6454_v15 = vld [vmem:[%s5645_s10 + $0x30] sm:$0xff] }
 0x206   : > { %v2678_v54 = vpop.permute.xlu1 %2677  ;;  %v718_v50 = vadd.f32 %v717_v2, %v604_v53  ;;  %v719_v20 = vpop.f32.mrb[9].mxu0  ;;  %v4108_v43 = vunpack.c.l.bf16 %v6454_v15  ;;  %v4110_v53 = vunpack.c.l.bf16 %v6458_v63 }
 0x207   : > { %v6449_v21 = vsel %vm2693_vm12, %v2678_v54, %v2680_v6  ;;  %v720_v10 = vadd.f32 %v719_v20, %v606_v25  ;;  %v721_v13 = vpop.f32.mrb[10].mxu0  ;;  %5113 = vrot.lane.b32.xlu1 %v5112_v31, %s5381_s11 }
 0x208   : > { %v722_v19 = vpop.f32.mrb[11].mxu0  ;;  %v5132_v4 = vpack.i.bf16 %v4110_v53, %v4108_v43  ;;  %v6488_v43 = vsel %vm2575_vm11, %v6423_v44, %v6435_v60 }
 0x209   : > { %v2686_v0 = vpop.permute.xlu0 %2685  ;;  %5118 = vrot.lane.b32.xlu0 %v5117_v12, %s5381_s11 }
 0x20a   : > { %v6463_v11 = vsel %vm2693_vm12, %v2686_v0, %v6445_v3  ;;  %v6465_v25 = vpop.permute.xlu1 %2689 }
 0x20b   : > { %7425 = vst [vmem:[#allocation29_spill] sm:$0xff] %v6463_v11  ;;  %2924 = vrot.lane.b32.xlu1 %v5807_v16, %s5401_s26 }
 0x20d   : > { %v6469_v14 = vpop.permute.xlu0 %1784  ;;  %5123 = vrot.lane.b32.xlu0 %v5122_v26, %s5381_s11 }
 0x20e   : > { %v6472_v48 = vpop.permute.xlu1 %1776 }
 0x211   : > { %v6474_v12 = vpop.permute.xlu0 %1897  ;;  %v832_v31 = vpop.f32.mrb[12].mxu0  ;;  %5133 = vrot.lane.b32.xlu0 %v5132_v4, %s5381_s11 }
 0x212   : > { %7426 = vst [vmem:[#allocation30_spill] sm:$0xff] %v6474_v12  ;;  %v879_v2 = vadd.f32 %v832_v31, %v718_v50  ;;  %v834_v54 = vpop.f32.mrb[13].mxu0  ;;  %v6477_v20 = vpop.permute.xlu1 %1889 }
 0x213   : > { %7427 = vst [vmem:[#allocation31_spill] sm:$0xff] %v6477_v20  ;;  %v880_v13 = vadd.f32 %v834_v54, %v720_v10  ;;  %v836_v19 = vpop.f32.mrb[14].mxu0 }
 0x214   : > { %v837_v0 = vpop.f32.mrb[15].mxu0 }
 0x215   : > { %v6479_v11 = vpop.permute.xlu0 %2012  ;;  %2932 = vrot.lane.b32.xlu0 %v5811_v17, %s5401_s26  ;;  %s365_s26 = scalar_lea.vmem [#allocation10], %s4994_s15 }
 0x216   : > { %7428 = vst [vmem:[#allocation32_spill] sm:$0xff] %v6479_v11  ;;  %v6483_v26 = vpop.permute.xlu1 %2004  ;;  %v6508_v11 = vsel %vm2693_vm12, %v2680_v6, %v6440_v1  ;;  %v6526_v6 = vsel %vm2693_vm12, %v6445_v3, %v6465_v25 }
 0x217   : > { %7429 = vst [vmem:[#allocation33_spill] sm:$0xff] %v6483_v26 }
 0x219   : > { %v6490_v53 = vpop.permute.xlu0 %2130  ;;  %3155 = vrot.lane.b32.xlu0 %v5807_v16, %s5402_s16 }
 0x21a   : > { %7430 = vst [vmem:[#allocation34_spill] sm:$0xff] %v6490_v53  ;;  %v6494_v10 = vpop.permute.xlu1 %2122 }
 0x21b   : > { %7431 = vst [vmem:[#allocation35_spill] sm:$0xff] %v6494_v10 }
 0x21d   : > { %v2338_v50 = vpop.permute.xlu0 %2337  ;;  %v950_v4 = vpop.f32.mrb[16].mxu0  ;;  %3273 = vrot.lane.b32.xlu0 %v5807_v16, %s5403_s22 }
 0x21e   : > { %v6500_v31 = vsel %vm2339_vm13, %v6391_v52, %v2338_v50  ;;  %v997_v44 = vadd.f32 %v950_v4, %v879_v2  ;;  %v952_v54 = vpop.f32.mrb[17].mxu0  ;;  %v2330_v19 = vpop.permute.xlu1 %2329  ;;  %v6513_v50 = vld [vmem:[%s5645_s10 + $0x10] ss:$20 sps:$4 sm:$0xff]  }
 0x21f   : > { %7432 = vst [vmem:[#allocation36_spill] sm:$0xff] %v6500_v31  ;;  %v998_v0 = vadd.f32 %v952_v54, %v880_v13  ;;  %v6504_v53 = vsel %vm2339_vm13, %v6369_v42, %v2330_v19  ;;  %v954_v10 = vpop.f32.mrb[18].mxu0 }
 0x220   : > { %7433 = vst [vmem:[#allocation37_spill] sm:$0xff] %v6504_v53  ;;  %v955_v26 = vpop.f32.mrb[19].mxu0 }
 0x221   : > { %v2456_v12 = vpop.permute.xlu0 %2455  ;;  %3480 = vrot.lane.b32.xlu0 %v5807_v16, %s5404_s19 }
 0x222   : > { %v6517_v2 = vsel %vm2457_vm14, %v6414_v33, %v2456_v12  ;;  %v2448_v13 = vpop.permute.xlu1 %2447 }
 0x223   : > { %7434 = vst [vmem:[#allocation38_spill] sm:$0xff] %v6517_v2  ;;  %v6521_v10 = vsel %vm2457_vm14, %v6395_v59, %v2448_v13 }
 0x224   : > { %7435 = vst [vmem:[#allocation39_spill] sm:$0xff] %v6521_v10 }
 0x225   : > { %v2574_v26 = vpop.permute.xlu0 %2573  ;;  %v1039_v4 = vpop.f32.mrb[20].mxu0  ;;  %3638 = vrot.lane.b32.xlu0 %v6513_v50, %s5405_s21 }
 0x226   : > { %v6532_v16 = vsel %vm2575_vm11, %v6435_v60, %v2574_v26  ;;  %v1086_v12 = vadd.f32 %v1039_v4, %v997_v44  ;;  %v1041_v54 = vpop.f32.mrb[21].mxu0  ;;  %v2566_v19 = vpop.permute.xlu1 %2565 }
 0x227   : > { %7436 = vst [vmem:[#allocation40_spill] sm:$0xff] %v6532_v16  ;;  %v1087_v2 = vadd.f32 %v1041_v54, %v998_v0  ;;  %v6536_v13 = vsel %vm2575_vm11, %v6417_v37, %v2566_v19  ;;  %v1043_v10 = vpop.f32.mrb[22].mxu0 }
 0x228   : > { %7437 = vst [vmem:[#allocation41_spill] sm:$0xff] %v6536_v13  ;;  %v1044_v3 = vpop.f32.mrb[23].mxu0 }
 0x229   : > { %v2684_v31 = vpop.permute.xlu0 %2683  ;;  %3756 = vrot.lane.b32.xlu0 %v6513_v50, %s5406_s13 }
 0x22a   : > { %v6542_v53 = vsel %vm2693_vm12, %v6440_v1, %v2684_v31  ;;  %v6544_v60 = vpop.permute.xlu1 %2797 }
 0x22b   : > { %7438 = vst [vmem:[#allocation42_spill] sm:$0xff] %v6542_v53  ;;  %7439 = vst [vmem:[#allocation43_spill] sm:$0xff] %v6544_v60 }
 0x22d   : > { %v6546_v44 = vpop.permute.xlu0 %2920  ;;  %v1157_v0 = vpop.f32.mrb[24].mxu0 }
 0x22e   : > { %7440 = vst [vmem:[#allocation44_spill] sm:$0xff] %v6546_v44  ;;  %v1204_v26 = vadd.f32 %v1157_v0, %v1086_v12  ;;  %v1159_v4 = vpop.f32.mrb[25].mxu0  ;;  %v2692_v54 = vpop.permute.xlu1 %2691  ;;  %v5181_v0 = vld [vmem:[%s5645_s10 + $0x28] sm:$0xff] }
 0x22f   : > { %v1205_v19 = vadd.f32 %v1159_v4, %v1087_v2  ;;  %v6550_v10 = vsel %vm2693_vm12, %v6465_v25, %v2692_v54  ;;  %v1161_v3 = vpop.f32.mrb[26].mxu0  ;;  %v4106_v2 = vunpack.c.l.bf16 %v5181_v0  ;;  %v4107_v4 = vunpack.c.h.bf16 %v5181_v0 }
 0x230   : > { %7441 = vst [vmem:[#allocation45_spill] sm:$0xff] %v6550_v10  ;;  %v1162_v16 = vpop.f32.mrb[27].mxu0  ;;  %vm3766_vm12 = vcmask 891904  }
 0x231   : > { %v6552_v13 = vpop.permute.xlu0 %2918  ;;  %v5127_v3 = vpack.i.bf16 %v4107_v4, %v4106_v2 }
 0x232   : > { %7442 = vst [vmem:[#allocation46_spill] sm:$0xff] %v6552_v13  ;;  %v6554_v1 = vpop.permute.xlu1 %2922 }
 0x233   : > { %7443 = vst [vmem:[#allocation47_spill] sm:$0xff] %v6554_v1  ;;  %5128 = vrot.lane.b32.xlu1 %v5127_v3, %s5381_s11  ;;  %v5182_v1 = vld [vmem:[%s5645_s10 + $0x44] sm:$0xff] }
 0x235   : > { %v6556_v31 = vpop.permute.xlu0 %2930  ;;  %v1275_v44 = vpop.f32.mrb[28].mxu0 }
 0x236   : > { %7444 = vst [vmem:[#allocation48_spill] sm:$0xff] %v6556_v31  ;;  %v1322_v60 = vadd.f32 %v1275_v44, %v1204_v26  ;;  %v1277_v53 = vpop.f32.mrb[29].mxu0  ;;  %v6558_v12 = vpop.permute.xlu1 %2928  ;;  %v4111_v31 = vunpack.c.h.bf16 %v6458_v63  ;;  %v4112_v44 = vunpack.c.l.bf16 %v5182_v1 }
 0x237   : > { %7445 = vst [vmem:[#allocation49_spill] sm:$0xff] %v6558_v12  ;;  %v1323_v20 = vadd.f32 %v1277_v53, %v1205_v19  ;;  %v1279_v25 = vpop.f32.mrb[30].mxu0  ;;  %v4109_v53 = vunpack.c.h.bf16 %v6454_v15  ;;  %v4113_v19 = vunpack.c.h.bf16 %v5182_v1 }
 0x238   : > { %v1280_v54 = vpop.f32.mrb[31].mxu0  ;;  %v5137_v26 = vpack.i.bf16 %v4112_v44, %v4111_v31 }
 0x239   : > { %v6561_v16 = vpop.permute.xlu0 %3151  ;;  %v5142_v0 = vpack.i.bf16 %v4113_v19, %v4109_v53 }
 0x23a   : > { %7446 = vst [vmem:[#allocation50_spill] sm:$0xff] %v6561_v16  ;;  %v6563_v13 = vpop.permute.xlu1 %2926  ;;  %5138 = vrot.lane.b32.xlu1 %v5137_v26, %s5381_s11 }
 0x23d   : > { %v6568_v10 = vpop.permute.xlu0 %3149 }
 0x23e   : > { %7447 = vst [vmem:[#allocation51_spill] sm:$0xff] %v6568_v10  ;;  %v6570_v12 = vpop.permute.xlu1 %3153  ;;  %5143 = vrot.lane.b32.xlu1 %v5142_v0, %s5381_s11  ;;  %v482_v0 = vadd.f32 %v6406_v7, %v6231_v32 }
 0x241   : > { %v6574_v2 = vpop.permute.xlu0 %3161  ;;  %v1393_v4 = vpop.f32.mrb[32].mxu0 }
 0x242   : > { %v1440_v25 = vadd.f32 %v1393_v4, %v1322_v60  ;;  %v1395_v54 = vpop.f32.mrb[33].mxu0  ;;  %v6576_v3 = vpop.permute.xlu1 %3159  ;;  %3163 = vrot.lane.b32.xlu1 %v5811_v17, %s5402_s16  ;;  %v484_v4 = vadd.f32 %v6409_v9, %v6231_v32  ;;  %s4400_s16 = sshll.u32 %s365_s26, 4  ;;  %s7302_s16 = int_to_ptr.vmem [resolvable:$true] %s4400_s16 }
 0x243   : > { %7448 = vst [vmem:[#allocation52_spill] sm:$0xff] %v6576_v3  ;;  %v1441_v63 = vadd.f32 %v1395_v54, %v1323_v20  ;;  %v1397_v31 = vpop.f32.mrb[34].mxu0 }
 0x244   : > { %v1398_v44 = vpop.f32.mrb[35].mxu0 }
 0x245   : > { %v6579_v10 = vpop.permute.xlu0 %3269 }
 0x246   : > { %7449 = vst [vmem:[#allocation53_spill] sm:$0xff] %v6579_v10  ;;  %v6581_v16 = vpop.permute.xlu1 %3157  ;;  %3281 = vrot.lane.b32.xlu1 %v5811_v17, %s5403_s22  ;;  %v528_v10 = vmax.f32 %v482_v0, 0.0 }
 0x247   : > { %7450 = vst [vmem:[#allocation54_spill] sm:$0xff] %v6581_v16 }
 0x249   : > { %v6585_v15 = vpop.permute.xlu0 %3267 }
 0x24a   : > { %7451 = vst [vmem:[#allocation55_spill] sm:$0xff] %v6585_v15  ;;  %v6587_v1 = vpop.permute.xlu1 %3271  ;;  %3488 = vrot.lane.b32.xlu1 %v5811_v17, %s5404_s19  ;;  %v529_v17 = vmax.f32 %v484_v4, 0.0  ;;  %s7300_s19 = scalar_lea.hbm %s7352_s8, %s4995_s20 }
 0x24b   : > { %7452 = vst [vmem:[#allocation56_spill] sm:$0xff] %v6587_v1 }
 0x24d   : > { %v6591_v60 = vpop.permute.xlu0 %3279  ;;  %v1511_v26 = vpop.f32.mrb[36].mxu0 }
 0x24e   : > { %7453 = vst [vmem:[#allocation57_spill] sm:$0xff] %v6591_v60  ;;  %v1558_v20 = vadd.f32 %v1511_v26, %v1440_v25  ;;  %v1513_v53 = vpop.f32.mrb[37].mxu0  ;;  %v6593_v19 = vpop.permute.xlu1 %3277 }
 0x24f   : > { %7454 = vst [vmem:[#allocation58_spill] sm:$0xff] %v6593_v19  ;;  %v1559_v54 = vadd.f32 %v1513_v53, %v1441_v63  ;;  %v1515_v31 = vpop.f32.mrb[38].mxu0 }
 0x250   : > { %v1568_v44 = vadd.f32 %v6214_v8, %v1558_v20  ;;  %v1516_v15 = vpop.f32.mrb[39].mxu0  ;;  %v533_v31 = vpack.c.bf16 %v529_v17, %v529_v17 }
 0x251   : > { %v1569_v60 = vadd.f32 %v6214_v8, %v1559_v54  ;;  %v6603_v25 = vpop.permute.xlu0 %3476  ;;  %v532_v54 = vpack.c.bf16 %v528_v10, %v528_v10 }
 0x252   : > { %v1571_v26 = vmax.f32 %v1568_v44, 0.0  ;;  %v6605_v19 = vpop.permute.xlu1 %3275 }
 0x253   : > { %v1572_v1 = vmax.f32 %v1569_v60, 0.0  ;;  %v6618_v60 = vld [vmem:[%s7350_s6 + $0x4] sm:$0xf]  ;;  %v1678_v10 = vsel %vm1583_vm15, %v532_v54, 0  ;;  %v6639_v54 = vld [vmem:[%s7350_s6] sm:$0xf] }
 0x254   : > { %v1576_v16 = vpack.c.bf16 %v1571_v26, %v1571_v26  ;;  %v6607_v7 = vpop.f32.mrb[0].mxu1 }
 0x255   : > { %v1577_v3 = vpack.c.bf16 %v1572_v1, %v1572_v1  ;;  %v6609_v9 = vpop.permute.xlu0 %3474  ;;  %v4727_v63 = vpop.f32.mrb[1].mxu1 }
 0x256   : > { %v6611_v20 = vpop.permute.xlu1 %3478  ;;  %v1585_v15 = vsel %vm1583_vm15, %v1576_v16, 0  ;;  %v525_v53 = vpop.f32.mrb[2].mxu1  ;;  %v1788_v16 = vsel %vm1786_vm4, %v6242_v34, %v6238_v28 }
 0x257   : > { %4548 = vmatprep.subr.msk.bf16.mxu0 %vm1583_vm15, %v1577_v3  ;;  %v4728_v0 = vpop.f32.mrb[3].mxu1  ;;  %v7455_v3 = vmov 0  }
 0x258   : > { %1594 = vmatpush1.bf16.msra.mxu0 %v1585_v15 }
 0x259   : > { %v6620_v1 = vpop.permute.xlu0 %3486  ;;  %4551 = vmatprep.subr.msk.bf16.mxu0 %vm1583_vm15, %v533_v31 }
 0x25a   : > { %v6623_v4 = vpop.permute.xlu1 %3484 }
 0x25b   : > { %4549 = vmatmul.mubr.msk.bf16.vlgmr.msra.gmra.mrb[40].mxu0 %vm1579_vm2, %v6618_v60 }
 0x25c   : > { %1687 = vmatpush1.bf16.msra.mxu0 %v1678_v10  ;;  %1718 = vmatprep.mubr.bf16.mxu0 %v7455_v3  ;;  %v645_v44 = vpop.f32.mrb[4].mxu1  ;;  %v1787_v10 = vsel %vm1786_vm4, %v6255_v36, %v6242_v34  ;;  %v1790_v36 = vsel %vm1786_vm4, %v6264_v40, %v6249_v39 }
 0x25d   : > { %v6632_v26 = vpop.permute.xlu0 %3634  ;;  %1802 = vmatprep.subr.bf16.mxu0 %v1788_v16  ;;  %v4735_v17 = vpop.f32.mrb[5].mxu1  ;;  %v1791_v16 = vsel %vm1786_vm4, %v6249_v39, %v6268_v46  ;;  %v1904_v39 = vsel %vm1899_vm5, %v6290_v49, %v6307_v5 }
 0x25e   : > { %7456 = vst [vmem:[#allocation59_spill] sm:$0xff] %v6632_v26  ;;  %v6634_v63 = vpop.permute.xlu1 %3482  ;;  %v648_v15 = vpop.f32.mrb[6].mxu1 }
 0x25f   : > { %7457 = vst [vmem:[#allocation60_spill] sm:$0xff] %v6634_v63  ;;  %v4736_v53 = vpop.f32.mrb[7].mxu1  ;;  %v6664_v63 = vld [vmem:[#allocation7 + $0x4] sm:$0xf] }
 0x261   : > { %v6641_v31 = vpop.permute.xlu0 %3632 }
 0x262   : > { %7458 = vst [vmem:[#allocation61_spill] sm:$0xff] %v6641_v31  ;;  %v6643_v0 = vpop.permute.xlu1 %3636 }
 0x263   : > { %7459 = vst [vmem:[#allocation62_spill] sm:$0xff] %v6643_v0  ;;  %4552 = vmatmul.mubr.msk.bf16.vlgmr.msra.gmra.mrb[44].mxu0 %vm1579_vm2, %v6639_v54  ;;  %v1901_v0 = vsel %vm1899_vm5, %v6281_v51, %v6275_v47 }
 0x264   : > { %1803 = vmatpush1.bf16.msra.mxu0 %v1787_v10  ;;  %1834 = vmatprep.mubr.bf16.mxu0 %v7455_v3  ;;  %v758_v17 = vpop.f32.mrb[8].mxu1 }
 0x265   : > { %1804 = vmatprep.subr.bf16.mxu0 %v1791_v16  ;;  %v6654_v15 = vpop.permute.xlu0 %3644  ;;  %v759_v53 = vadd.f32 %v758_v17, %v645_v44  ;;  %v4743_v31 = vpop.f32.mrb[9].mxu1 }
 0x266   : > { %v6656_v26 = vpop.permute.xlu1 %3642  ;;  %v761_v34 = vpop.f32.mrb[10].mxu1  ;;  %v1900_v31 = vsel %vm1899_vm5, %v6294_v57, %v6281_v51  ;;  %v1903_v57 = vsel %vm1899_vm5, %v6301_v55, %v6290_v49  ;;  %v2019_v49 = vsel %vm2014_vm6, %v6325_v24, %v6341_v29 }
 0x267   : > { %7460 = vst [vmem:[#allocation63_spill] sm:$0xff] %v6656_v26  ;;  %v4744_v10 = vpop.f32.mrb[11].mxu1  ;;  %v7479_v26 = vld [vmem:[#allocation22_spill] sm:$0xff] }
 0x268   : > { %1805 = vmatpush1.bf16.msra.mxu0 %v1790_v36 }
 0x269   : > { %1915 = vmatprep.subr.bf16.mxu0 %v1901_v0  ;;  %v6666_v16 = vpop.permute.xlu0 %3752 }
 0x26a   : > { %7461 = vst [vmem:[#allocation64_spill] sm:$0xff] %v6666_v16  ;;  %v6668_v44 = vpop.permute.xlu1 %3640  ;;  %v6689_v16 = vld [vmem:[#allocation7] sm:$0xf] }
 0x26b   : > { %7462 = vst [vmem:[#allocation65_spill] sm:$0xff] %v6668_v44  ;;  %4554 = vmatmul.mubr.msk.bf16.vlgmr.msra.gmra.mrb[48].mxu0 %vm443_vm3, %v6664_v63 }
 0x26c   : > { %1916 = vmatpush1.bf16.msra.mxu0 %v1900_v31  ;;  %1947 = vmatprep.mubr.bf16.mxu0 %v7455_v3  ;;  %v873_v40 = vpop.f32.mrb[12].mxu1  ;;  %v2016_v31 = vsel %vm2014_vm6, %v6320_v18, %v6316_v56 }
 0x26d   : > { %1917 = vmatprep.subr.bf16.mxu0 %v1904_v39  ;;  %v6679_v0 = vpop.permute.xlu0 %3750  ;;  %v881_v17 = vadd.f32 %v873_v40, %v759_v53  ;;  %v4751_v34 = vpop.f32.mrb[13].mxu1  ;;  %v2015_v40 = vsel %vm2014_vm6, %v6331_v38, %v6320_v18  ;;  %v2018_v38 = vsel %vm2014_vm6, %v6337_v58, %v6325_v24  ;;  %v2137_v24 = vsel %vm2132_vm7, %v6353_v61, %v6365_v41 }
 0x26e   : > { %7463 = vst [vmem:[#allocation66_spill] sm:$0xff] %v6679_v0  ;;  %v6681_v36 = vpop.permute.xlu1 %3754  ;;  %v876_v51 = vpop.f32.mrb[14].mxu1  ;;  %v6763_v0 = vld [vmem:[#allocation7 + $0x10] sm:$0xf] }
 0x26f   : > { %7464 = vst [vmem:[#allocation67_spill] sm:$0xff] %v6681_v36  ;;  %v4752_v10 = vpop.f32.mrb[15].mxu1 }
 0x270   : > { %1918 = vmatpush1.bf16.msra.mxu0 %v1903_v57 }
 0x271   : > { %2030 = vmatprep.subr.bf16.mxu0 %v2016_v31  ;;  %v6691_v39 = vpop.permute.xlu0 %3762 }
 0x272   : > { %7465 = vst [vmem:[#allocation68_spill] sm:$0xff] %v6691_v39  ;;  %v6693_v53 = vpop.permute.xlu1 %3760 }
 0x273   : > { %7466 = vst [vmem:[#allocation69_spill] sm:$0xff] %v6693_v53  ;;  %4556 = vmatmul.mubr.msk.bf16.vlgmr.msra.gmra.mrb[52].mxu0 %vm443_vm3, %v6689_v16  ;;  %v6714_v53 = vld [vmem:[#allocation7 + $0x8] sm:$0xf] }
 0x274   : > { %2031 = vmatpush1.bf16.msra.mxu0 %v2015_v40  ;;  %2062 = vmatprep.mubr.bf16.mxu0 %v7455_v3  ;;  %v991_v55 = vpop.f32.mrb[16].mxu1  ;;  %v2134_v40 = vsel %vm2132_vm7, %v6349_v30, %v6345_v45 }
 0x275   : > { %2032 = vmatprep.subr.bf16.mxu0 %v2019_v49  ;;  %v6704_v34 = vpop.permute.xlu0 %3870  ;;  %v999_v51 = vadd.f32 %v991_v55, %v881_v17  ;;  %v4759_v57 = vpop.f32.mrb[17].mxu1  ;;  %v6719_v17 = vld [vmem:[%s5645_s10 + $0x38] ss:$20 sps:$4 sm:$0xff]  }
 0x276   : > { %7467 = vst [vmem:[#allocation70_spill] sm:$0xff] %v6704_v34  ;;  %v6706_v10 = vpop.permute.xlu1 %3758  ;;  %v994_v18 = vpop.f32.mrb[18].mxu1  ;;  %v2133_v57 = vsel %vm2132_vm7, %v6357_v62, %v6349_v30  ;;  %3646 = vrot.lane.b32.xlu1 %v6719_v17, %s5405_s21  ;;  %s5297_s21 = scalar_lea.vmem %s7302_s16, 384 }
 0x277   : > { %7468 = vst [vmem:[#allocation71_spill] sm:$0xff] %v6706_v10  ;;  %v4760_v31 = vpop.f32.mrb[19].mxu1  ;;  %v7475_v10 = vld [vmem:[#allocation18_spill] sm:$0xff]  ;;  %p5298_p1 = scmp.ne.s32.totalorder %s7302_s16, %s5297_s21 }
 0x278   : > { %2033 = vmatpush1.bf16.msra.mxu0 %v2018_v38  ;;  %v2341_v39 = vsel %vm2339_vm13, %v7475_v10, %v6369_v42  ;;  %v7477_v42 = vld [vmem:[#allocation19_spill] sm:$0xff] }
 0x279   : > { %2148 = vmatprep.subr.bf16.mxu0 %v2134_v40  ;;  %v6716_v49 = vpop.permute.xlu0 %3868  ;;  %v2136_v40 = vsel %vm2132_vm7, %v6361_v35, %v6353_v61  ;;  %v2344_v36 = vsel %vm2339_vm13, %v7477_v42, %v6391_v52  ;;  %v2459_v52 = vsel %vm2457_vm14, %v7479_v26, %v6395_v59  ;;  %p5299_p4 = pnand %p5298_p1, %p5593_p6 }
 0x27a   : > { %7469 = vst [vmem:[#allocation72_spill] sm:$0xff] %v6716_v49  ;;  %v6721_v55 = vpop.permute.xlu1 %3872  ;;  %3764 = vrot.lane.b32.xlu1 %v6719_v17, %s5406_s13  ;;  %v6743_v49 = vld [vmem:[#allocation7 + $0xc] sm:$0xf]  ;;  %s5409_s13 = smov [#allocation10]  }
 0x27b   : > { %7470 = vst [vmem:[#allocation73_spill] sm:$0xff] %v6721_v55  ;;  %4558 = vmatmul.mubr.msk.bf16.vlgmr.msra.gmra.mrb[56].mxu0 %vm443_vm3, %v6714_v53  ;;  %v7474_v55 = vld [vmem:[#allocation15_spill] sm:$0xff]  ;;  %p5300_p8 = pneg %p5299_p4 }
 0x27c   : > { %2149 = vmatpush1.bf16.msra.mxu0 %v2133_v57  ;;  %2180 = vmatprep.mubr.bf16.mxu0 %v7455_v3  ;;  %v1080_v58 = vpop.f32.mrb[20].mxu1 }
 0x27d   : > { %2150 = vmatprep.subr.bf16.mxu0 %v2137_v24  ;;  %v6734_v18 = vpop.permute.xlu0 %3880  ;;  %v1088_v38 = vadd.f32 %v1080_v58, %v999_v51  ;;  %v4767_v31 = vpop.f32.mrb[21].mxu1 }
 0x27e   : > { %7471 = vst [vmem:[#allocation74_spill] sm:$0xff] %v6734_v18  ;;  %v6736_v30 = vpop.permute.xlu1 %3878  ;;  %v1083_v62 = vpop.f32.mrb[22].mxu1 }
 0x27f   : > { %7472 = vst [vmem:[#allocation75_spill] sm:$0xff] %v6736_v30  ;;  %v4768_v57 = vpop.f32.mrb[23].mxu1 }
 0x280   : > { %2151 = vmatpush1.bf16.msra.mxu0 %v2136_v40 }
 0x281   : > { %2237 = vmatprep.subr.bf16.mxu0 %v5829_v22  ;;  %v6746_v24 = vpop.permute.xlu0 %5108 }
 0x282   : > { %v6748_v51 = vpop.permute.xlu1 %3876 }
 0x283   : > { %7473 = vst [vmem:[#allocation76_spill] sm:$0xff] %v6748_v51  ;;  %4560 = vmatmul.mubr.msk.bf16.vlgmr.msra.gmra.mrb[60].mxu0 %vm443_vm3, %v6743_v49 }
 0x284   : > { %2238 = vmatpush1.bf16.msra.mxu0 %v5832_v23  ;;  %2269 = vmatprep.mubr.bf16.mxu0 %v7455_v3  ;;  %v1198_v61 = vpop.f32.mrb[24].mxu1 }
 0x285   : > { %2239 = vmatprep.subr.bf16.mxu0 %v5847_v27  ;;  %v5119_v35 = vpop.permute.xlu0 %5118  ;;  %v1206_v58 = vadd.f32 %v1198_v61, %v1088_v38  ;;  %v4775_v31 = vpop.f32.mrb[25].mxu1 }
 0x286   : > { %v5121_v62 = vunpack.i.h.bf16 %v5119_v35  ;;  %v5120_v40 = vunpack.i.l.bf16 %v5119_v35  ;;  %v6755_v57 = vpop.permute.xlu1 %5113  ;;  %v1201_v30 = vpop.f32.mrb[26].mxu1 }
 0x287   : > { %v5116_v51 = vunpack.i.h.bf16 %v6755_v57  ;;  %v4776_v18 = vpop.f32.mrb[27].mxu1 }
 0x288   : > { %v4167_v34 = vsel %vm430_vm1, %v5120_v40, %v5121_v62  ;;  %2240 = vmatpush1.bf16.msra.mxu0 %v7474_v55  ;;  %v7476_v18 = vld [vmem:[#allocation20_spill] sm:$0xff] }
 0x289   : > { %v4166_v38 = vsel %vm430_vm1, %v5116_v51, %v5120_v40  ;;  %2355 = vmatprep.subr.bf16.mxu0 %v2341_v39  ;;  %v6766_v61 = vpop.permute.xlu0 %5123  ;;  %v2340_v31 = vsel %vm2339_vm13, %v7476_v18, %v7475_v10  ;;  %v7478_v10 = vld [vmem:[#allocation21_spill] sm:$0xff] }
 0x28a   : > { %v5126_v30 = vunpack.i.h.bf16 %v6766_v61  ;;  %v4191_v35 = vadd.f32 %v4167_v34, %v4166_v38  ;;  %v2343_v18 = vsel %vm2339_vm13, %v7478_v10, %v7477_v42  ;;  %vm3884_vm13 = vcmask 867328  }
 0x28b   : > { %4562 = vmatmul.mubr.msk.bf16.vlgmr.msra.gmra.mrb[64].mxu0 %vm443_vm3, %v6763_v0 }
 0x28c   : > { %2356 = vmatpush1.bf16.msra.mxu0 %v2340_v31  ;;  %v4168_v51 = vsel %vm430_vm1, %v5121_v62, %v5126_v30  ;;  %2387 = vmatprep.mubr.bf16.mxu0 %v7455_v3  ;;  %v1316_v39 = vpop.f32.mrb[28].mxu1  ;;  %v6785_v62 = vld [vmem:[#allocation7 + $0x14] sm:$0xf] }
 0x28d   : > { %2357 = vmatprep.subr.bf16.mxu0 %v2344_v36  ;;  %v4192_v40 = vadd.f32 %v4191_v35, %v4168_v51  ;;  %v1324_v34 = vadd.f32 %v1316_v39, %v1206_v58  ;;  %v4783_v38 = vpop.f32.mrb[29].mxu1  ;;  %v7480_v36 = vld [vmem:[#allocation24_spill] sm:$0xff]  ;;  %v7482_v39 = vld [vmem:[#allocation25_spill] sm:$0xff] }
 0x28e   : > { %v1319_v44 = vpop.f32.mrb[30].mxu1  ;;  %v2458_v58 = vsel %vm2457_vm14, %v7480_v36, %v7479_v26  ;;  %v7483_v38 = vld [vmem:[#allocation26_spill] sm:$0xff] }
 0x28f   : > { %4193 = vadd.xlane.f32.xlu0 %v4192_v40  ;;  %v4784_v31 = vpop.f32.mrb[31].mxu1  ;;  %v7481_v44 = vld [vmem:[#allocation23_spill] sm:$0xff]  ;;  %v2577_v10 = vsel %vm2575_vm11, %v7483_v38, %v6417_v37 }
 0x290   : > { %2358 = vmatpush1.bf16.msra.mxu0 %v2343_v18  ;;  %v2462_v30 = vsel %vm2457_vm14, %v7481_v44, %v6414_v33  ;;  %v2461_v40 = vsel %vm2457_vm14, %v7482_v39, %v7481_v44  ;;  %v6802_v18 = vld [vmem:[#allocation7 + $0x18] sm:$0xf] }
 0x291   : > { %2473 = vmatprep.subr.bf16.mxu0 %v2459_v52  ;;  %v7484_v33 = vld [vmem:[#allocation27_spill] sm:$0xff]  ;;  %v523_v52 = vadd.f32 %v6607_v7, %v6231_v32 }
 0x292   : > { %v2576_v31 = vsel %vm2575_vm11, %v7484_v33, %v7483_v38  ;;  %v4609_v32 = vld [vmem:[%s7351_s7 + $0x18] sm:$0xff]  ;;  %v5110_v38 = vunpack.i.l.bf16 %v6746_v24  ;;  %vm3648_vm11 = vcmask 916480  }
 0x293   : > { %4564 = vmatmul.mubr.msk.bf16.vlgmr.msra.gmra.mrb[68].mxu0 %vm443_vm3, %v6785_v62 }
 0x294   : > { %2474 = vmatpush1.bf16.msra.mxu0 %v2458_v58  ;;  %v1434_v35 = vpop.f32.mrb[32].mxu1  ;;  %2505 = vmatprep.mubr.bf16.mxu0 %v7455_v3 }
 0x295   : > { %2475 = vmatprep.subr.bf16.mxu0 %v2462_v30  ;;  %v1442_v59 = vadd.f32 %v1434_v35, %v1324_v34  ;;  %v4791_v42 = vpop.f32.mrb[33].mxu1  ;;  %v7485_v35 = vld [vmem:[#allocation28_spill] sm:$0xff] }
 0x296   : > { %v1437_v51 = vpop.f32.mrb[34].mxu1  ;;  %v6815_v42 = vld [vmem:[#allocation7 + $0x1c] sm:$0xf] }
 0x297   : > { %v4792_v26 = vpop.f32.mrb[35].mxu1  ;;  %v530_v51 = vmax.f32 %v523_v52, 0.0 }
 0x298   : > { %2476 = vmatpush1.bf16.msra.mxu0 %v2461_v40  ;;  %v7487_v40 = vld [vmem:[#allocation29_spill] sm:$0xff]  ;;  %v6831_v26 = vld [vmem:[#allocation7 + $0x20] sm:$0xf] }
 0x299   : > { %2591 = vmatprep.subr.bf16.mxu0 %v2577_v10  ;;  %v5115_v10 = vunpack.i.l.bf16 %v6755_v57 }
 0x29b   : > { %4566 = vmatmul.mubr.msk.bf16.vlgmr.msra.gmra.mrb[72].mxu0 %vm443_vm3, %v6802_v18 }
 0x29c   : > { %2592 = vmatpush1.bf16.msra.mxu0 %v2576_v31  ;;  %v1552_v34 = vpop.f32.mrb[36].mxu1  ;;  %2623 = vmatprep.mubr.bf16.mxu0 %v7455_v3  ;;  %v5134_v31 = vpop.permute.xlu0 %5133 }
 0x29d   : > { %v1560_v36 = vadd.f32 %v1552_v34, %v1442_v59  ;;  %2593 = vmatprep.subr.bf16.mxu0 %v6488_v43  ;;  %v4799_v37 = vpop.f32.mrb[37].mxu1  ;;  %v7486_v59 = vmov 0.0   ;;  %v5135_v57 = vunpack.i.l.bf16 %v5134_v31 }
 0x29e   : > { %v1555_v58 = vpop.f32.mrb[38].mxu1  ;;  %v1789_v37 = vsel %vm1786_vm4, %v6238_v28, %v6472_v48 }
 0x29f   : > { %v1570_v44 = vadd.f32 %v6214_v8, %v1560_v36  ;;  %v4800_v30 = vpop.f32.mrb[39].mxu1  ;;  %v534_v8 = vpack.c.bf16 %v530_v51, %v530_v51 }
 0x2a0   : > { %2594 = vmatpush1.bf16.msra.mxu0 %v7485_v35 }
 0x2a1   : > { %v1573_v39 = vmax.f32 %v1570_v44, 0.0  ;;  %2709 = vmatprep.subr.bf16.mxu0 %v6508_v11  ;;  %v6827_v11 = vpop.permute.xlu1 %2924 }
 0x2a3   : > { %v1578_v7 = vpack.c.bf16 %v1573_v39, %v1573_v39  ;;  %4568 = vmatmul.mubr.msk.bf16.vlgmr.msra.gmra.mrb[76].mxu0 %vm443_vm3, %v6815_v42 }
 0x2a4   : > { %2710 = vmatpush1.bf16.msra.mxu0 %v6449_v21  ;;  %2741 = vmatprep.mubr.bf16.mxu0 %v7455_v3  ;;  %v1684_v21 = vsel %vm1583_vm15, %v534_v8, 0 }
 0x2a5   : > { %2711 = vmatprep.subr.bf16.mxu0 %v6526_v6  ;;  %3988 = vperm.xlu0 %5105, %v4609_v32   ;;  %v1591_v43 = vsel %vm1583_vm15, %v1578_v7, 0  ;;  %v5111_v6 = vunpack.i.h.bf16 %v6746_v24 }
 0x2a6   : > { %4802 = vmatpush3.bf16.msra.mxu1 %v1591_v43 }
 0x2a7   : > { %4807 = vmatprep.subr.bf16.mxu1 %v7486_v59  ;;  %v4163_v33 = vsel %vm430_vm1, %v5110_v38, %v5111_v6  ;;  %v4164_v24 = vsel %vm430_vm1, %v5111_v6, %v5115_v10  ;;  %v7488_v38 = vld [vmem:[#allocation31_spill] sm:$0xff] }
 0x2a8   : > { %2712 = vmatpush1.bf16.msra.mxu0 %v7487_v40  ;;  %v4187_v44 = vadd.f32 %v4164_v24, %v4163_v33  ;;  %v7491_v24 = vld [vmem:[#allocation32_spill] sm:$0xff] }
 0x2a9   : > { %4804 = vmatmul.mubr.msk.bf16.vlgmr.msra.gmra.mrb[40].mxu1 %vm1579_vm2, %v6618_v60  ;;  %3874 = vrot.lane.b32.xlu0 %v6513_v50, %s5407_s17  ;;  %v5129_v60 = vpop.permute.xlu1 %5128  ;;  %v5125_v50 = vunpack.i.l.bf16 %v6766_v61  ;;  %v5136_v61 = vunpack.i.h.bf16 %v5134_v31  ;;  %v7492_v31 = vld [vmem:[#allocation35_spill] sm:$0xff] }
 0x2aa   : > { %4808 = vmatpush3.bf16.msra.mxu1 %v1684_v21  ;;  %4809 = vmatprep.mubr.msk.bf16.mxu1 %vm5392_vm0, %v7486_v59  ;;  %v5131_v34 = vunpack.i.h.bf16 %v5129_v60  ;;  %v5130_v52 = vunpack.i.l.bf16 %v5129_v60 }
 0x2ab   : > { %4570 = vmatmul.mubr.msk.bf16.vlgmr.msra.gmra.mrb[80].mxu0 %vm443_vm3, %v6831_v26  ;;  %4813 = vmatprep.subr.bf16.mxu1 %v7486_v59  ;;  %v4165_v58 = vsel %vm430_vm1, %v5115_v10, %v5125_v50  ;;  %v1902_v10 = vsel %vm1899_vm5, %v6275_v47, %v7488_v38  ;;  %v7489_v50 = vld [vmem:[#allocation30_spill] sm:$0xff]  ;;  %v7490_v47 = vld [vmem:[#allocation33_spill] sm:$0xff] }
 0x2ac   : > { %2855 = vmatprep.mubr.bf16.mxu0 %v7455_v3  ;;  %v4170_v51 = vsel %vm430_vm1, %v5131_v34, %v5135_v57  ;;  %v4169_v39 = vsel %vm430_vm1, %v5130_v52, %v5131_v34  ;;  %v4188_v28 = vadd.f32 %v4187_v44, %v4165_v58  ;;  %v1905_v33 = vsel %vm1899_vm5, %v6307_v5, %v7489_v50  ;;  %v7502_v34 = vld [vmem:[#allocation42_spill] sm:$0xff]  ;;  %v6951_v52 = vpop.permute.xlu0 %2932 }
 0x2ad   : > { %v5139_v36 = vpop.permute.xlu1 %5138  ;;  %v4195_v40 = vadd.f32 %v4170_v51, %v4169_v39  ;;  %v2020_v5 = vsel %vm2014_vm6, %v6341_v29, %v7491_v24 }
 0x2ae   : > { %v5141_v30 = vunpack.i.h.bf16 %v5139_v36  ;;  %v5140_v35 = vunpack.i.l.bf16 %v5139_v36  ;;  %4189 = vadd.xlane.f32.xlu1 %v4188_v28 }
 0x2b0   : > { %v4172_v8 = vsel %vm430_vm1, %v5136_v61, %v5140_v35  ;;  %v4173_v43 = vsel %vm430_vm1, %v5140_v35, %v5141_v30 }
 0x2b1   : > { %4810 = vmatmul.mubr.msk.bf16.vlgmr.msra.gmra.mrb[44].mxu1 %vm1579_vm2, %v6639_v54  ;;  %v5144_v48 = vpop.permute.xlu1 %5143  ;;  %v1792_v54 = vsel %vm1786_vm4, %v6268_v46, %v6469_v14  ;;  %v4199_v14 = vadd.f32 %v4173_v43, %v4172_v8 }
 0x2b2   : > { %4814 = vmatpush3.bf16.msra.mxu1 %v1789_v37  ;;  %4817 = vmatprep.mubr.msk.bf16.mxu1 %vm5392_vm0, %v7486_v59  ;;  %v5146_v32 = vunpack.i.h.bf16 %v5144_v48  ;;  %v5145_v7 = vunpack.i.l.bf16 %v5144_v48 }
 0x2b3   : > { %4815 = vmatprep.subr.bf16.mxu1 %v7486_v59 }
 0x2b4   : > { %v4171_v21 = vsel %vm430_vm1, %v5135_v57, %v5145_v7  ;;  %v4174_v46 = vsel %vm430_vm1, %v5141_v30, %v5146_v32  ;;  %v7500_v57 = vld [vmem:[#allocation41_spill] sm:$0xff]  ;;  %vm2934_vm1 = vcmask 1022976  }
 0x2b5   : > { %v4196_v6 = vadd.f32 %v4195_v40, %v4171_v21  ;;  %v4200_v60 = vadd.f32 %v4199_v14, %v4174_v46  ;;  %v6959_v44 = vpop.permute.xlu1 %3163 }
 0x2b6   : > { %4816 = vmatpush3.bf16.msra.mxu1 %v1792_v54 }
 0x2b7   : > { %4821 = vmatprep.subr.bf16.mxu1 %v7486_v59  ;;  %4197 = vadd.xlane.f32.xlu1 %v4196_v6 }
 0x2b9   : > { %4818 = vmatmul.mubr.msk.bf16.vlgmr.msra.gmra.mrb[48].mxu1 %vm443_vm3, %v6664_v63  ;;  %v2017_v63 = vsel %vm2014_vm6, %v6316_v56, %v7490_v47  ;;  %v2135_v56 = vsel %vm2132_vm7, %v6345_v45, %v7492_v31  ;;  %v7494_v45 = vld [vmem:[#allocation16_spill] sm:$0xff]  ;;  %v6961_v51 = vpop.permute.xlu1 %3281 }
 0x2ba   : > { %4822 = vmatpush3.bf16.msra.mxu1 %v1902_v10  ;;  %4825 = vmatprep.mubr.msk.bf16.mxu1 %vm5392_vm0, %v7486_v59 }
 0x2bb   : > { %4823 = vmatprep.subr.bf16.mxu1 %v7486_v59  ;;  %4201 = vadd.xlane.f32.xlu1 %v4200_v60 }
 0x2bd   : > { %v6965_v28 = vpop.permute.xlu1 %3488 }
 0x2be   : > { %4824 = vmatpush3.bf16.msra.mxu1 %v1905_v33 }
 0x2bf   : > { %4829 = vmatprep.subr.bf16.mxu1 %v7486_v59 }
 0x2c1   : > { %4826 = vmatmul.mubr.msk.bf16.vlgmr.msra.gmra.mrb[52].mxu1 %vm443_vm3, %v6689_v16  ;;  %v7493_v16 = vld [vmem:[#allocation34_spill] sm:$0xff] }
 0x2c2   : > { %4830 = vmatpush3.bf16.msra.mxu1 %v2017_v63  ;;  %4833 = vmatprep.mubr.msk.bf16.mxu1 %vm5392_vm0, %v7486_v59  ;;  %v2138_v29 = vsel %vm2132_vm7, %v6365_v41, %v7493_v16  ;;  %v7496_v41 = vld [vmem:[#allocation37_spill] sm:$0xff] }
 0x2c3   : > { %4831 = vmatprep.subr.bf16.mxu1 %v7486_v59 }
 0x2c6   : > { %4832 = vmatpush3.bf16.msra.mxu1 %v2020_v5 }
 0x2c7   : > { %4837 = vmatprep.subr.bf16.mxu1 %v7486_v59 }
 0x2c9   : > { %4834 = vmatmul.mubr.msk.bf16.vlgmr.msra.gmra.mrb[56].mxu1 %vm443_vm3, %v6714_v53  ;;  %v7495_v53 = vld [vmem:[#allocation17_spill] sm:$0xff] }
 0x2ca   : > { %4838 = vmatpush3.bf16.msra.mxu1 %v2135_v56  ;;  %4841 = vmatprep.mubr.msk.bf16.mxu1 %vm5392_vm0, %v7486_v59 }
 0x2cb   : > { %4839 = vmatprep.subr.bf16.mxu1 %v7486_v59 }
 0x2cc   : > { %3882 = vrot.lane.b32.xlu1 %v6719_v17, %s5407_s17  ;;  %v7498_v17 = vld [vmem:[#allocation39_spill] sm:$0xff]  ;;  %s5301_s17 = sshll.u32 %s5409_s13, 4  ;;  %s5302_s17 = int_to_ptr.vmem [resolvable:$false] %s5301_s17 }
 0x2cd   : > { %s5303_s11 = scalar_lea.vmem %s5302_s17, 768  ;;  %p5304_p3 = scmp.lt.s32.totalorder %s7302_s16, %s5302_s17 }
 0x2ce   : > { %4840 = vmatpush3.bf16.msra.mxu1 %v2138_v29  ;;  %p5305_p7 = scmp.lt.s32.totalorder %s5303_s11, %s5297_s21 }
 0x2cf   : > { %4845 = vmatprep.subr.bf16.mxu1 %v7486_v59 }
 0x2d0   : > { %p5306_p10 = por %p5305_p7, %p5304_p3 }
 0x2d1   : > { %4842 = vmatmul.mubr.msk.bf16.vlgmr.msra.gmra.mrb[60].mxu1 %vm443_vm3, %v6743_v49  ;;  %v7497_v49 = vld [vmem:[#allocation36_spill] sm:$0xff] }
 0x2d2   : > { %4846 = vmatpush3.bf16.msra.mxu1 %v7494_v45  ;;  %4849 = vmatprep.mubr.msk.bf16.mxu1 %vm5392_vm0, %v7486_v59  ;;  %p5307_p13 = pnand %p5306_p10, %p5300_p8 }
 0x2d3   : > { %4847 = vmatprep.subr.bf16.mxu1 %v7486_v59 }
 0x2d6   : > { %4848 = vmatpush3.bf16.msra.mxu1 %v7495_v53 }
 0x2d7   : > { %4853 = vmatprep.subr.bf16.mxu1 %v7486_v59 }
 0x2d9   : > { %4850 = vmatmul.mubr.msk.bf16.vlgmr.msra.gmra.mrb[64].mxu1 %vm443_vm3, %v6763_v0  ;;  %v7499_v0 = vld [vmem:[#allocation38_spill] sm:$0xff] }
 0x2da   : > { %4854 = vmatpush3.bf16.msra.mxu1 %v7496_v41  ;;  %4857 = vmatprep.mubr.msk.bf16.mxu1 %vm5392_vm0, %v7486_v59 }
 0x2db   : > { %4855 = vmatprep.subr.bf16.mxu1 %v7486_v59 }
 0x2de   : > { %4856 = vmatpush3.bf16.msra.mxu1 %v7497_v49 }
 0x2df   : > { %4861 = vmatprep.subr.bf16.mxu1 %v7486_v59 }
 0x2e1   : > { %4858 = vmatmul.mubr.msk.bf16.vlgmr.msra.gmra.mrb[68].mxu1 %vm443_vm3, %v6785_v62  ;;  %v7501_v62 = vld [vmem:[#allocation40_spill] sm:$0xff] }
 0x2e2   : > { %4862 = vmatpush3.bf16.msra.mxu1 %v7498_v17  ;;  %4865 = vmatprep.mubr.msk.bf16.mxu1 %vm5392_vm0, %v7486_v59 }
 0x2e3   : > { %4863 = vmatprep.subr.bf16.mxu1 %v7486_v59 }
 0x2e6   : > { %4864 = vmatpush3.bf16.msra.mxu1 %v7499_v0 }
 0x2e7   : > { %4869 = vmatprep.subr.bf16.mxu1 %v7486_v59 }
 0x2e8   : > { %v6973_v40 = vpop.permute.xlu1 %3646 }
 0x2e9   : > { %4866 = vmatmul.mubr.msk.bf16.vlgmr.msra.gmra.mrb[72].mxu1 %vm443_vm3, %v6802_v18  ;;  %v7503_v18 = vld [vmem:[#allocation45_spill] sm:$0xff] }
 0x2ea   : > { %4870 = vmatpush3.bf16.msra.mxu1 %v7500_v57  ;;  %4873 = vmatprep.mubr.msk.bf16.mxu1 %vm5392_vm0, %v7486_v59 }
 0x2eb   : > { %4871 = vmatprep.subr.bf16.mxu1 %v7486_v59 }
 0x2ec   : > { %v6975_v6 = vpop.permute.xlu1 %3764 }
 0x2ee   : > { %4872 = vmatpush3.bf16.msra.mxu1 %v7501_v62 }
 0x2ef   : > { %4877 = vmatprep.subr.bf16.mxu1 %v7486_v59 }
 0x2f1   : > { %4874 = vmatmul.mubr.msk.bf16.vlgmr.msra.gmra.mrb[76].mxu1 %vm443_vm3, %v6815_v42  ;;  %v6953_v42 = vpop.permute.xlu0 %3155 }
 0x2f2   : > { %4878 = vmatpush3.bf16.msra.mxu1 %v7502_v34  ;;  %4881 = vmatprep.mubr.msk.bf16.mxu1 %vm5392_vm0, %v7486_v59 }
 0x2f3   : > { %4879 = vmatprep.subr.bf16.mxu1 %v7486_v59 }
 0x2f5   : > { %v6955_v36 = vpop.permute.xlu0 %3273 }
 0x2f6   : > { %4880 = vmatpush3.bf16.msra.mxu1 %v7503_v18 }
 0x2f7   : > { %4885 = vmatprep.subr.bf16.mxu1 %v7486_v59 }
 0x2f9   : > { %4882 = vmatmul.mubr.msk.bf16.vlgmr.msra.gmra.mrb[80].mxu1 %vm443_vm3, %v6831_v26  ;;  %v6957_v37 = vpop.permute.xlu0 %3480 }
 0x2fa   : > { %4887 = vmatprep.mubr.msk.bf16.mxu1 %vm5392_vm0, %v7486_v59 }
 0x2fd   : > { %v6963_v26 = vpop.permute.xlu0 %3638 }
 0x301   : > { %v6971_v43 = vpop.permute.xlu0 %3756 }
 0x31c   : > { %v4194_v10 = vpop.xlane.xlu0 %4193 }
 0x31d   : > { %v6977_v14 = vmul.f32 0.00390625, %v4194_v10 }
 0x32e   : > { %v1627_v58 = vpop.f32.mrb[40].mxu0 }
 0x32f   : > { %v1629_v61 = vpop.f32.mrb[41].mxu0 }
 0x330   : > { %v1631_v30 = vpop.f32.mrb[42].mxu0 }
 0x331   : > { %v1632_v35 = vpop.f32.mrb[43].mxu0 }
 0x336   : > { %v1720_v39 = vpop.f32.mrb[44].mxu0 }
 0x337   : > { %v6967_v48 = vadd.f32 %v1720_v39, %v1627_v58  ;;  %v1722_v54 = vpop.f32.mrb[45].mxu0 }
 0x338   : > { %v6969_v32 = vadd.f32 %v1722_v54, %v1629_v61  ;;  %v1724_v7 = vpop.f32.mrb[46].mxu0 }
 0x339   : > { %v1725_v8 = vpop.f32.mrb[47].mxu0 }
 0x33b   : > { %v4190_v50 = vpop.xlane.xlu1 %4189 }
 0x33c   : > { %v6979_v33 = vmul.f32 0.00390625, %v4190_v50 }
 0x33e   : > { %v1836_v21 = vpop.f32.mrb[48].mxu0  ;;  %v4986_v47 = vpack.c.bf16 %v6977_v14, %v6979_v33 }
 0x33f   : > { %v1838_v38 = vpop.f32.mrb[49].mxu0 }
 0x340   : > { %v1840_v46 = vpop.f32.mrb[50].mxu0 }
 0x341   : > { %v1841_v60 = vpop.f32.mrb[51].mxu0 }
 0x344   : > { %v4198_v16 = vpop.xlane.xlu1 %4197 }
 0x345   : > { %v6983_v41 = vmul.f32 0.00390625, %v4198_v16 }
 0x346   : > { %v1949_v63 = vpop.f32.mrb[52].mxu0 }
 0x347   : > { %v1950_v24 = vadd.f32 %v1949_v63, %v1836_v21  ;;  %v1951_v5 = vpop.f32.mrb[53].mxu0 }
 0x348   : > { %v1952_v31 = vadd.f32 %v1951_v5, %v1838_v38  ;;  %v1953_v56 = vpop.f32.mrb[54].mxu0  ;;  %v4202_v49 = vpop.xlane.xlu1 %4201 }
 0x349   : > { %v1954_v29 = vpop.f32.mrb[55].mxu0  ;;  %v6985_v17 = vmul.f32 0.00390625, %v4202_v49 }
 0x34b   : > { %v4989_v34 = vpack.c.bf16 %v6985_v17, %v6983_v41 }
 0x34e   : > { %v2064_v0 = vpop.f32.mrb[56].mxu0 }
 0x34f   : > { %v2111_v57 = vadd.f32 %v2064_v0, %v1950_v24  ;;  %v2066_v62 = vpop.f32.mrb[57].mxu0 }
 0x350   : > { %v2112_v18 = vadd.f32 %v2066_v62, %v1952_v31  ;;  %v2068_v58 = vpop.f32.mrb[58].mxu0 }
 0x351   : > { %v2069_v61 = vpop.f32.mrb[59].mxu0 }
 0x356   : > { %v2182_v30 = vpop.f32.mrb[60].mxu0 }
 0x357   : > { %v2229_v35 = vadd.f32 %v2182_v30, %v2111_v57  ;;  %v2184_v39 = vpop.f32.mrb[61].mxu0 }
 0x358   : > { %v2230_v54 = vadd.f32 %v2184_v39, %v2112_v18  ;;  %v2186_v7 = vpop.f32.mrb[62].mxu0 }
 0x359   : > { %v2187_v8 = vpop.f32.mrb[63].mxu0 }
 0x35e   : > { %v2271_v21 = vpop.f32.mrb[64].mxu0 }
 0x35f   : > { %v2318_v38 = vadd.f32 %v2271_v21, %v2229_v35  ;;  %v2273_v10 = vpop.f32.mrb[65].mxu0 }
 0x360   : > { %v2319_v46 = vadd.f32 %v2273_v10, %v2230_v54  ;;  %v2275_v60 = vpop.f32.mrb[66].mxu0 }
 0x361   : > { %v2276_v50 = vpop.f32.mrb[67].mxu0 }
 0x366   : > { %v2389_v63 = vpop.f32.mrb[68].mxu0 }
 0x367   : > { %v2436_v24 = vadd.f32 %v2389_v63, %v2318_v38  ;;  %v2391_v5 = vpop.f32.mrb[69].mxu0 }
 0x368   : > { %v2437_v56 = vadd.f32 %v2391_v5, %v2319_v46  ;;  %v2393_v16 = vpop.f32.mrb[70].mxu0 }
 0x369   : > { %v2394_v31 = vpop.f32.mrb[71].mxu0 }
 0x36e   : > { %v2507_v29 = vpop.f32.mrb[72].mxu0 }
 0x36f   : > { %v2554_v49 = vadd.f32 %v2507_v29, %v2436_v24  ;;  %v2509_v0 = vpop.f32.mrb[73].mxu0  ;;  %v7504_v24 = vld [vmem:[#allocation43_spill] sm:$0xff] }
 0x370   : > { %v2555_v57 = vadd.f32 %v2509_v0, %v2437_v56  ;;  %v2511_v62 = vpop.f32.mrb[74].mxu0 }
 0x371   : > { %v2512_v18 = vpop.f32.mrb[75].mxu0 }
 0x376   : > { %v2625_v58 = vpop.f32.mrb[76].mxu0 }
 0x377   : > { %v2672_v61 = vadd.f32 %v2625_v58, %v2554_v49  ;;  %v2627_v30 = vpop.f32.mrb[77].mxu0 }
 0x378   : > { %v2673_v35 = vadd.f32 %v2627_v30, %v2555_v57  ;;  %v2629_v39 = vpop.f32.mrb[78].mxu0 }
 0x379   : > { %v2630_v54 = vpop.f32.mrb[79].mxu0  ;;  %v7506_v39 = vld [vmem:[#allocation44_spill] sm:$0xff] }
 0x37c   : > { %v1668_v7 = vpop.f32.mrb[40].mxu1 }
 0x37d   : > { %v4805_v8 = vpop.f32.mrb[41].mxu1 }
 0x37e   : > { %v2743_v21 = vpop.f32.mrb[80].mxu0  ;;  %v1671_v38 = vpop.f32.mrb[42].mxu1  ;;  %v7507_v8 = vld [vmem:[#allocation46_spill] sm:$0xff] }
 0x37f   : > { %v2790_v10 = vadd.f32 %v2743_v21, %v2672_v61  ;;  %v2745_v46 = vpop.f32.mrb[81].mxu0  ;;  %v4806_v60 = vpop.f32.mrb[43].mxu1  ;;  %v2935_v21 = vsel %vm2934_vm1, %v7507_v8, %v7506_v39  ;;  %v7511_v8 = vld [vmem:[#allocation51_spill] sm:$0xff] }
 0x380   : > { %v2791_v50 = vadd.f32 %v2745_v46, %v2673_v35  ;;  %v2747_v63 = vpop.f32.mrb[82].mxu0  ;;  %v7505_v35 = vld [vmem:[#allocation47_spill] sm:$0xff]  ;;  %v7509_v46 = vld [vmem:[#allocation49_spill] sm:$0xff] }
 0x381   : > { %v2800_v5 = vadd.f32 %v7504_v24, %v2790_v10  ;;  %v2748_v56 = vpop.f32.mrb[83].mxu0  ;;  %v2936_v54 = vsel %vm2934_vm1, %v7506_v39, %v7505_v35  ;;  %v7508_v10 = vld [vmem:[#allocation48_spill] sm:$0xff] }
 0x382   : > { %v2801_v16 = vadd.f32 %v7504_v24, %v2791_v50  ;;  %v2939_v60 = vsel %vm2934_vm1, %v7509_v46, %v7508_v10  ;;  %v5169_v63 = vld [vmem:[%s5645_s10 + $0x4] ss:$20 sps:$4 sm:$0xff]  }
 0x383   : > { %v2803_v31 = vmax.f32 %v2800_v5, 0.0 }
 0x384   : > { %v2804_v29 = vmax.f32 %v2801_v16, 0.0  ;;  %v1761_v49 = vpop.f32.mrb[44].mxu1  ;;  %v2938_v16 = vsel %vm2934_vm1, %v6563_v13, %v7509_v46  ;;  %v7512_v46 = vld [vmem:[#allocation52_spill] sm:$0xff] }
 0x385   : > { %v2808_v0 = vpack.c.bf16 %v2803_v31, %v2803_v31  ;;  %v6991_v57 = vadd.f32 %v1761_v49, %v1668_v7  ;;  %v4811_v62 = vpop.f32.mrb[45].mxu1  ;;  %v7001_v7 = vld [vmem:[%s7350_s6 + $0x8] sm:$0xf]  ;;  %v7016_v31 = vld [vmem:[#allocation8 + $0x4] sm:$0xf] }
 0x386   : > { %v2809_v18 = vpack.c.bf16 %v2804_v29, %v2804_v29  ;;  %v1764_v58 = vpop.f32.mrb[46].mxu1  ;;  %v5167_v29 = vld [vmem:[%s5645_s10] ss:$20 sps:$4 sm:$0xff]   ;;  %v5170_v62 = vld [vmem:[%s5645_s10 + $0x28] ss:$20 sps:$4 sm:$0xff]  }
 0x387   : > { %v2815_v61 = vsel %vm1583_vm15, %v2808_v0, 0  ;;  %v4812_v30 = vpop.f32.mrb[47].mxu1  ;;  %v5172_v49 = vld [vmem:[%s5645_s10 + $0x2c] ss:$20 sps:$4 sm:$0xff]  }
 0x388   : > { %4574 = vmatprep.subr.msk.bf16.mxu0 %vm1583_vm15, %v2809_v18  ;;  %v7510_v30 = vld [vmem:[#allocation50_spill] sm:$0xff] }
 0x389   : > { %2824 = vmatpush1.bf16.msra.mxu0 %v2815_v61  ;;  %v3167_v39 = vsel %vm3165_vm8, %v7510_v30, %v6570_v12 }
 0x38a   : > { %2950 = vmatprep.subr.bf16.mxu0 %v2936_v54  ;;  %v7027_v54 = vld [vmem:[#allocation8] sm:$0xf] }
 0x38c   : > { %4575 = vmatmul.mubr.msk.bf16.vlgmr.msra.gmra.mrb[84].mxu0 %vm1579_vm2, %v7001_v7  ;;  %v1877_v38 = vpop.f32.mrb[48].mxu1 }
 0x38d   : > { %2951 = vmatpush1.bf16.msra.mxu0 %v2935_v21  ;;  %2982 = vmatprep.mubr.bf16.mxu0 %v7455_v3  ;;  %v4819_v50 = vpop.f32.mrb[49].mxu1  ;;  %v3166_v21 = vsel %vm3165_vm8, %v7511_v8, %v7510_v30  ;;  %v7517_v30 = vld [vmem:[#allocation57_spill] sm:$0xff] }
 0x38e   : > { %2952 = vmatprep.subr.bf16.mxu0 %v2939_v60  ;;  %v1880_v5 = vpop.f32.mrb[50].mxu1  ;;  %v3170_v60 = vsel %vm3165_vm8, %v7512_v46, %v6574_v2 }
 0x38f   : > { %v4820_v56 = vpop.f32.mrb[51].mxu1 }
 0x391   : > { %2953 = vmatpush1.bf16.msra.mxu0 %v2938_v16  ;;  %v7513_v16 = vld [vmem:[#allocation54_spill] sm:$0xff] }
 0x392   : > { %3066 = vmatprep.subr.bf16.mxu0 %v5169_v63 }
 0x394   : > { %4577 = vmatmul.mubr.msk.bf16.vlgmr.msra.gmra.mrb[88].mxu0 %vm443_vm3, %v7016_v31  ;;  %v1990_v0 = vpop.f32.mrb[52].mxu1 }
 0x395   : > { %3067 = vmatpush1.bf16.msra.mxu0 %v5167_v29  ;;  %3098 = vmatprep.mubr.bf16.mxu0 %v7455_v3  ;;  %v1991_v18 = vadd.f32 %v1990_v0, %v1877_v38  ;;  %v4827_v58 = vpop.f32.mrb[53].mxu1  ;;  %v3169_v29 = vsel %vm3165_vm8, %v7513_v16, %v7512_v46  ;;  %v7515_v0 = vld [vmem:[#allocation53_spill] sm:$0xff] }
 0x396   : > { %3068 = vmatprep.subr.bf16.mxu0 %v5172_v49  ;;  %v1993_v61 = vpop.f32.mrb[54].mxu1  ;;  %v7514_v49 = vld [vmem:[#allocation56_spill] sm:$0xff]  ;;  %v7044_v58 = vld [vmem:[#allocation8 + $0x8] sm:$0xf] }
 0x397   : > { %v4828_v13 = vpop.f32.mrb[55].mxu1  ;;  %v7516_v61 = vld [vmem:[#allocation55_spill] sm:$0xff] }
 0x399   : > { %3069 = vmatpush1.bf16.msra.mxu0 %v5170_v62  ;;  %v3285_v62 = vsel %vm3283_vm9, %v7515_v0, %v7514_v49 }
 0x39a   : > { %3181 = vmatprep.subr.bf16.mxu0 %v3167_v39  ;;  %v7518_v39 = vld [vmem:[#allocation58_spill] sm:$0xff] }
 0x39b   : > { %v3288_v8 = vsel %vm3283_vm9, %v7518_v39, %v7517_v30 }
 0x39c   : > { %4585 = vmatmul.mubr.msk.bf16.vlgmr.msra.gmra.mrb[92].mxu0 %vm443_vm3, %v7027_v54  ;;  %v2105_v38 = vpop.f32.mrb[56].mxu1 }
 0x39d   : > { %3182 = vmatpush1.bf16.msra.mxu0 %v3166_v21  ;;  %3213 = vmatprep.mubr.bf16.mxu0 %v7455_v3  ;;  %v2113_v50 = vadd.f32 %v2105_v38, %v1991_v18  ;;  %v4835_v63 = vpop.f32.mrb[57].mxu1  ;;  %v3284_v18 = vsel %vm3283_vm9, %v7516_v61, %v7515_v0  ;;  %v7070_v0 = vld [vmem:[#allocation8 + $0x10] sm:$0xf] }
 0x39e   : > { %3183 = vmatprep.subr.bf16.mxu0 %v3170_v60  ;;  %v2108_v5 = vpop.f32.mrb[58].mxu1  ;;  %v3287_v63 = vsel %vm3283_vm9, %v6605_v19, %v7518_v39  ;;  %v7519_v39 = vld [vmem:[#allocation60_spill] sm:$0xff] }
 0x39f   : > { %v4836_v56 = vpop.f32.mrb[59].mxu1  ;;  %v7058_v5 = vld [vmem:[#allocation8 + $0xc] sm:$0xf] }
 0x3a1   : > { %3184 = vmatpush1.bf16.msra.mxu0 %v3169_v29 }
 0x3a2   : > { %3299 = vmatprep.subr.bf16.mxu0 %v3285_v62 }
 0x3a4   : > { %4587 = vmatmul.mubr.msk.bf16.vlgmr.msra.gmra.mrb[96].mxu0 %vm443_vm3, %v7044_v58  ;;  %v2223_v13 = vpop.f32.mrb[60].mxu1 }
 0x3a5   : > { %3300 = vmatpush1.bf16.msra.mxu0 %v3284_v18  ;;  %3331 = vmatprep.mubr.bf16.mxu0 %v7455_v3  ;;  %v2231_v21 = vadd.f32 %v2223_v13, %v2113_v50  ;;  %v4843_v38 = vpop.f32.mrb[61].mxu1 }
 0x3a6   : > { %3301 = vmatprep.subr.bf16.mxu0 %v3288_v8  ;;  %v2226_v46 = vpop.f32.mrb[62].mxu1  ;;  %v7521_v8 = vld [vmem:[#allocation59_spill] sm:$0xff] }
 0x3a7   : > { %v4844_v60 = vpop.f32.mrb[63].mxu1  ;;  %v7087_v38 = vld [vmem:[#allocation8 + $0x14] sm:$0xf]  ;;  %v7522_v46 = vld [vmem:[#allocation61_spill] sm:$0xff] }
 0x3a8   : > { %v3649_v60 = vsel %vm3648_vm11, %v7522_v46, %v7521_v8 }
 0x3a9   : > { %3302 = vmatpush1.bf16.msra.mxu0 %v3287_v63 }
 0x3aa   : > { %3388 = vmatprep.subr.bf16.mxu0 %v5829_v22  ;;  %v3492_v22 = vsel %vm3490_vm10, %v6603_v25, %v6611_v20 }
 0x3ac   : > { %4589 = vmatmul.mubr.msk.bf16.vlgmr.msra.gmra.mrb[100].mxu0 %vm443_vm3, %v7058_v5  ;;  %v2312_v56 = vpop.f32.mrb[64].mxu1 }
 0x3ad   : > { %3389 = vmatpush1.bf16.msra.mxu0 %v5832_v23  ;;  %3420 = vmatprep.mubr.bf16.mxu0 %v7455_v3  ;;  %v2320_v50 = vadd.f32 %v2312_v56, %v2231_v21  ;;  %v4851_v16 = vpop.f32.mrb[65].mxu1  ;;  %v3491_v23 = vsel %vm3490_vm10, %v6609_v9, %v6603_v25  ;;  %v3494_v25 = vsel %vm3490_vm10, %v7519_v39, %v6623_v4  ;;  %v7520_v9 = vld [vmem:[#allocation62_spill] sm:$0xff]  ;;  %v7523_v56 = vld [vmem:[#allocation63_spill] sm:$0xff] }
 0x3ae   : > { %3390 = vmatprep.subr.bf16.mxu0 %v5847_v27  ;;  %v2315_v29 = vpop.f32.mrb[66].mxu1  ;;  %v3495_v27 = vsel %vm3490_vm10, %v6623_v4, %v6620_v1  ;;  %v3650_v21 = vsel %vm3648_vm11, %v7521_v8, %v7520_v9  ;;  %v3653_v4 = vsel %vm3648_vm11, %v7523_v56, %v6654_v15  ;;  %v7529_v8 = vld [vmem:[#allocation69_spill] sm:$0xff] }
 0x3af   : > { %v4852_v19 = vpop.f32.mrb[67].mxu1 }
 0x3b1   : > { %3391 = vmatpush1.bf16.msra.mxu0 %v7474_v55 }
 0x3b2   : > { %3506 = vmatprep.subr.bf16.mxu0 %v3492_v22  ;;  %v7524_v22 = vld [vmem:[#allocation65_spill] sm:$0xff] }
 0x3b4   : > { %4591 = vmatmul.mubr.msk.bf16.vlgmr.msra.gmra.mrb[104].mxu0 %vm443_vm3, %v7070_v0  ;;  %v2430_v62 = vpop.f32.mrb[68].mxu1 }
 0x3b5   : > { %3507 = vmatpush1.bf16.msra.mxu0 %v3491_v23  ;;  %3538 = vmatprep.mubr.bf16.mxu0 %v7455_v3  ;;  %v2438_v55 = vadd.f32 %v2430_v62, %v2320_v50  ;;  %v4859_v61 = vpop.f32.mrb[69].mxu1  ;;  %v3652_v23 = vsel %vm3648_vm11, %v7524_v22, %v7523_v56  ;;  %v7525_v62 = vld [vmem:[#allocation67_spill] sm:$0xff] }
 0x3b6   : > { %3508 = vmatprep.subr.bf16.mxu0 %v3495_v27  ;;  %v2433_v18 = vpop.f32.mrb[70].mxu1  ;;  %v7526_v27 = vld [vmem:[#allocation64_spill] sm:$0xff] }
 0x3b7   : > { %v4860_v13 = vpop.f32.mrb[71].mxu1  ;;  %v3768_v61 = vsel %vm3766_vm12, %v7526_v27, %v7525_v62  ;;  %v7104_v18 = vld [vmem:[#allocation8 + $0x18] sm:$0xf] }
 0x3b8   : > { %v7527_v13 = vld [vmem:[#allocation66_spill] sm:$0xff] }
 0x3b9   : > { %3509 = vmatpush1.bf16.msra.mxu0 %v3494_v25  ;;  %v7528_v25 = vld [vmem:[#allocation68_spill] sm:$0xff] }
 0x3ba   : > { %3664 = vmatprep.subr.bf16.mxu0 %v3650_v21  ;;  %v3771_v21 = vsel %vm3766_vm12, %v7529_v8, %v7528_v25 }
 0x3bc   : > { %4593 = vmatmul.mubr.msk.bf16.vlgmr.msra.gmra.mrb[108].mxu0 %vm443_vm3, %v7087_v38  ;;  %v2548_v63 = vpop.f32.mrb[72].mxu1 }
 0x3bd   : > { %3665 = vmatpush1.bf16.msra.mxu0 %v3649_v60  ;;  %3696 = vmatprep.mubr.bf16.mxu0 %v7455_v3  ;;  %v2556_v50 = vadd.f32 %v2548_v63, %v2438_v55  ;;  %v4867_v16 = vpop.f32.mrb[73].mxu1  ;;  %v3767_v55 = vsel %vm3766_vm12, %v7527_v13, %v7526_v27  ;;  %v7534_v27 = vld [vmem:[#allocation75_spill] sm:$0xff]  ;;  %v7535_v13 = vld [vmem:[#allocation72_spill] sm:$0xff] }
 0x3be   : > { %3666 = vmatprep.subr.bf16.mxu0 %v3653_v4  ;;  %v2551_v29 = vpop.f32.mrb[74].mxu1  ;;  %v7530_v4 = vld [vmem:[#allocation71_spill] sm:$0xff] }
 0x3bf   : > { %v4868_v19 = vpop.f32.mrb[75].mxu1  ;;  %v3770_v16 = vsel %vm3766_vm12, %v7530_v4, %v7529_v8  ;;  %v7531_v29 = vld [vmem:[#allocation73_spill] sm:$0xff]  ;;  %v7536_v4 = vld [vmem:[#allocation76_spill] sm:$0xff] }
 0x3c0   : > { %v7532_v19 = vld [vmem:[#allocation70_spill] sm:$0xff] }
 0x3c1   : > { %3667 = vmatpush1.bf16.msra.mxu0 %v3652_v23  ;;  %v3886_v22 = vsel %vm3884_vm13, %v7532_v19, %v7531_v29  ;;  %v7121_v23 = vld [vmem:[#allocation8 + $0x1c] sm:$0xf] }
 0x3c2   : > { %3782 = vmatprep.subr.bf16.mxu0 %v3768_v61 }
 0x3c4   : > { %4603 = vmatmul.mubr.msk.bf16.vlgmr.msra.gmra.mrb[112].mxu0 %vm443_vm3, %v7104_v18  ;;  %v2666_v39 = vpop.f32.mrb[76].mxu1 }
 0x3c5   : > { %3783 = vmatpush1.bf16.msra.mxu0 %v3767_v55  ;;  %v2674_v46 = vadd.f32 %v2666_v39, %v2556_v50  ;;  %v4875_v60 = vpop.f32.mrb[77].mxu1  ;;  %3814 = vmatprep.mubr.bf16.mxu0 %v7455_v3  ;;  %v7533_v50 = vld [vmem:[#allocation74_spill] sm:$0xff]  ;;  %v3885_v55 = vsel %vm3884_vm13, %v7535_v13, %v7532_v19  ;;  %v7136_v19 = vld [vmem:[#allocation8 + $0x20] sm:$0xf] }
 0x3c6   : > { %3784 = vmatprep.subr.bf16.mxu0 %v3771_v21  ;;  %v2669_v63 = vpop.f32.mrb[78].mxu1  ;;  %v3889_v61 = vsel %vm3884_vm13, %v7534_v27, %v7533_v50 }
 0x3c7   : > { %v4876_v56 = vpop.f32.mrb[79].mxu1 }
 0x3c9   : > { %3785 = vmatpush1.bf16.msra.mxu0 %v3770_v16  ;;  %v3888_v16 = vsel %vm3884_vm13, %v7536_v4, %v7534_v27  ;;  %v5173_v27 = vld [vmem:[%s5645_s10 + $0x8] ss:$20 sps:$4 sm:$0xff]  }
 0x3ca   : > { %3900 = vmatprep.subr.bf16.mxu0 %v3886_v22 }
 0x3cc   : > { %v2784_v39 = vpop.f32.mrb[80].mxu1  ;;  %4605 = vmatmul.mubr.msk.bf16.vlgmr.msra.gmra.mrb[116].mxu0 %vm443_vm3, %v7121_v23 }
 0x3cd   : > { %v2792_v8 = vadd.f32 %v2784_v39, %v2674_v46  ;;  %3901 = vmatpush1.bf16.msra.mxu0 %v3885_v55  ;;  %3932 = vmatprep.mubr.bf16.mxu0 %v7455_v3  ;;  %v4883_v21 = vpop.f32.mrb[81].mxu1 }
 0x3ce   : > { %3902 = vmatprep.subr.bf16.mxu0 %v3889_v61  ;;  %v2787_v60 = vpop.f32.mrb[82].mxu1 }
 0x3cf   : > { %v2802_v63 = vadd.f32 %v7504_v24, %v2792_v8  ;;  %v4884_v56 = vpop.f32.mrb[83].mxu1  ;;  %v2937_v24 = vsel %vm2934_vm1, %v7505_v35, %v6827_v11  ;;  %v5174_v11 = vld [vmem:[%s5645_s10 + $0x30] ss:$20 sps:$4 sm:$0xff]   ;;  %v3171_v35 = vsel %vm3165_vm8, %v6574_v2, %v6959_v44  ;;  %v3289_v2 = vsel %vm3283_vm9, %v7517_v30, %v6961_v51  ;;  %v3883_v51 = vpop.permute.xlu1 %3882 }
 0x3d1   : > { %v2805_v22 = vmax.f32 %v2802_v63, 0.0  ;;  %3903 = vmatpush1.bf16.msra.mxu0 %v3888_v16 }
 0x3d3   : > { %v2810_v13 = vpack.c.bf16 %v2805_v22, %v2805_v22 }
 0x3d4   : > { %4607 = vmatmul.mubr.msk.bf16.vlgmr.msra.gmra.mrb[120].mxu0 %vm443_vm3, %v7136_v19 }
 0x3d5   : > { %v2821_v46 = vsel %vm1583_vm15, %v2810_v13, 0  ;;  %4046 = vmatprep.mubr.bf16.mxu0 %v7455_v3  ;;  %v2940_v3 = vsel %vm2934_vm1, %v7508_v10, %v6951_v52  ;;  %v3168_v52 = vsel %vm3165_vm8, %v6570_v12, %v6953_v42  ;;  %v3286_v12 = vsel %vm3283_vm9, %v7514_v49, %v6955_v36  ;;  %v7224_v36 = vpop.permute.xlu0 %3988 }
 0x3d6   : > { %4886 = vmatpush3.bf16.msra.mxu1 %v2821_v46  ;;  %v3493_v42 = vsel %vm3490_vm10, %v6611_v20, %v6957_v37  ;;  %v3651_v20 = vsel %vm3648_vm11, %v7520_v9, %v6963_v26  ;;  %v3890_v26 = vsel %vm3884_vm13, %v7533_v50, %v3883_v51 }
 0x3d7   : > { %4891 = vmatprep.subr.bf16.mxu1 %v7486_v59 }
 0x3d9   : > { %4888 = vmatmul.mubr.msk.bf16.vlgmr.msra.gmra.mrb[84].mxu1 %vm1579_vm2, %v7001_v7  ;;  %v3875_v37 = vpop.permute.xlu0 %3874 }
 0x3da   : > { %4892 = vmatpush3.bf16.msra.mxu1 %v2937_v24  ;;  %4895 = vmatprep.mubr.msk.bf16.mxu1 %vm5392_vm0, %v7486_v59  ;;  %v3887_v44 = vsel %vm3884_vm13, %v7531_v29, %v3875_v37 }
 0x3db   : > { %4893 = vmatprep.subr.bf16.mxu1 %v7486_v59 }
 0x3de   : > { %4894 = vmatpush3.bf16.msra.mxu1 %v2940_v3 }
 0x3df   : > { %4899 = vmatprep.subr.bf16.mxu1 %v7486_v59 }
 0x3e1   : > { %4896 = vmatmul.mubr.msk.bf16.vlgmr.msra.gmra.mrb[88].mxu1 %vm443_vm3, %v7016_v31 }
 0x3e2   : > { %4900 = vmatpush3.bf16.msra.mxu1 %v5173_v27  ;;  %4903 = vmatprep.mubr.msk.bf16.mxu1 %vm5392_vm0, %v7486_v59 }
 0x3e3   : > { %4901 = vmatprep.subr.bf16.mxu1 %v7486_v59 }
 0x3e6   : > { %4902 = vmatpush3.bf16.msra.mxu1 %v5174_v11 }
 0x3e7   : > { %4907 = vmatprep.subr.bf16.mxu1 %v7486_v59 }
 0x3e9   : > { %4904 = vmatmul.mubr.msk.bf16.vlgmr.msra.gmra.mrb[92].mxu1 %vm443_vm3, %v7027_v54 }
 0x3ea   : > { %4908 = vmatpush3.bf16.msra.mxu1 %v3168_v52  ;;  %4911 = vmatprep.mubr.msk.bf16.mxu1 %vm5392_vm0, %v7486_v59 }
 0x3eb   : > { %4909 = vmatprep.subr.bf16.mxu1 %v7486_v59 }
 0x3ee   : > { %4910 = vmatpush3.bf16.msra.mxu1 %v3171_v35 }
 0x3ef   : > { %4915 = vmatprep.subr.bf16.mxu1 %v7486_v59 }
 0x3f1   : > { %4912 = vmatmul.mubr.msk.bf16.vlgmr.msra.gmra.mrb[96].mxu1 %vm443_vm3, %v7044_v58 }
 0x3f2   : > { %4916 = vmatpush3.bf16.msra.mxu1 %v3286_v12  ;;  %4919 = vmatprep.mubr.msk.bf16.mxu1 %vm5392_vm0, %v7486_v59 }
 0x3f3   : > { %4917 = vmatprep.subr.bf16.mxu1 %v7486_v59 }
 0x3f6   : > { %4918 = vmatpush3.bf16.msra.mxu1 %v3289_v2 }
 0x3f7   : > { %4923 = vmatprep.subr.bf16.mxu1 %v7486_v59 }
 0x3f9   : > { %4920 = vmatmul.mubr.msk.bf16.vlgmr.msra.gmra.mrb[100].mxu1 %vm443_vm3, %v7058_v5 }
 0x3fa   : > { %4924 = vmatpush3.bf16.msra.mxu1 %v7494_v45  ;;  %4927 = vmatprep.mubr.msk.bf16.mxu1 %vm5392_vm0, %v7486_v59  ;;  %v3496_v45 = vsel %vm3490_vm10, %v6620_v1, %v6965_v28  ;;  %v3654_v1 = vsel %vm3648_vm11, %v6654_v15, %v6973_v40  ;;  %v3772_v15 = vsel %vm3766_vm12, %v7528_v25, %v6975_v6 }
 0x3fb   : > { %4925 = vmatprep.subr.bf16.mxu1 %v7486_v59 }
 0x3fe   : > { %4926 = vmatpush3.bf16.msra.mxu1 %v7495_v53  ;;  %v3769_v53 = vsel %vm3766_vm12, %v7525_v62, %v6971_v43 }
 0x3ff   : > { %4931 = vmatprep.subr.bf16.mxu1 %v7486_v59 }
 0x401   : > { %4928 = vmatmul.mubr.msk.bf16.vlgmr.msra.gmra.mrb[104].mxu1 %vm443_vm3, %v7070_v0 }
 0x402   : > { %4932 = vmatpush3.bf16.msra.mxu1 %v3493_v42  ;;  %4935 = vmatprep.mubr.msk.bf16.mxu1 %vm5392_vm0, %v7486_v59 }
 0x403   : > { %4933 = vmatprep.subr.bf16.mxu1 %v7486_v59 }
 0x406   : > { %4934 = vmatpush3.bf16.msra.mxu1 %v3496_v45 }
 0x407   : > { %4939 = vmatprep.subr.bf16.mxu1 %v7486_v59 }
 0x409   : > { %4936 = vmatmul.mubr.msk.bf16.vlgmr.msra.gmra.mrb[108].mxu1 %vm443_vm3, %v7087_v38 }
 0x40a   : > { %4940 = vmatpush3.bf16.msra.mxu1 %v3651_v20  ;;  %4943 = vmatprep.mubr.msk.bf16.mxu1 %vm5392_vm0, %v7486_v59 }
 0x40b   : > { %4941 = vmatprep.subr.bf16.mxu1 %v7486_v59 }
 0x40e   : > { %4942 = vmatpush3.bf16.msra.mxu1 %v3654_v1 }
 0x40f   : > { %4947 = vmatprep.subr.bf16.mxu1 %v7486_v59 }
 0x411   : > { %4944 = vmatmul.mubr.msk.bf16.vlgmr.msra.gmra.mrb[112].mxu1 %vm443_vm3, %v7104_v18 }
 0x412   : > { %4948 = vmatpush3.bf16.msra.mxu1 %v3769_v53  ;;  %4951 = vmatprep.mubr.msk.bf16.mxu1 %vm5392_vm0, %v7486_v59 }
 0x413   : > { %4949 = vmatprep.subr.bf16.mxu1 %v7486_v59 }
 0x416   : > { %4950 = vmatpush3.bf16.msra.mxu1 %v3772_v15 }
 0x417   : > { %4955 = vmatprep.subr.bf16.mxu1 %v7486_v59 }
 0x419   : > { %4952 = vmatmul.mubr.msk.bf16.vlgmr.msra.gmra.mrb[116].mxu1 %vm443_vm3, %v7121_v23 }
 0x41a   : > { %4956 = vmatpush3.bf16.msra.mxu1 %v3887_v44  ;;  %4959 = vmatprep.mubr.msk.bf16.mxu1 %vm5392_vm0, %v7486_v59 }
 0x41b   : > { %4957 = vmatprep.subr.bf16.mxu1 %v7486_v59 }
 0x41e   : > { %4958 = vmatpush3.bf16.msra.mxu1 %v3890_v26 }
 0x41f   : > { %4963 = vmatprep.subr.bf16.mxu1 %v7486_v59 }
 0x421   : > { %4960 = vmatmul.mubr.msk.bf16.vlgmr.msra.gmra.mrb[120].mxu1 %vm443_vm3, %v7136_v19 }
 0x422   : > { %4965 = vmatprep.mubr.msk.bf16.mxu1 %vm5392_vm0, %v7486_v59 }
 0x45f   : > { %v2857_v28 = vpop.f32.mrb[84].mxu0 }
 0x460   : > { %v7248_v43 = vadd.f32 %v2857_v28, %v6967_v48  ;;  %v2859_v40 = vpop.f32.mrb[85].mxu0 }
 0x461   : > { %v7251_v6 = vadd.f32 %v2859_v40, %v6969_v32  ;;  %v2861_v7 = vpop.f32.mrb[86].mxu0 }
 0x462   : > { %v2862_v10 = vpop.f32.mrb[87].mxu0 }
 0x467   : > { %v2984_v31 = vpop.f32.mrb[88].mxu0 }
 0x468   : > { %v2986_v54 = vpop.f32.mrb[89].mxu0 }
 0x469   : > { %v2988_v49 = vpop.f32.mrb[90].mxu0 }
 0x46a   : > { %v2989_v58 = vpop.f32.mrb[91].mxu0 }
 0x46f   : > { %v3100_v30 = vpop.f32.mrb[92].mxu0 }
 0x470   : > { %v3101_v5 = vadd.f32 %v3100_v30, %v2984_v31  ;;  %v3102_v0 = vpop.f32.mrb[93].mxu0 }
 0x471   : > { %v3103_v9 = vadd.f32 %v3102_v0, %v2986_v54  ;;  %v3104_v38 = vpop.f32.mrb[94].mxu0 }
 0x472   : > { %v3105_v62 = vpop.f32.mrb[95].mxu0 }
 0x477   : > { %v3215_v18 = vpop.f32.mrb[96].mxu0 }
 0x478   : > { %v3262_v25 = vadd.f32 %v3215_v18, %v3101_v5  ;;  %v3217_v48 = vpop.f32.mrb[97].mxu0 }
 0x479   : > { %v3263_v29 = vadd.f32 %v3217_v48, %v3103_v9  ;;  %v3219_v23 = vpop.f32.mrb[98].mxu0  ;;  %v5408_v48 = vmov 0.0|0.0  }
 0x47a   : > { %v3220_v50 = vpop.f32.mrb[99].mxu0  ;;  %v4207_v23 = vld [vmem:[%s7349_s5] sm:$0xf] }
 0x47f   : > { %v3333_v32 = vpop.f32.mrb[100].mxu0 }
 0x480   : > { %v3380_v61 = vadd.f32 %v3333_v32, %v3262_v25  ;;  %v3335_v55 = vpop.f32.mrb[101].mxu0  ;;  %v4610_v25 = vld [vmem:[%s7350_s6 + $0xc] sm:$0xf] }
 0x481   : > { %v3381_v39 = vadd.f32 %v3335_v55, %v3263_v29  ;;  %v3337_v8 = vpop.f32.mrb[102].mxu0 }
 0x482   : > { %v3338_v21 = vpop.f32.mrb[103].mxu0 }
 0x487   : > { %v3422_v60 = vpop.f32.mrb[104].mxu0 }
 0x488   : > { %v3469_v63 = vadd.f32 %v3422_v60, %v3380_v61  ;;  %v3424_v56 = vpop.f32.mrb[105].mxu0  ;;  %v4208_v61 = vunpack.c.l.bf16 %v4207_v23 }
 0x489   : > { %v3470_v4 = vadd.f32 %v3424_v56, %v3381_v39  ;;  %v3426_v16 = vpop.f32.mrb[106].mxu0 }
 0x48a   : > { %v3427_v22 = vpop.f32.mrb[107].mxu0 }
 0x48f   : > { %v3540_v19 = vpop.f32.mrb[108].mxu0 }
 0x490   : > { %v3587_v13 = vadd.f32 %v3540_v19, %v3469_v63  ;;  %v3542_v46 = vpop.f32.mrb[109].mxu0 }
 0x491   : > { %v3588_v24 = vadd.f32 %v3542_v46, %v3470_v4  ;;  %v3544_v3 = vpop.f32.mrb[110].mxu0 }
 0x492   : > { %v3545_v27 = vpop.f32.mrb[111].mxu0 }
 0x497   : > { %v3698_v11 = vpop.f32.mrb[112].mxu0 }
 0x498   : > { %v3745_v52 = vadd.f32 %v3698_v11, %v3587_v13  ;;  %v3700_v35 = vpop.f32.mrb[113].mxu0 }
 0x499   : > { %v3746_v12 = vadd.f32 %v3700_v35, %v3588_v24  ;;  %v3702_v2 = vpop.f32.mrb[114].mxu0 }
 0x49a   : > { %v3703_v42 = vpop.f32.mrb[115].mxu0 }
 0x49f   : > { %v3816_v45 = vpop.f32.mrb[116].mxu0 }
 0x4a0   : > { %v3863_v20 = vadd.f32 %v3816_v45, %v3745_v52  ;;  %v3818_v1 = vpop.f32.mrb[117].mxu0 }
 0x4a1   : > { %v3864_v53 = vadd.f32 %v3818_v1, %v3746_v12  ;;  %v3820_v15 = vpop.f32.mrb[118].mxu0 }
 0x4a2   : > { %v3821_v37 = vpop.f32.mrb[119].mxu0 }
 0x4a7   : > { %v3934_v44 = vpop.f32.mrb[120].mxu0 }
 0x4a8   : > { %v3981_v51 = vadd.f32 %v3934_v44, %v3863_v20  ;;  %v3936_v26 = vpop.f32.mrb[121].mxu0 }
 0x4a9   : > { %v3982_v28 = vadd.f32 %v3936_v26, %v3864_v53  ;;  %v3938_v40 = vpop.f32.mrb[122].mxu0 }
 0x4aa   : > { %v3991_v7 = vadd.f32 %v7224_v36, %v3981_v51  ;;  %v3939_v10 = vpop.f32.mrb[123].mxu0 }
 0x4ab   : > { %v3992_v31 = vadd.f32 %v7224_v36, %v3982_v28 }
 0x4ac   : > { %v3994_v54 = vmax.f32 %v3991_v7, 0.0  ;;  %v2898_v49 = vpop.f32.mrb[84].mxu1 }
 0x4ad   : > { %v3995_v58 = vmax.f32 %v3992_v31, 0.0  ;;  %v7256_v30 = vadd.f32 %v2898_v49, %v6991_v57  ;;  %v4889_v5 = vpop.f32.mrb[85].mxu1 }
 0x4ae   : > { %v3999_v0 = vpack.c.bf16 %v3994_v54, %v3994_v54  ;;  %v2901_v9 = vpop.f32.mrb[86].mxu1 }
 0x4af   : > { %v4000_v38 = vpack.c.bf16 %v3995_v58, %v3995_v58  ;;  %v4890_v62 = vpop.f32.mrb[87].mxu1 }
 0x4b0   : > { %v4006_v18 = vsel %vm1583_vm15, %v3999_v0, 0  ;;  %v4614_v62 = vld [vmem:[%s7351_s7 + $0x20] sm:$0xff] }
 0x4b1   : > { %4611 = vmatprep.subr.msk.bf16.mxu0 %vm1583_vm15, %v4000_v38 }
 0x4b2   : > { %4015 = vmatpush1.bf16.msra.mxu0 %v4006_v18  ;;  %v4616_v18 = vld [vmem:[%s7350_s6 + $0x10] sm:$0xf] }
 0x4b3   : > { %4985 = vmatprep.subr.bf16.mxu0 %v5408_v48 }
 0x4b4   : > { %v3025_v29 = vpop.f32.mrb[88].mxu1 }
 0x4b5   : > { %4612 = vmatmul.mubr.msk.bf16.vlgmr.msra.gmra.mrb[124].mxu0 %vm1579_vm2, %v4610_v25  ;;  %v4897_v57 = vpop.f32.mrb[89].mxu1 }
 0x4b6   : > { %4987 = vmatpush3.bf16.msra.mxu0 %v4986_v47  ;;  %4977 = vmatprep.mubr.msk.f32.mxu0 %vm5392_vm0, %v7486_v59  ;;  %v3028_v50 = vpop.f32.mrb[90].mxu1 }
 0x4b7   : > { %4988 = vmatprep.subr.bf16.mxu0 %v5408_v48  ;;  %v4898_v32 = vpop.f32.mrb[91].mxu1 }
 0x4ba   : > { %4990 = vmatpush3.bf16.msra.mxu0 %v4989_v34 }
 0x4bc   : > { %v3141_v55 = vpop.f32.mrb[92].mxu1 }
 0x4bd   : > { %4978 = vmatmul.mubr.msk.f32.vlgmr.msra.gmra.mrb[128].mxu0 %vm443_vm3, %v4208_v61  ;;  %v3142_v14 = vadd.f32 %v3141_v55, %v3025_v29  ;;  %v4905_v33 = vpop.f32.mrb[93].mxu1  ;;  %v4287_v29 = vunpack.c.l.bf16 %v4616_v18 }
 0x4be   : > { %v3144_v47 = vpop.f32.mrb[94].mxu1 }
 0x4bf   : > { %v4906_v39 = vpop.f32.mrb[95].mxu1 }
 0x4c4   : > { %v3256_v8 = vpop.f32.mrb[96].mxu1 }
 0x4c5   : > { %v3264_v21 = vadd.f32 %v3256_v8, %v3142_v14  ;;  %v4913_v60 = vpop.f32.mrb[97].mxu1  ;;  %v4618_v14 = vld [vmem:[%s7351_s7 + $0x28] sm:$0xff] }
 0x4c6   : > { %v3259_v63 = vpop.f32.mrb[98].mxu1 }
 0x4c7   : > { %v4914_v56 = vpop.f32.mrb[99].mxu1 }
 0x4cc   : > { %v3374_v4 = vpop.f32.mrb[100].mxu1 }
 0x4cd   : > { %v3382_v16 = vadd.f32 %v3374_v4, %v3264_v21  ;;  %v4921_v22 = vpop.f32.mrb[101].mxu1 }
 0x4ce   : > { %v3377_v19 = vpop.f32.mrb[102].mxu1 }
 0x4cf   : > { %v4922_v13 = vpop.f32.mrb[103].mxu1 }
 0x4d4   : > { %v3463_v46 = vpop.f32.mrb[104].mxu1 }
 0x4d5   : > { %v3471_v41 = vadd.f32 %v3463_v46, %v3382_v16  ;;  %v4929_v17 = vpop.f32.mrb[105].mxu1 }
 0x4d6   : > { %v3466_v34 = vpop.f32.mrb[106].mxu1 }
 0x4d7   : > { %v4930_v24 = vpop.f32.mrb[107].mxu1 }
 0x4dc   : > { %v3581_v3 = vpop.f32.mrb[108].mxu1 }
 0x4dd   : > { %v3589_v27 = vadd.f32 %v3581_v3, %v3471_v41  ;;  %v4937_v11 = vpop.f32.mrb[109].mxu1 }
 0x4de   : > { %v3584_v52 = vpop.f32.mrb[110].mxu1 }
 0x4df   : > { %v4938_v35 = vpop.f32.mrb[111].mxu1 }
 0x4e4   : > { %v3739_v12 = vpop.f32.mrb[112].mxu1 }
 0x4e5   : > { %v3747_v2 = vadd.f32 %v3739_v12, %v3589_v27  ;;  %v4945_v42 = vpop.f32.mrb[113].mxu1 }
 0x4e6   : > { %v3742_v45 = vpop.f32.mrb[114].mxu1 }
 0x4e7   : > { %v4946_v20 = vpop.f32.mrb[115].mxu1 }
 0x4ec   : > { %v3857_v1 = vpop.f32.mrb[116].mxu1 }
 0x4ed   : > { %v3865_v53 = vadd.f32 %v3857_v1, %v3747_v2  ;;  %v4953_v15 = vpop.f32.mrb[117].mxu1 }
 0x4ee   : > { %v3860_v37 = vpop.f32.mrb[118].mxu1 }
 0x4ef   : > { %v4954_v44 = vpop.f32.mrb[119].mxu1 }
 0x4f4   : > { %v3975_v51 = vpop.f32.mrb[120].mxu1 }
 0x4f5   : > { %v3983_v26 = vadd.f32 %v3975_v51, %v3865_v53  ;;  %v4961_v28 = vpop.f32.mrb[121].mxu1 }
 0x4f6   : > { %v3978_v40 = vpop.f32.mrb[122].mxu1 }
 0x4f7   : > { %v3993_v7 = vadd.f32 %v7224_v36, %v3983_v26  ;;  %v4962_v10 = vpop.f32.mrb[123].mxu1 }
 0x4f9   : > { %v3996_v31 = vmax.f32 %v3993_v7, 0.0 }
 0x4fb   : > { %v4001_v54 = vpack.c.bf16 %v3996_v31, %v3996_v31 }
 0x4fd   : > { %v4012_v49 = vsel %vm1583_vm15, %v4001_v54, 0 }
 0x4fe   : > { %4964 = vmatpush3.bf16.msra.mxu1 %v4012_v49 }
 0x4ff   : > { %4980 = vmatprep.subr.mxu1 %v7486_v59 }
 0x501   : > { %4966 = vmatmul.mubr.msk.bf16.vlgmr.msra.gmra.mrb[124].mxu1 %vm1579_vm2, %v4610_v25 }
 0x502   : > { %4982 = vmatprep.mubr.msk.f32.mxu1 %vm5392_vm0, %v7486_v59 }
 0x588   : > { %v4048_v58 = vpop.f32.mrb[124].mxu0 }
 0x589   : > { %v4095_v5 = vadd.f32 %v4048_v58, %v7248_v43  ;;  %v4050_v0 = vpop.f32.mrb[125].mxu0 }
 0x58a   : > { %v4096_v9 = vadd.f32 %v4050_v0, %v7251_v6  ;;  %v4052_v36 = vpop.f32.mrb[126].mxu0 }
 0x58b   : > { %v4053_v38 = vpop.f32.mrb[127].mxu0 }
 0x590   : > { %v4280_v25 = vpop.f32.mrb[128].mxu0 }
 0x591   : > { %v4281_v48 = vadd.f32 %v4614_v62, %v4280_v25  ;;  %v4979_v59 = vpop.f32.mrb[129].mxu0 }
 0x593   : > { %v4284_v57 = vmax.f32 %v4281_v48, 0.0 }
 0x595   : > { %4981 = vmatpush3.msra.mxu1 %v4284_v57 }
 0x596   : > { %4983 = vmatmul.mubr.msk.f32.vlgmr.msra.gmra.mrb[128].mxu1 %vm1579_vm2, %v4287_v29 }
 0x5d4   : > { %v4089_v43 = vpop.f32.mrb[124].mxu1 }
 0x5d5   : > { %v4097_v6 = vadd.f32 %v4089_v43, %v7256_v30  ;;  %v4967_v23 = vpop.f32.mrb[125].mxu1 }
 0x5d6   : > { %v4092_v50 = vpop.f32.mrb[126].mxu1 }
 0x5d7   : > { %v4968_v32 = vpop.f32.mrb[127].mxu1 }
 0x669   : > { %v4357_v61 = vpop.f32.mrb[128].mxu1 }
 0x66a   : > { %4363 = vperm.xlu0 %5105, %v4357_v61   ;;  %v4984_v55 = vpop.f32.mrb[129].mxu1 }
 0x66e   : > { %4373 = vperm.xlu0 %5105, %v4618_v14  }
 0x6e9   : > { %v4364_v33 = vpop.permute.xlu0 %4363 }
 0x6ea   : > { %v4366_v47 = vadd.f32 %v4364_v33, %v4095_v5  ;;  %v4367_v39 = vadd.f32 %v4364_v33, %v4096_v9  ;;  %v4368_v8 = vadd.f32 %v4364_v33, %v4097_v6 }
 0x6ed   : > { %v4374_v21 = vpop.permute.xlu0 %4373 }
 0x6ee   : > { %v4376_v30 = vadd.f32 %v4374_v21, %v4366_v47  ;;  %v4377_v60 = vadd.f32 %v4374_v21, %v4367_v39  ;;  %v4378_v63 = vadd.f32 %v4374_v21, %v4368_v8 }
 0x6f0   : > { %v4379_v56 = vmax.f32 %v4376_v30, 0.0  ;;  %v4380_v4 = vmax.f32 %v4377_v60, 0.0  ;;  %v4381_v16 = vmax.f32 %v4378_v63, 0.0 }
 0x6f2   : > { %4382 = vst [vmem:[%s365_s26] sm:$0xff] %v4379_v56  ;;  %4383 = vst [vmem:[%s365_s26 + $0x8] sm:$0xff] %v4380_v4 }
 0x6f3   : > { %4384 = vst [vmem:[%s365_s26 + $0x10] sm:$0xff] %v4381_v16 }
 0x6f4   : > { %5310 = shalt.err (!%p5307_p13)
}
 0x6f5   : > { %s5311_s14 = scalar_lea.hbm %s7300_s19, 384  ;;  %s5315_s18 = scalar_lea.hbm %s7352_s8, 768 }
 0x6f6   : > { %p5312_p0 = scmp.ne.s32.totalorder %s7300_s19, %s5311_s14  ;;  %p5316_p9 = scmp.lt.u32.totalorder %s7300_s19, %s7352_s8 }
 0x6f7   : > { %p5317_p12 = scmp.lt.u32.totalorder %s5315_s18, %s5311_s14  ;;  %p5319_p1 = scmp.lt.u32.totalorder %s5311_s14, %s7300_s19 }
 0x6f8   : > { %p5313_p5 = pnand %p5312_p0, %p5593_p6 }
 0x6f9   : > { %p5318_p2 = por %p5317_p12, %p5316_p9 }
 0x6fa   : > { %p5314_p11 = pneg %p5313_p5 }
 0x6fb   : > { %p5320_p4 = por %p5319_p1, %p5318_p2 }
 0x6fd   : > { %p5321_p8 = pnand %p5320_p4, %p5314_p11 }
 0x6ff   : > { %5324 = shalt.err (!%p5321_p8)
}
 0x700   : > { %5010 = dma.vmem_to_hbm [thread:$0]  (%p5593_p6), %s7302_s16, 384, %s7300_s19, %s4386_s9  }
 0x701 PF: > { %s4412_s26 = sand.u32 1, %s5359_s27   ;;  %p7537_p3 = scmp.ne.s32.totalorder %s7396_s12, 0 }
 0x702   : > { %p7538_p7 = scmp.ge.s32.totalorder %s5371_s30, 2  ;;  %s4413_s10 = scalar_lea.sflag [#allocation4], %s4412_s26 }
 0x704   : > { %p5027_p10 = pnand %p7538_p7, %p7537_p3 }
 0x706   : > { %5354 = dma.done.wait (!%p5027_p10), %s4413_s10, 384  }
 0x707   : > { %5356 = vsyncadd (!%p5027_p10), %s4413_s10, 4294966912  ;;  %p23_p13 = scmp.ge.s32.totalorder %s5579_s1, 4   ;;  %s7539_s27 = smov %s5363_s28 }
 0x708   : > { %s7540_s28 = smov %s5367_s29  ;;  %s7541_s29 = smov %s5589_s24 }
 0x709   : > { %s7542_s30 = smov %s5579_s1  ;;  %25 = sbr.rel (!%p23_p13) target bundleno = 10 (0xa), region = 142 }
 0x710   :  { %4418 = vsyncpa [#allocation3], 1 }
 0x711   :  { %4420 = vsyncpa [#allocation3 + $0x1], 1 }
 0x712   :  { %4421 = vsyncpa [#allocation6], 1 }
 0x713   :  { %4422 = vsyncpa [#allocation9], 1 }
 0x714   :  { %4423 = vsyncpa [#allocation4], 1 }
 0x715   :  { %4425 = vsyncpa [#allocation4 + $0x1], 1 }

</bundles_post_ra>
